<compile_context>
chip_gen: v6e
topology: v6e:2x2x1
jax: 0.10.0
libtpu: 0.0.40
codegen_flags: <defaults>
</compile_context>

<pallas_src>
import jax
import jax.numpy as jnp
from jax import lax
from jax.experimental import pallas as pl
from jax.experimental.pallas import tpu as pltpu


def _lstm_decoder_kernel(x_ref,        # (1, T*TB, I)   time-major, batch-block minor
                         wih_ref,      # (2, 4, I, H)   per-direction, per-gate (i,f,g,o)
                         whh_ref,      # (2, 4, H, H)
                         b_ref,        # (2, 4, 1, H)   b_ih + b_hh, per gate
                         h0_ref,       # (2, TB, H)
                         c0_ref,       # (2, TB, H)
                         wlin_ref,     # (2, H, I)      head split per direction
                         blin_ref,     # (1, I)
                         out_ref,      # (TB, I)
                         hn_ref,       # (2, TB, H)
                         cn_ref,       # (2, TB, H)
                         gx_ref):      # VMEM scratch (2, 4, T*TB, H)
    TB = h0_ref.shape[1]
    H = h0_ref.shape[2]
    T = x_ref.shape[1] // TB

    # ---- pre-pass: hoist the input-to-hidden projection out of the recurrence ----
    # One MXU-friendly (T*TB, I) x (I, H) matmul per (direction, gate); bias folded in.
    x_flat = x_ref[0]                                              # (T*TB, I)
    for d in range(2):
        for g in range(4):
            gx_ref[d, g] = (
                jnp.dot(x_flat, wih_ref[d, g],
                        preferred_element_type=jnp.float32)
                + b_ref[d, g])

    # ---- recurrence: both directions fused in one (unrolled) loop body ----
    def cell(h, c, d, t_idx):
        start = pl.multiple_of(t_idx * TB, TB)                     # sublane-aligned
        gi = gx_ref[d, 0, pl.ds(start, TB), :]
        gf = gx_ref[d, 1, pl.ds(start, TB), :]
        gg = gx_ref[d, 2, pl.ds(start, TB), :]
        go = gx_ref[d, 3, pl.ds(start, TB), :]
        # Per-gate matmuls: every result starts at lane 0 (no lane rotations).
        i = jax.nn.sigmoid(gi + jnp.dot(h, whh_ref[d, 0],
                                        preferred_element_type=jnp.float32))
        f = jax.nn.sigmoid(gf + jnp.dot(h, whh_ref[d, 1],
                                        preferred_element_type=jnp.float32))
        g = jnp.tanh(gg + jnp.dot(h, whh_ref[d, 2],
                                  preferred_element_type=jnp.float32))
        o = jax.nn.sigmoid(go + jnp.dot(h, whh_ref[d, 3],
                                        preferred_element_type=jnp.float32))
        c_new = f * c + i * g
        h_new = o * jnp.tanh(c_new)
        return h_new, c_new

    def step(t, carry):
        h_f, c_f, h_b, c_b = carry
        h_f, c_f = cell(h_f, c_f, 0, t)            # forward:  t = 0 .. T-1
        h_b, c_b = cell(h_b, c_b, 1, T - 1 - t)    # backward: t = T-1 .. 0
        return h_f, c_f, h_b, c_b

    unroll = True if T <= 32 else 4
    h_f, c_f, h_b, c_b = lax.fori_loop(
        0, T, step,
        (h0_ref[0], c0_ref[0], h0_ref[1], c0_ref[1]),
        unroll=unroll)

    hn_ref[0] = h_f
    hn_ref[1] = h_b
    cn_ref[0] = c_f
    cn_ref[1] = c_b

    # Linear head without lane concatenation: split weight per direction.
    out_ref[...] = (jnp.dot(h_f, wlin_ref[0], preferred_element_type=jnp.float32)
                    + jnp.dot(h_b, wlin_ref[1], preferred_element_type=jnp.float32)
                    + blin_ref[...])


def lstm_decoder_forward(x, encoder_hidden_states, params, *, batch_block=8):
    """x: (B, T, I) batch_first; encoder_hidden_states = (h0, c0), each (2, B, H)."""
    h0, c0 = encoder_hidden_states
    B, T, I = x.shape
    H = h0.shape[-1]

    TB = batch_block
    assert TB % 8 == 0, "batch block must be a multiple of the sublane width (8)"
    B_pad = ((B + TB - 1) // TB) * TB
    pad = B_pad - B
    if pad:
        x = jnp.pad(x, ((0, pad), (0, 0), (0, 0)))
        h0 = jnp.pad(h0, ((0, 0), (0, pad), (0, 0)))
        c0 = jnp.pad(c0, ((0, 0), (0, pad), (0, 0)))

    n_blk = B_pad // TB
    # Present x to the kernel as (n_blk, T*TB, I): within a batch block the row
    # index is t*TB + b, so the pre-pass is a single 2-D matmul and per-step GX
    # reads are contiguous, sublane-aligned slices.
    x_blk = (jnp.transpose(x, (1, 0, 2))            # (T, B_pad, I)
             .reshape(T, n_blk, TB, I)
             .transpose(1, 0, 2, 3)
             .reshape(n_blk, T * TB, I))

    # Split PyTorch-layout weights per gate (i, f, g, o) and pre-transpose so every
    # matmul is lane-dense with lane-0 outputs.
    def split_gates(w):  # (4H, X) -> (4, X, H)
        return jnp.stack([w[g * H:(g + 1) * H, :].T for g in range(4)])

    wih = jnp.stack([split_gates(params["w_ih_f"]),
                     split_gates(params["w_ih_b"])])                 # (2, 4, I, H)
    whh = jnp.stack([split_gates(params["w_hh_f"]),
                     split_gates(params["w_hh_b"])])                 # (2, 4, H, H)
    bias = jnp.stack([
        (params["b_ih_f"] + params["b_hh_f"]).reshape(4, 1, H),
        (params["b_ih_b"] + params["b_hh_b"]).reshape(4, 1, H),
    ])                                                               # (2, 4, 1, H)
    wlin = jnp.stack([params["w_lin"][:, :H].T,
                      params["w_lin"][:, H:].T])                     # (2, H, I)
    blin = params["b_lin"].reshape(1, I)

    grid = (n_blk,)
    out, h_n, c_n = pl.pallas_call(
        _lstm_decoder_kernel,
        out_shape=(
            jax.ShapeDtypeStruct((B_pad, I), jnp.float32),
            jax.ShapeDtypeStruct((2, B_pad, H), jnp.float32),
            jax.ShapeDtypeStruct((2, B_pad, H), jnp.float32),
        ),
        grid_spec=pltpu.PrefetchScalarGridSpec(
            num_scalar_prefetch=0,
            grid=grid,
            in_specs=[
                pl.BlockSpec((1, T * TB, I), lambda b: (b, 0, 0)),    # x (per batch block)
                pl.BlockSpec((2, 4, I, H), lambda b: (0, 0, 0, 0)),   # wih (resident)
                pl.BlockSpec((2, 4, H, H), lambda b: (0, 0, 0, 0)),   # whh (resident)
                pl.BlockSpec((2, 4, 1, H), lambda b: (0, 0, 0, 0)),   # bias (resident)
                pl.BlockSpec((2, TB, H), lambda b: (0, b, 0)),        # h0
                pl.BlockSpec((2, TB, H), lambda b: (0, b, 0)),        # c0
                pl.BlockSpec((2, H, I), lambda b: (0, 0, 0)),         # wlin (resident)
                pl.BlockSpec((1, I), lambda b: (0, 0)),               # blin (resident)
            ],
            out_specs=(
                pl.BlockSpec((TB, I), lambda b: (b, 0)),
                pl.BlockSpec((2, TB, H), lambda b: (0, b, 0)),
                pl.BlockSpec((2, TB, H), lambda b: (0, b, 0)),
            ),
            scratch_shapes=[pltpu.VMEM((2, 4, T * TB, H), jnp.float32)],
        ),
        compiler_params=pltpu.CompilerParams(
            dimension_semantics=("parallel",),        # batch blocks -> megacore
            vmem_limit_bytes=32 * 1024 * 1024,        # explicit VMEM budget
        ),
    )(x_blk, wih, whh, bias, h0, c0, wlin, blin)

    return out[:B], (h_n[:, :B], c_n[:, :B])


def _reference_forward(x, encoder_hidden_states, params):
    """Pure-JAX reference of the same forward (for correctness check)."""
    h0, c0 = encoder_hidden_states
    H = h0.shape[-1]

    def run_dir(xs, h, c, w_ih, w_hh, b_ih, b_hh):
        def step(carry, x_t):
            h, c = carry
            gates = x_t @ w_ih.T + h @ w_hh.T + b_ih + b_hh
            i = jax.nn.sigmoid(gates[:, 0:H])
            f = jax.nn.sigmoid(gates[:, H:2 * H])
            g = jnp.tanh(gates[:, 2 * H:3 * H])
            o = jax.nn.sigmoid(gates[:, 3 * H:4 * H])
            c = f * c + i * g
            h = o * jnp.tanh(c)
            return (h, c), h
        (h, c), _ = lax.scan(step, (h, c), xs)
        return h, c

    xs = jnp.transpose(x, (1, 0, 2))
    h_f, c_f = run_dir(xs, h0[0], c0[0],
                       params["w_ih_f"], params["w_hh_f"],
                       params["b_ih_f"], params["b_hh_f"])
    h_b, c_b = run_dir(xs[::-1], h0[1], c0[1],
                       params["w_ih_b"], params["w_hh_b"],
                       params["b_ih_b"], params["b_hh_b"])
    feat = jnp.concatenate([h_f, h_b], axis=1)
    out = feat @ params["w_lin"].T + params["b_lin"]
    return out, (jnp.stack([h_f, h_b]), jnp.stack([c_f, c_b]))


if __name__ == "__main__":
    B, T, I, H = 2, 8, 4, 32  # batch, seq_len, input_size, hidden_size

    key = jax.random.PRNGKey(0)
    ks = jax.random.split(key, 16)
    bound = 1.0 / float(jnp.sqrt(H))

    def u(k, shape):
        return jax.random.uniform(k, shape, jnp.float32, -bound, bound)

    # PyTorch-layout parameters (bidirectional single-layer LSTM + Linear(2H, I)).
    params = {
        "w_ih_f": u(ks[0], (4 * H, I)), "w_hh_f": u(ks[1], (4 * H, H)),
        "b_ih_f": u(ks[2], (4 * H,)),   "b_hh_f": u(ks[3], (4 * H,)),
        "w_ih_b": u(ks[4], (4 * H, I)), "w_hh_b": u(ks[5], (4 * H, H)),
        "b_ih_b": u(ks[6], (4 * H,)),   "b_hh_b": u(ks[7], (4 * H,)),
        "w_lin":  u(ks[8], (I, 2 * H)), "b_lin":  u(ks[9], (I,)),
    }

    x = jax.random.normal(ks[10], (B, T, I), jnp.float32)
    h0 = jax.random.normal(ks[11], (2, B, H), jnp.float32)
    c0 = jax.random.normal(ks[12], (2, B, H), jnp.float32)

    output, (h_n, c_n) = lstm_decoder_forward(x, (h0, c0), params)
    jax.block_until_ready((output, h_n, c_n))

    ref_out, (ref_h, ref_c) = _reference_forward(x, (h0, c0), params)
    assert jnp.allclose(output, ref_out, atol=1e-5, rtol=1e-5)
    assert jnp.allclose(h_n, ref_h, atol=1e-5, rtol=1e-5)
    assert jnp.allclose(c_n, ref_c, atol=1e-5, rtol=1e-5)

    print("KERNEL_OK")
</pallas_src>

<mosaic_0001>
module attributes {stable_mosaic.version = 11 : i64} {
  func.func @_lstm_decoder_kernel(%arg0: i32, %arg1: memref<1x64x4xf32, #tpu.memory_space<vmem>>, %arg2: memref<2x4x4x32xf32, #tpu.memory_space<vmem>>, %arg3: memref<2x4x32x32xf32, #tpu.memory_space<vmem>>, %arg4: memref<2x4x1x32xf32, #tpu.memory_space<vmem>>, %arg5: memref<2x8x32xf32, #tpu.memory_space<vmem>>, %arg6: memref<2x8x32xf32, #tpu.memory_space<vmem>>, %arg7: memref<2x32x4xf32, #tpu.memory_space<vmem>>, %arg8: memref<1x4xf32, #tpu.memory_space<vmem>>, %arg9: memref<8x4xf32, #tpu.memory_space<vmem>>, %arg10: memref<2x8x32xf32, #tpu.memory_space<vmem>>, %arg11: memref<2x8x32xf32, #tpu.memory_space<vmem>>, %arg12: memref<2x4x64x32xf32, #tpu.memory_space<vmem>>) attributes {dimension_semantics = [#tpu.dimension_semantics<parallel>], iteration_bounds = array<i64: 1>, scalar_prefetch = 0 : i64, scratch_operands = 1 : i64, tpu.core_type = #tpu.core_type<tc>, window_params = [{transform_indices = @transform_0, window_bounds = array<i64: 1, 64, 4>}, {pipeline_mode = #tpu.pipeline_mode<synchronous>, transform_indices = @transform_1, window_bounds = array<i64: 2, 4, 4, 32>}, {pipeline_mode = #tpu.pipeline_mode<synchronous>, transform_indices = @transform_2, window_bounds = array<i64: 2, 4, 32, 32>}, {pipeline_mode = #tpu.pipeline_mode<synchronous>, transform_indices = @transform_3, window_bounds = array<i64: 2, 4, 1, 32>}, {transform_indices = @transform_4, window_bounds = array<i64: 2, 8, 32>}, {transform_indices = @transform_5, window_bounds = array<i64: 2, 8, 32>}, {pipeline_mode = #tpu.pipeline_mode<synchronous>, transform_indices = @transform_6, window_bounds = array<i64: 2, 32, 4>}, {pipeline_mode = #tpu.pipeline_mode<synchronous>, transform_indices = @transform_7, window_bounds = array<i64: 1, 4>}, {transform_indices = @transform_8, window_bounds = array<i64: 8, 4>}, {transform_indices = @transform_9, window_bounds = array<i64: 2, 8, 32>}, {transform_indices = @transform_10, window_bounds = array<i64: 2, 8, 32>}]} {
    %c0 = arith.constant 0 : index
    %c0_0 = arith.constant 0 : index
    %c0_1 = arith.constant 0 : index
    %0 = vector.load %arg1[%c0, %c0_0, %c0_1] : memref<1x64x4xf32, #tpu.memory_space<vmem>>, vector<1x64x4xf32>
    %1 = vector.shape_cast %0 : vector<1x64x4xf32> to vector<64x4xf32>
    %c0_2 = arith.constant 0 : index
    %c0_3 = arith.constant 0 : index
    %c0_4 = arith.constant 0 : index
    %c0_5 = arith.constant 0 : index
    %2 = vector.load %arg2[%c0_2, %c0_3, %c0_4, %c0_5] : memref<2x4x4x32xf32, #tpu.memory_space<vmem>>, vector<1x1x4x32xf32>
    %3 = vector.shape_cast %2 : vector<1x1x4x32xf32> to vector<4x32xf32>
    %cst = arith.constant dense<0.000000e+00> : vector<64x32xf32>
    %4 = tpu.matmul %1, %3, %cst {dimension_numbers = #tpu.dot_dimension_numbers<[1], [0], [0], [1], [0, 0, 1, 1], [], []>} : vector<64x4xf32>, vector<4x32xf32>, vector<64x32xf32> -> vector<64x32xf32>
    %c0_6 = arith.constant 0 : index
    %c0_7 = arith.constant 0 : index
    %c0_8 = arith.constant 0 : index
    %c0_9 = arith.constant 0 : index
    %5 = vector.load %arg4[%c0_6, %c0_7, %c0_8, %c0_9] : memref<2x4x1x32xf32, #tpu.memory_space<vmem>>, vector<1x1x1x32xf32>
    %6 = vector.shape_cast %5 : vector<1x1x1x32xf32> to vector<1x32xf32>
    %7 = vector.broadcast %6 : vector<1x32xf32> to vector<64x32xf32>
    %8 = arith.addf %4, %7 : vector<64x32xf32>
    %c0_10 = arith.constant 0 : index
    %c0_11 = arith.constant 0 : index
    %c0_12 = arith.constant 0 : index
    %c0_13 = arith.constant 0 : index
    %9 = vector.load %arg12[%c0_10, %c0_11, %c0_12, %c0_13] : memref<2x4x64x32xf32, #tpu.memory_space<vmem>>, vector<1x1x64x32xf32>
    %10 = vector.shape_cast %9 : vector<1x1x64x32xf32> to vector<64x32xf32>
    %11 = vector.shape_cast %8 : vector<64x32xf32> to vector<1x1x64x32xf32>
    tpu.vector_store %arg12[%c0_10, %c0_11, %c0_12, %c0_13], %11 {strides = array<i32>} : memref<2x4x64x32xf32, #tpu.memory_space<vmem>>, vector<1x1x64x32xf32>,
    %c0_14 = arith.constant 0 : index
    %c1 = arith.constant 1 : index
    %c0_15 = arith.constant 0 : index
    %c0_16 = arith.constant 0 : index
    %12 = vector.load %arg2[%c0_14, %c1, %c0_15, %c0_16] : memref<2x4x4x32xf32, #tpu.memory_space<vmem>>, vector<1x1x4x32xf32>
    %13 = vector.shape_cast %12 : vector<1x1x4x32xf32> to vector<4x32xf32>
    %cst_17 = arith.constant dense<0.000000e+00> : vector<64x32xf32>
    %14 = tpu.matmul %1, %13, %cst_17 {dimension_numbers = #tpu.dot_dimension_numbers<[1], [0], [0], [1], [0, 0, 1, 1], [], []>} : vector<64x4xf32>, vector<4x32xf32>, vector<64x32xf32> -> vector<64x32xf32>
    %c0_18 = arith.constant 0 : index
    %c1_19 = arith.constant 1 : index
    %c0_20 = arith.constant 0 : index
    %c0_21 = arith.constant 0 : index
    %15 = vector.load %arg4[%c0_18, %c1_19, %c0_20, %c0_21] : memref<2x4x1x32xf32, #tpu.memory_space<vmem>>, vector<1x1x1x32xf32>
    %16 = vector.shape_cast %15 : vector<1x1x1x32xf32> to vector<1x32xf32>
    %17 = vector.broadcast %16 : vector<1x32xf32> to vector<64x32xf32>
    %18 = arith.addf %14, %17 : vector<64x32xf32>
    %c0_22 = arith.constant 0 : index
    %c1_23 = arith.constant 1 : index
    %c0_24 = arith.constant 0 : index
    %c0_25 = arith.constant 0 : index
    %19 = vector.load %arg12[%c0_22, %c1_23, %c0_24, %c0_25] : memref<2x4x64x32xf32, #tpu.memory_space<vmem>>, vector<1x1x64x32xf32>
    %20 = vector.shape_cast %19 : vector<1x1x64x32xf32> to vector<64x32xf32>
    %21 = vector.shape_cast %18 : vector<64x32xf32> to vector<1x1x64x32xf32>
    tpu.vector_store %arg12[%c0_22, %c1_23, %c0_24, %c0_25], %21 {strides = array<i32>} : memref<2x4x64x32xf32, #tpu.memory_space<vmem>>, vector<1x1x64x32xf32>,
    %c0_26 = arith.constant 0 : index
    %c2 = arith.constant 2 : index
    %c0_27 = arith.constant 0 : index
    %c0_28 = arith.constant 0 : index
    %22 = vector.load %arg2[%c0_26, %c2, %c0_27, %c0_28] : memref<2x4x4x32xf32, #tpu.memory_space<vmem>>, vector<1x1x4x32xf32>
    %23 = vector.shape_cast %22 : vector<1x1x4x32xf32> to vector<4x32xf32>
    %cst_29 = arith.constant dense<0.000000e+00> : vector<64x32xf32>
    %24 = tpu.matmul %1, %23, %cst_29 {dimension_numbers = #tpu.dot_dimension_numbers<[1], [0], [0], [1], [0, 0, 1, 1], [], []>} : vector<64x4xf32>, vector<4x32xf32>, vector<64x32xf32> -> vector<64x32xf32>
    %c0_30 = arith.constant 0 : index
    %c2_31 = arith.constant 2 : index
    %c0_32 = arith.constant 0 : index
    %c0_33 = arith.constant 0 : index
    %25 = vector.load %arg4[%c0_30, %c2_31, %c0_32, %c0_33] : memref<2x4x1x32xf32, #tpu.memory_space<vmem>>, vector<1x1x1x32xf32>
    %26 = vector.shape_cast %25 : vector<1x1x1x32xf32> to vector<1x32xf32>
    %27 = vector.broadcast %26 : vector<1x32xf32> to vector<64x32xf32>
    %28 = arith.addf %24, %27 : vector<64x32xf32>
    %c0_34 = arith.constant 0 : index
    %c2_35 = arith.constant 2 : index
    %c0_36 = arith.constant 0 : index
    %c0_37 = arith.constant 0 : index
    %29 = vector.load %arg12[%c0_34, %c2_35, %c0_36, %c0_37] : memref<2x4x64x32xf32, #tpu.memory_space<vmem>>, vector<1x1x64x32xf32>
    %30 = vector.shape_cast %29 : vector<1x1x64x32xf32> to vector<64x32xf32>
    %31 = vector.shape_cast %28 : vector<64x32xf32> to vector<1x1x64x32xf32>
    tpu.vector_store %arg12[%c0_34, %c2_35, %c0_36, %c0_37], %31 {strides = array<i32>} : memref<2x4x64x32xf32, #tpu.memory_space<vmem>>, vector<1x1x64x32xf32>,
    %c0_38 = arith.constant 0 : index
    %c3 = arith.constant 3 : index
    %c0_39 = arith.constant 0 : index
    %c0_40 = arith.constant 0 : index
    %32 = vector.load %arg2[%c0_38, %c3, %c0_39, %c0_40] : memref<2x4x4x32xf32, #tpu.memory_space<vmem>>, vector<1x1x4x32xf32>
    %33 = vector.shape_cast %32 : vector<1x1x4x32xf32> to vector<4x32xf32>
    %cst_41 = arith.constant dense<0.000000e+00> : vector<64x32xf32>
    %34 = tpu.matmul %1, %33, %cst_41 {dimension_numbers = #tpu.dot_dimension_numbers<[1], [0], [0], [1], [0, 0, 1, 1], [], []>} : vector<64x4xf32>, vector<4x32xf32>, vector<64x32xf32> -> vector<64x32xf32>
    %c0_42 = arith.constant 0 : index
    %c3_43 = arith.constant 3 : index
    %c0_44 = arith.constant 0 : index
    %c0_45 = arith.constant 0 : index
    %35 = vector.load %arg4[%c0_42, %c3_43, %c0_44, %c0_45] : memref<2x4x1x32xf32, #tpu.memory_space<vmem>>, vector<1x1x1x32xf32>
    %36 = vector.shape_cast %35 : vector<1x1x1x32xf32> to vector<1x32xf32>
    %37 = vector.broadcast %36 : vector<1x32xf32> to vector<64x32xf32>
    %38 = arith.addf %34, %37 : vector<64x32xf32>
    %c0_46 = arith.constant 0 : index
    %c3_47 = arith.constant 3 : index
    %c0_48 = arith.constant 0 : index
    %c0_49 = arith.constant 0 : index
    %39 = vector.load %arg12[%c0_46, %c3_47, %c0_48, %c0_49] : memref<2x4x64x32xf32, #tpu.memory_space<vmem>>, vector<1x1x64x32xf32>
    %40 = vector.shape_cast %39 : vector<1x1x64x32xf32> to vector<64x32xf32>
    %41 = vector.shape_cast %38 : vector<64x32xf32> to vector<1x1x64x32xf32>
    tpu.vector_store %arg12[%c0_46, %c3_47, %c0_48, %c0_49], %41 {strides = array<i32>} : memref<2x4x64x32xf32, #tpu.memory_space<vmem>>, vector<1x1x64x32xf32>,
    %c1_50 = arith.constant 1 : index
    %c0_51 = arith.constant 0 : index
    %c0_52 = arith.constant 0 : index
    %c0_53 = arith.constant 0 : index
    %42 = vector.load %arg2[%c1_50, %c0_51, %c0_52, %c0_53] : memref<2x4x4x32xf32, #tpu.memory_space<vmem>>, vector<1x1x4x32xf32>
    %43 = vector.shape_cast %42 : vector<1x1x4x32xf32> to vector<4x32xf32>
    %cst_54 = arith.constant dense<0.000000e+00> : vector<64x32xf32>
    %44 = tpu.matmul %1, %43, %cst_54 {dimension_numbers = #tpu.dot_dimension_numbers<[1], [0], [0], [1], [0, 0, 1, 1], [], []>} : vector<64x4xf32>, vector<4x32xf32>, vector<64x32xf32> -> vector<64x32xf32>
    %c1_55 = arith.constant 1 : index
    %c0_56 = arith.constant 0 : index
    %c0_57 = arith.constant 0 : index
    %c0_58 = arith.constant 0 : index
    %45 = vector.load %arg4[%c1_55, %c0_56, %c0_57, %c0_58] : memref<2x4x1x32xf32, #tpu.memory_space<vmem>>, vector<1x1x1x32xf32>
    %46 = vector.shape_cast %45 : vector<1x1x1x32xf32> to vector<1x32xf32>
    %47 = vector.broadcast %46 : vector<1x32xf32> to vector<64x32xf32>
    %48 = arith.addf %44, %47 : vector<64x32xf32>
    %c1_59 = arith.constant 1 : index
    %c0_60 = arith.constant 0 : index
    %c0_61 = arith.constant 0 : index
    %c0_62 = arith.constant 0 : index
    %49 = vector.load %arg12[%c1_59, %c0_60, %c0_61, %c0_62] : memref<2x4x64x32xf32, #tpu.memory_space<vmem>>, vector<1x1x64x32xf32>
    %50 = vector.shape_cast %49 : vector<1x1x64x32xf32> to vector<64x32xf32>
    %51 = vector.shape_cast %48 : vector<64x32xf32> to vector<1x1x64x32xf32>
    tpu.vector_store %arg12[%c1_59, %c0_60, %c0_61, %c0_62], %51 {strides = array<i32>} : memref<2x4x64x32xf32, #tpu.memory_space<vmem>>, vector<1x1x64x32xf32>,
    %c1_63 = arith.constant 1 : index
    %c1_64 = arith.constant 1 : index
    %c0_65 = arith.constant 0 : index
    %c0_66 = arith.constant 0 : index
    %52 = vector.load %arg2[%c1_63, %c1_64, %c0_65, %c0_66] : memref<2x4x4x32xf32, #tpu.memory_space<vmem>>, vector<1x1x4x32xf32>
    %53 = vector.shape_cast %52 : vector<1x1x4x32xf32> to vector<4x32xf32>
    %cst_67 = arith.constant dense<0.000000e+00> : vector<64x32xf32>
    %54 = tpu.matmul %1, %53, %cst_67 {dimension_numbers = #tpu.dot_dimension_numbers<[1], [0], [0], [1], [0, 0, 1, 1], [], []>} : vector<64x4xf32>, vector<4x32xf32>, vector<64x32xf32> -> vector<64x32xf32>
    %c1_68 = arith.constant 1 : index
    %c1_69 = arith.constant 1 : index
    %c0_70 = arith.constant 0 : index
    %c0_71 = arith.constant 0 : index
    %55 = vector.load %arg4[%c1_68, %c1_69, %c0_70, %c0_71] : memref<2x4x1x32xf32, #tpu.memory_space<vmem>>, vector<1x1x1x32xf32>
    %56 = vector.shape_cast %55 : vector<1x1x1x32xf32> to vector<1x32xf32>
    %57 = vector.broadcast %56 : vector<1x32xf32> to vector<64x32xf32>
    %58 = arith.addf %54, %57 : vector<64x32xf32>
    %c1_72 = arith.constant 1 : index
    %c1_73 = arith.constant 1 : index
    %c0_74 = arith.constant 0 : index
    %c0_75 = arith.constant 0 : index
    %59 = vector.load %arg12[%c1_72, %c1_73, %c0_74, %c0_75] : memref<2x4x64x32xf32, #tpu.memory_space<vmem>>, vector<1x1x64x32xf32>
    %60 = vector.shape_cast %59 : vector<1x1x64x32xf32> to vector<64x32xf32>
    %61 = vector.shape_cast %58 : vector<64x32xf32> to vector<1x1x64x32xf32>
    tpu.vector_store %arg12[%c1_72, %c1_73, %c0_74, %c0_75], %61 {strides = array<i32>} : memref<2x4x64x32xf32, #tpu.memory_space<vmem>>, vector<1x1x64x32xf32>,
    %c1_76 = arith.constant 1 : index
    %c2_77 = arith.constant 2 : index
    %c0_78 = arith.constant 0 : index
    %c0_79 = arith.constant 0 : index
    %62 = vector.load %arg2[%c1_76, %c2_77, %c0_78, %c0_79] : memref<2x4x4x32xf32, #tpu.memory_space<vmem>>, vector<1x1x4x32xf32>
    %63 = vector.shape_cast %62 : vector<1x1x4x32xf32> to vector<4x32xf32>
    %cst_80 = arith.constant dense<0.000000e+00> : vector<64x32xf32>
    %64 = tpu.matmul %1, %63, %cst_80 {dimension_numbers = #tpu.dot_dimension_numbers<[1], [0], [0], [1], [0, 0, 1, 1], [], []>} : vector<64x4xf32>, vector<4x32xf32>, vector<64x32xf32> -> vector<64x32xf32>
    %c1_81 = arith.constant 1 : index
    %c2_82 = arith.constant 2 : index
    %c0_83 = arith.constant 0 : index
    %c0_84 = arith.constant 0 : index
    %65 = vector.load %arg4[%c1_81, %c2_82, %c0_83, %c0_84] : memref<2x4x1x32xf32, #tpu.memory_space<vmem>>, vector<1x1x1x32xf32>
    %66 = vector.shape_cast %65 : vector<1x1x1x32xf32> to vector<1x32xf32>
    %67 = vector.broadcast %66 : vector<1x32xf32> to vector<64x32xf32>
    %68 = arith.addf %64, %67 : vector<64x32xf32>
    %c1_85 = arith.constant 1 : index
    %c2_86 = arith.constant 2 : index
    %c0_87 = arith.constant 0 : index
    %c0_88 = arith.constant 0 : index
    %69 = vector.load %arg12[%c1_85, %c2_86, %c0_87, %c0_88] : memref<2x4x64x32xf32, #tpu.memory_space<vmem>>, vector<1x1x64x32xf32>
    %70 = vector.shape_cast %69 : vector<1x1x64x32xf32> to vector<64x32xf32>
    %71 = vector.shape_cast %68 : vector<64x32xf32> to vector<1x1x64x32xf32>
    tpu.vector_store %arg12[%c1_85, %c2_86, %c0_87, %c0_88], %71 {strides = array<i32>} : memref<2x4x64x32xf32, #tpu.memory_space<vmem>>, vector<1x1x64x32xf32>,
    %c1_89 = arith.constant 1 : index
    %c3_90 = arith.constant 3 : index
    %c0_91 = arith.constant 0 : index
    %c0_92 = arith.constant 0 : index
    %72 = vector.load %arg2[%c1_89, %c3_90, %c0_91, %c0_92] : memref<2x4x4x32xf32, #tpu.memory_space<vmem>>, vector<1x1x4x32xf32>
    %73 = vector.shape_cast %72 : vector<1x1x4x32xf32> to vector<4x32xf32>
    %cst_93 = arith.constant dense<0.000000e+00> : vector<64x32xf32>
    %74 = tpu.matmul %1, %73, %cst_93 {dimension_numbers = #tpu.dot_dimension_numbers<[1], [0], [0], [1], [0, 0, 1, 1], [], []>} : vector<64x4xf32>, vector<4x32xf32>, vector<64x32xf32> -> vector<64x32xf32>
    %c1_94 = arith.constant 1 : index
    %c3_95 = arith.constant 3 : index
    %c0_96 = arith.constant 0 : index
    %c0_97 = arith.constant 0 : index
    %75 = vector.load %arg4[%c1_94, %c3_95, %c0_96, %c0_97] : memref<2x4x1x32xf32, #tpu.memory_space<vmem>>, vector<1x1x1x32xf32>
    %76 = vector.shape_cast %75 : vector<1x1x1x32xf32> to vector<1x32xf32>
    %77 = vector.broadcast %76 : vector<1x32xf32> to vector<64x32xf32>
    %78 = arith.addf %74, %77 : vector<64x32xf32>
    %c1_98 = arith.constant 1 : index
    %c3_99 = arith.constant 3 : index
    %c0_100 = arith.constant 0 : index
    %c0_101 = arith.constant 0 : index
    %79 = vector.load %arg12[%c1_98, %c3_99, %c0_100, %c0_101] : memref<2x4x64x32xf32, #tpu.memory_space<vmem>>, vector<1x1x64x32xf32>
    %80 = vector.shape_cast %79 : vector<1x1x64x32xf32> to vector<64x32xf32>
    %81 = vector.shape_cast %78 : vector<64x32xf32> to vector<1x1x64x32xf32>
    tpu.vector_store %arg12[%c1_98, %c3_99, %c0_100, %c0_101], %81 {strides = array<i32>} : memref<2x4x64x32xf32, #tpu.memory_space<vmem>>, vector<1x1x64x32xf32>,
    %c0_102 = arith.constant 0 : index
    %c0_103 = arith.constant 0 : index
    %c0_104 = arith.constant 0 : index
    %82 = vector.load %arg5[%c0_102, %c0_103, %c0_104] : memref<2x8x32xf32, #tpu.memory_space<vmem>>, vector<1x8x32xf32>
    %83 = vector.shape_cast %82 : vector<1x8x32xf32> to vector<8x32xf32>
    %c0_105 = arith.constant 0 : index
    %c0_106 = arith.constant 0 : index
    %c0_107 = arith.constant 0 : index
    %84 = vector.load %arg6[%c0_105, %c0_106, %c0_107] : memref<2x8x32xf32, #tpu.memory_space<vmem>>, vector<1x8x32xf32>
    %85 = vector.shape_cast %84 : vector<1x8x32xf32> to vector<8x32xf32>
    %c1_108 = arith.constant 1 : index
    %c0_109 = arith.constant 0 : index
    %c0_110 = arith.constant 0 : index
    %86 = vector.load %arg5[%c1_108, %c0_109, %c0_110] : memref<2x8x32xf32, #tpu.memory_space<vmem>>, vector<1x8x32xf32>
    %87 = vector.shape_cast %86 : vector<1x8x32xf32> to vector<8x32xf32>
    %c1_111 = arith.constant 1 : index
    %c0_112 = arith.constant 0 : index
    %c0_113 = arith.constant 0 : index
    %88 = vector.load %arg6[%c1_111, %c0_112, %c0_113] : memref<2x8x32xf32, #tpu.memory_space<vmem>>, vector<1x8x32xf32>
    %89 = vector.shape_cast %88 : vector<1x8x32xf32> to vector<8x32xf32>
    %c0_i32 = arith.constant 0 : i32
    %c8_i32 = arith.constant 8 : i32
    %90 = arith.muli %c0_i32, %c8_i32 : i32
    %91 = tpu.assume_multiple %90, 8 : i32
    %c0_114 = arith.constant 0 : index
    %c0_115 = arith.constant 0 : index
    %92 = arith.index_cast %91 : i32 to index
    %c0_116 = arith.constant 0 : index
    %93 = vector.load %arg12[%c0_114, %c0_115, %92, %c0_116] : memref<2x4x64x32xf32, #tpu.memory_space<vmem>>, vector<1x1x8x32xf32>
    %94 = vector.shape_cast %93 : vector<1x1x8x32xf32> to vector<8x32xf32>
    %c0_117 = arith.constant 0 : index
    %c1_118 = arith.constant 1 : index
    %95 = arith.index_cast %91 : i32 to index
    %c0_119 = arith.constant 0 : index
    %96 = vector.load %arg12[%c0_117, %c1_118, %95, %c0_119] : memref<2x4x64x32xf32, #tpu.memory_space<vmem>>, vector<1x1x8x32xf32>
    %97 = vector.shape_cast %96 : vector<1x1x8x32xf32> to vector<8x32xf32>
    %c0_120 = arith.constant 0 : index
    %c2_121 = arith.constant 2 : index
    %98 = arith.index_cast %91 : i32 to index
    %c0_122 = arith.constant 0 : index
    %99 = vector.load %arg12[%c0_120, %c2_121, %98, %c0_122] : memref<2x4x64x32xf32, #tpu.memory_space<vmem>>, vector<1x1x8x32xf32>
    %100 = vector.shape_cast %99 : vector<1x1x8x32xf32> to vector<8x32xf32>
    %c0_123 = arith.constant 0 : index
    %c3_124 = arith.constant 3 : index
    %101 = arith.index_cast %91 : i32 to index
    %c0_125 = arith.constant 0 : index
    %102 = vector.load %arg12[%c0_123, %c3_124, %101, %c0_125] : memref<2x4x64x32xf32, #tpu.memory_space<vmem>>, vector<1x1x8x32xf32>
    %103 = vector.shape_cast %102 : vector<1x1x8x32xf32> to vector<8x32xf32>
    %c0_126 = arith.constant 0 : index
    %c0_127 = arith.constant 0 : index
    %c0_128 = arith.constant 0 : index
    %c0_129 = arith.constant 0 : index
    %104 = vector.load %arg3[%c0_126, %c0_127, %c0_128, %c0_129] : memref<2x4x32x32xf32, #tpu.memory_space<vmem>>, vector<1x1x32x32xf32>
    %105 = vector.shape_cast %104 : vector<1x1x32x32xf32> to vector<32x32xf32>
    %cst_130 = arith.constant dense<0.000000e+00> : vector<8x32xf32>
    %106 = tpu.matmul %83, %105, %cst_130 {dimension_numbers = #tpu.dot_dimension_numbers<[1], [0], [0], [1], [0, 0, 1, 1], [], []>} : vector<8x32xf32>, vector<32x32xf32>, vector<8x32xf32> -> vector<8x32xf32>
    %107 = arith.addf %94, %106 : vector<8x32xf32>
    %108 = arith.negf %107 : vector<8x32xf32>
    %109 = math.exp %108 : vector<8x32xf32>
    %cst_131 = arith.constant 1.000000e+00 : f32
    %110 = vector.broadcast %cst_131 : f32 to vector<8x32xf32>
    %111 = arith.addf %110, %109 : vector<8x32xf32>
    %112 = arith.divf %110, %111 : vector<8x32xf32>
    %c0_132 = arith.constant 0 : index
    %c1_133 = arith.constant 1 : index
    %c0_134 = arith.constant 0 : index
    %c0_135 = arith.constant 0 : index
    %113 = vector.load %arg3[%c0_132, %c1_133, %c0_134, %c0_135] : memref<2x4x32x32xf32, #tpu.memory_space<vmem>>, vector<1x1x32x32xf32>
    %114 = vector.shape_cast %113 : vector<1x1x32x32xf32> to vector<32x32xf32>
    %cst_136 = arith.constant dense<0.000000e+00> : vector<8x32xf32>
    %115 = tpu.matmul %83, %114, %cst_136 {dimension_numbers = #tpu.dot_dimension_numbers<[1], [0], [0], [1], [0, 0, 1, 1], [], []>} : vector<8x32xf32>, vector<32x32xf32>, vector<8x32xf32> -> vector<8x32xf32>
    %116 = arith.addf %97, %115 : vector<8x32xf32>
    %117 = arith.negf %116 : vector<8x32xf32>
    %118 = math.exp %117 : vector<8x32xf32>
    %cst_137 = arith.constant 1.000000e+00 : f32
    %119 = vector.broadcast %cst_137 : f32 to vector<8x32xf32>
    %120 = arith.addf %119, %118 : vector<8x32xf32>
    %121 = arith.divf %119, %120 : vector<8x32xf32>
    %c0_138 = arith.constant 0 : index
    %c2_139 = arith.constant 2 : index
    %c0_140 = arith.constant 0 : index
    %c0_141 = arith.constant 0 : index
    %122 = vector.load %arg3[%c0_138, %c2_139, %c0_140, %c0_141] : memref<2x4x32x32xf32, #tpu.memory_space<vmem>>, vector<1x1x32x32xf32>
    %123 = vector.shape_cast %122 : vector<1x1x32x32xf32> to vector<32x32xf32>
    %cst_142 = arith.constant dense<0.000000e+00> : vector<8x32xf32>
    %124 = tpu.matmul %83, %123, %cst_142 {dimension_numbers = #tpu.dot_dimension_numbers<[1], [0], [0], [1], [0, 0, 1, 1], [], []>} : vector<8x32xf32>, vector<32x32xf32>, vector<8x32xf32> -> vector<8x32xf32>
    %125 = arith.addf %100, %124 : vector<8x32xf32>
    %126 = math.tanh %125 : vector<8x32xf32>
    %c0_143 = arith.constant 0 : index
    %c3_144 = arith.constant 3 : index
    %c0_145 = arith.constant 0 : index
    %c0_146 = arith.constant 0 : index
    %127 = vector.load %arg3[%c0_143, %c3_144, %c0_145, %c0_146] : memref<2x4x32x32xf32, #tpu.memory_space<vmem>>, vector<1x1x32x32xf32>
    %128 = vector.shape_cast %127 : vector<1x1x32x32xf32> to vector<32x32xf32>
    %cst_147 = arith.constant dense<0.000000e+00> : vector<8x32xf32>
    %129 = tpu.matmul %83, %128, %cst_147 {dimension_numbers = #tpu.dot_dimension_numbers<[1], [0], [0], [1], [0, 0, 1, 1], [], []>} : vector<8x32xf32>, vector<32x32xf32>, vector<8x32xf32> -> vector<8x32xf32>
    %130 = arith.addf %103, %129 : vector<8x32xf32>
    %131 = arith.negf %130 : vector<8x32xf32>
    %132 = math.exp %131 : vector<8x32xf32>
    %cst_148 = arith.constant 1.000000e+00 : f32
    %133 = vector.broadcast %cst_148 : f32 to vector<8x32xf32>
    %134 = arith.addf %133, %132 : vector<8x32xf32>
    %135 = arith.divf %133, %134 : vector<8x32xf32>
    %136 = arith.mulf %121, %85 : vector<8x32xf32>
    %137 = arith.mulf %112, %126 : vector<8x32xf32>
    %138 = arith.addf %136, %137 : vector<8x32xf32>
    %139 = math.tanh %138 : vector<8x32xf32>
    %140 = arith.mulf %135, %139 : vector<8x32xf32>
    %c7_i32 = arith.constant 7 : i32
    %141 = arith.subi %c7_i32, %c0_i32 : i32
    %c8_i32_149 = arith.constant 8 : i32
    %142 = arith.muli %141, %c8_i32_149 : i32
    %143 = tpu.assume_multiple %142, 8 : i32
    %c1_150 = arith.constant 1 : index
    %c0_151 = arith.constant 0 : index
    %144 = arith.index_cast %143 : i32 to index
    %c0_152 = arith.constant 0 : index
    %145 = vector.load %arg12[%c1_150, %c0_151, %144, %c0_152] : memref<2x4x64x32xf32, #tpu.memory_space<vmem>>, vector<1x1x8x32xf32>
    %146 = vector.shape_cast %145 : vector<1x1x8x32xf32> to vector<8x32xf32>
    %c1_153 = arith.constant 1 : index
    %c1_154 = arith.constant 1 : index
    %147 = arith.index_cast %143 : i32 to index
    %c0_155 = arith.constant 0 : index
    %148 = vector.load %arg12[%c1_153, %c1_154, %147, %c0_155] : memref<2x4x64x32xf32, #tpu.memory_space<vmem>>, vector<1x1x8x32xf32>
    %149 = vector.shape_cast %148 : vector<1x1x8x32xf32> to vector<8x32xf32>
    %c1_156 = arith.constant 1 : index
    %c2_157 = arith.constant 2 : index
    %150 = arith.index_cast %143 : i32 to index
    %c0_158 = arith.constant 0 : index
    %151 = vector.load %arg12[%c1_156, %c2_157, %150, %c0_158] : memref<2x4x64x32xf32, #tpu.memory_space<vmem>>, vector<1x1x8x32xf32>
    %152 = vector.shape_cast %151 : vector<1x1x8x32xf32> to vector<8x32xf32>
    %c1_159 = arith.constant 1 : index
    %c3_160 = arith.constant 3 : index
    %153 = arith.index_cast %143 : i32 to index
    %c0_161 = arith.constant 0 : index
    %154 = vector.load %arg12[%c1_159, %c3_160, %153, %c0_161] : memref<2x4x64x32xf32, #tpu.memory_space<vmem>>, vector<1x1x8x32xf32>
    %155 = vector.shape_cast %154 : vector<1x1x8x32xf32> to vector<8x32xf32>
    %c1_162 = arith.constant 1 : index
    %c0_163 = arith.constant 0 : index
    %c0_164 = arith.constant 0 : index
    %c0_165 = arith.constant 0 : index
    %156 = vector.load %arg3[%c1_162, %c0_163, %c0_164, %c0_165] : memref<2x4x32x32xf32, #tpu.memory_space<vmem>>, vector<1x1x32x32xf32>
    %157 = vector.shape_cast %156 : vector<1x1x32x32xf32> to vector<32x32xf32>
    %cst_166 = arith.constant dense<0.000000e+00> : vector<8x32xf32>
    %158 = tpu.matmul %87, %157, %cst_166 {dimension_numbers = #tpu.dot_dimension_numbers<[1], [0], [0], [1], [0, 0, 1, 1], [], []>} : vector<8x32xf32>, vector<32x32xf32>, vector<8x32xf32> -> vector<8x32xf32>
    %159 = arith.addf %146, %158 : vector<8x32xf32>
    %160 = arith.negf %159 : vector<8x32xf32>
    %161 = math.exp %160 : vector<8x32xf32>
    %cst_167 = arith.constant 1.000000e+00 : f32
    %162 = vector.broadcast %cst_167 : f32 to vector<8x32xf32>
    %163 = arith.addf %162, %161 : vector<8x32xf32>
    %164 = arith.divf %162, %163 : vector<8x32xf32>
    %c1_168 = arith.constant 1 : index
    %c1_169 = arith.constant 1 : index
    %c0_170 = arith.constant 0 : index
    %c0_171 = arith.constant 0 : index
    %165 = vector.load %arg3[%c1_168, %c1_169, %c0_170, %c0_171] : memref<2x4x32x32xf32, #tpu.memory_space<vmem>>, vector<1x1x32x32xf32>
    %166 = vector.shape_cast %165 : vector<1x1x32x32xf32> to vector<32x32xf32>
    %cst_172 = arith.constant dense<0.000000e+00> : vector<8x32xf32>
    %167 = tpu.matmul %87, %166, %cst_172 {dimension_numbers = #tpu.dot_dimension_numbers<[1], [0], [0], [1], [0, 0, 1, 1], [], []>} : vector<8x32xf32>, vector<32x32xf32>, vector<8x32xf32> -> vector<8x32xf32>
    %168 = arith.addf %149, %167 : vector<8x32xf32>
    %169 = arith.negf %168 : vector<8x32xf32>
    %170 = math.exp %169 : vector<8x32xf32>
    %cst_173 = arith.constant 1.000000e+00 : f32
    %171 = vector.broadcast %cst_173 : f32 to vector<8x32xf32>
    %172 = arith.addf %171, %170 : vector<8x32xf32>
    %173 = arith.divf %171, %172 : vector<8x32xf32>
    %c1_174 = arith.constant 1 : index
    %c2_175 = arith.constant 2 : index
    %c0_176 = arith.constant 0 : index
    %c0_177 = arith.constant 0 : index
    %174 = vector.load %arg3[%c1_174, %c2_175, %c0_176, %c0_177] : memref<2x4x32x32xf32, #tpu.memory_space<vmem>>, vector<1x1x32x32xf32>
    %175 = vector.shape_cast %174 : vector<1x1x32x32xf32> to vector<32x32xf32>
    %cst_178 = arith.constant dense<0.000000e+00> : vector<8x32xf32>
    %176 = tpu.matmul %87, %175, %cst_178 {dimension_numbers = #tpu.dot_dimension_numbers<[1], [0], [0], [1], [0, 0, 1, 1], [], []>} : vector<8x32xf32>, vector<32x32xf32>, vector<8x32xf32> -> vector<8x32xf32>
    %177 = arith.addf %152, %176 : vector<8x32xf32>
    %178 = math.tanh %177 : vector<8x32xf32>
    %c1_179 = arith.constant 1 : index
    %c3_180 = arith.constant 3 : index
    %c0_181 = arith.constant 0 : index
    %c0_182 = arith.constant 0 : index
    %179 = vector.load %arg3[%c1_179, %c3_180, %c0_181, %c0_182] : memref<2x4x32x32xf32, #tpu.memory_space<vmem>>, vector<1x1x32x32xf32>
    %180 = vector.shape_cast %179 : vector<1x1x32x32xf32> to vector<32x32xf32>
    %cst_183 = arith.constant dense<0.000000e+00> : vector<8x32xf32>
    %181 = tpu.matmul %87, %180, %cst_183 {dimension_numbers = #tpu.dot_dimension_numbers<[1], [0], [0], [1], [0, 0, 1, 1], [], []>} : vector<8x32xf32>, vector<32x32xf32>, vector<8x32xf32> -> vector<8x32xf32>
    %182 = arith.addf %155, %181 : vector<8x32xf32>
    %183 = arith.negf %182 : vector<8x32xf32>
    %184 = math.exp %183 : vector<8x32xf32>
    %cst_184 = arith.constant 1.000000e+00 : f32
    %185 = vector.broadcast %cst_184 : f32 to vector<8x32xf32>
    %186 = arith.addf %185, %184 : vector<8x32xf32>
    %187 = arith.divf %185, %186 : vector<8x32xf32>
    %188 = arith.mulf %173, %89 : vector<8x32xf32>
    %189 = arith.mulf %164, %178 : vector<8x32xf32>
    %190 = arith.addf %188, %189 : vector<8x32xf32>
    %191 = math.tanh %190 : vector<8x32xf32>
    %192 = arith.mulf %187, %191 : vector<8x32xf32>
    %c1_i32 = arith.constant 1 : i32
    %c8_i32_185 = arith.constant 8 : i32
    %193 = arith.muli %c1_i32, %c8_i32_185 : i32
    %194 = tpu.assume_multiple %193, 8 : i32
    %c0_186 = arith.constant 0 : index
    %c0_187 = arith.constant 0 : index
    %195 = arith.index_cast %194 : i32 to index
    %c0_188 = arith.constant 0 : index
    %196 = vector.load %arg12[%c0_186, %c0_187, %195, %c0_188] : memref<2x4x64x32xf32, #tpu.memory_space<vmem>>, vector<1x1x8x32xf32>
    %197 = vector.shape_cast %196 : vector<1x1x8x32xf32> to vector<8x32xf32>
    %c0_189 = arith.constant 0 : index
    %c1_190 = arith.constant 1 : index
    %198 = arith.index_cast %194 : i32 to index
    %c0_191 = arith.constant 0 : index
    %199 = vector.load %arg12[%c0_189, %c1_190, %198, %c0_191] : memref<2x4x64x32xf32, #tpu.memory_space<vmem>>, vector<1x1x8x32xf32>
    %200 = vector.shape_cast %199 : vector<1x1x8x32xf32> to vector<8x32xf32>
    %c0_192 = arith.constant 0 : index
    %c2_193 = arith.constant 2 : index
    %201 = arith.index_cast %194 : i32 to index
    %c0_194 = arith.constant 0 : index
    %202 = vector.load %arg12[%c0_192, %c2_193, %201, %c0_194] : memref<2x4x64x32xf32, #tpu.memory_space<vmem>>, vector<1x1x8x32xf32>
    %203 = vector.shape_cast %202 : vector<1x1x8x32xf32> to vector<8x32xf32>
    %c0_195 = arith.constant 0 : index
    %c3_196 = arith.constant 3 : index
    %204 = arith.index_cast %194 : i32 to index
    %c0_197 = arith.constant 0 : index
    %205 = vector.load %arg12[%c0_195, %c3_196, %204, %c0_197] : memref<2x4x64x32xf32, #tpu.memory_space<vmem>>, vector<1x1x8x32xf32>
    %206 = vector.shape_cast %205 : vector<1x1x8x32xf32> to vector<8x32xf32>
    %c0_198 = arith.constant 0 : index
    %c0_199 = arith.constant 0 : index
    %c0_200 = arith.constant 0 : index
    %c0_201 = arith.constant 0 : index
    %207 = vector.load %arg3[%c0_198, %c0_199, %c0_200, %c0_201] : memref<2x4x32x32xf32, #tpu.memory_space<vmem>>, vector<1x1x32x32xf32>
    %208 = vector.shape_cast %207 : vector<1x1x32x32xf32> to vector<32x32xf32>
    %cst_202 = arith.constant dense<0.000000e+00> : vector<8x32xf32>
    %209 = tpu.matmul %140, %208, %cst_202 {dimension_numbers = #tpu.dot_dimension_numbers<[1], [0], [0], [1], [0, 0, 1, 1], [], []>} : vector<8x32xf32>, vector<32x32xf32>, vector<8x32xf32> -> vector<8x32xf32>
    %210 = arith.addf %197, %209 : vector<8x32xf32>
    %211 = arith.negf %210 : vector<8x32xf32>
    %212 = math.exp %211 : vector<8x32xf32>
    %cst_203 = arith.constant 1.000000e+00 : f32
    %213 = vector.broadcast %cst_203 : f32 to vector<8x32xf32>
    %214 = arith.addf %213, %212 : vector<8x32xf32>
    %215 = arith.divf %213, %214 : vector<8x32xf32>
    %c0_204 = arith.constant 0 : index
    %c1_205 = arith.constant 1 : index
    %c0_206 = arith.constant 0 : index
    %c0_207 = arith.constant 0 : index
    %216 = vector.load %arg3[%c0_204, %c1_205, %c0_206, %c0_207] : memref<2x4x32x32xf32, #tpu.memory_space<vmem>>, vector<1x1x32x32xf32>
    %217 = vector.shape_cast %216 : vector<1x1x32x32xf32> to vector<32x32xf32>
    %cst_208 = arith.constant dense<0.000000e+00> : vector<8x32xf32>
    %218 = tpu.matmul %140, %217, %cst_208 {dimension_numbers = #tpu.dot_dimension_numbers<[1], [0], [0], [1], [0, 0, 1, 1], [], []>} : vector<8x32xf32>, vector<32x32xf32>, vector<8x32xf32> -> vector<8x32xf32>
    %219 = arith.addf %200, %218 : vector<8x32xf32>
    %220 = arith.negf %219 : vector<8x32xf32>
    %221 = math.exp %220 : vector<8x32xf32>
    %cst_209 = arith.constant 1.000000e+00 : f32
    %222 = vector.broadcast %cst_209 : f32 to vector<8x32xf32>
    %223 = arith.addf %222, %221 : vector<8x32xf32>
    %224 = arith.divf %222, %223 : vector<8x32xf32>
    %c0_210 = arith.constant 0 : index
    %c2_211 = arith.constant 2 : index
    %c0_212 = arith.constant 0 : index
    %c0_213 = arith.constant 0 : index
    %225 = vector.load %arg3[%c0_210, %c2_211, %c0_212, %c0_213] : memref<2x4x32x32xf32, #tpu.memory_space<vmem>>, vector<1x1x32x32xf32>
    %226 = vector.shape_cast %225 : vector<1x1x32x32xf32> to vector<32x32xf32>
    %cst_214 = arith.constant dense<0.000000e+00> : vector<8x32xf32>
    %227 = tpu.matmul %140, %226, %cst_214 {dimension_numbers = #tpu.dot_dimension_numbers<[1], [0], [0], [1], [0, 0, 1, 1], [], []>} : vector<8x32xf32>, vector<32x32xf32>, vector<8x32xf32> -> vector<8x32xf32>
    %228 = arith.addf %203, %227 : vector<8x32xf32>
    %229 = math.tanh %228 : vector<8x32xf32>
    %c0_215 = arith.constant 0 : index
    %c3_216 = arith.constant 3 : index
    %c0_217 = arith.constant 0 : index
    %c0_218 = arith.constant 0 : index
    %230 = vector.load %arg3[%c0_215, %c3_216, %c0_217, %c0_218] : memref<2x4x32x32xf32, #tpu.memory_space<vmem>>, vector<1x1x32x32xf32>
    %231 = vector.shape_cast %230 : vector<1x1x32x32xf32> to vector<32x32xf32>
    %cst_219 = arith.constant dense<0.000000e+00> : vector<8x32xf32>
    %232 = tpu.matmul %140, %231, %cst_219 {dimension_numbers = #tpu.dot_dimension_numbers<[1], [0], [0], [1], [0, 0, 1, 1], [], []>} : vector<8x32xf32>, vector<32x32xf32>, vector<8x32xf32> -> vector<8x32xf32>
    %233 = arith.addf %206, %232 : vector<8x32xf32>
    %234 = arith.negf %233 : vector<8x32xf32>
    %235 = math.exp %234 : vector<8x32xf32>
    %cst_220 = arith.constant 1.000000e+00 : f32
    %236 = vector.broadcast %cst_220 : f32 to vector<8x32xf32>
    %237 = arith.addf %236, %235 : vector<8x32xf32>
    %238 = arith.divf %236, %237 : vector<8x32xf32>
    %239 = arith.mulf %224, %138 : vector<8x32xf32>
    %240 = arith.mulf %215, %229 : vector<8x32xf32>
    %241 = arith.addf %239, %240 : vector<8x32xf32>
    %242 = math.tanh %241 : vector<8x32xf32>
    %243 = arith.mulf %238, %242 : vector<8x32xf32>
    %c7_i32_221 = arith.constant 7 : i32
    %244 = arith.subi %c7_i32_221, %c1_i32 : i32
    %c8_i32_222 = arith.constant 8 : i32
    %245 = arith.muli %244, %c8_i32_222 : i32
    %246 = tpu.assume_multiple %245, 8 : i32
    %c1_223 = arith.constant 1 : index
    %c0_224 = arith.constant 0 : index
    %247 = arith.index_cast %246 : i32 to index
    %c0_225 = arith.constant 0 : index
    %248 = vector.load %arg12[%c1_223, %c0_224, %247, %c0_225] : memref<2x4x64x32xf32, #tpu.memory_space<vmem>>, vector<1x1x8x32xf32>
    %249 = vector.shape_cast %248 : vector<1x1x8x32xf32> to vector<8x32xf32>
    %c1_226 = arith.constant 1 : index
    %c1_227 = arith.constant 1 : index
    %250 = arith.index_cast %246 : i32 to index
    %c0_228 = arith.constant 0 : index
    %251 = vector.load %arg12[%c1_226, %c1_227, %250, %c0_228] : memref<2x4x64x32xf32, #tpu.memory_space<vmem>>, vector<1x1x8x32xf32>
    %252 = vector.shape_cast %251 : vector<1x1x8x32xf32> to vector<8x32xf32>
    %c1_229 = arith.constant 1 : index
    %c2_230 = arith.constant 2 : index
    %253 = arith.index_cast %246 : i32 to index
    %c0_231 = arith.constant 0 : index
    %254 = vector.load %arg12[%c1_229, %c2_230, %253, %c0_231] : memref<2x4x64x32xf32, #tpu.memory_space<vmem>>, vector<1x1x8x32xf32>
    %255 = vector.shape_cast %254 : vector<1x1x8x32xf32> to vector<8x32xf32>
    %c1_232 = arith.constant 1 : index
    %c3_233 = arith.constant 3 : index
    %256 = arith.index_cast %246 : i32 to index
    %c0_234 = arith.constant 0 : index
    %257 = vector.load %arg12[%c1_232, %c3_233, %256, %c0_234] : memref<2x4x64x32xf32, #tpu.memory_space<vmem>>, vector<1x1x8x32xf32>
    %258 = vector.shape_cast %257 : vector<1x1x8x32xf32> to vector<8x32xf32>
    %c1_235 = arith.constant 1 : index
    %c0_236 = arith.constant 0 : index
    %c0_237 = arith.constant 0 : index
    %c0_238 = arith.constant 0 : index
    %259 = vector.load %arg3[%c1_235, %c0_236, %c0_237, %c0_238] : memref<2x4x32x32xf32, #tpu.memory_space<vmem>>, vector<1x1x32x32xf32>
    %260 = vector.shape_cast %259 : vector<1x1x32x32xf32> to vector<32x32xf32>
    %cst_239 = arith.constant dense<0.000000e+00> : vector<8x32xf32>
    %261 = tpu.matmul %192, %260, %cst_239 {dimension_numbers = #tpu.dot_dimension_numbers<[1], [0], [0], [1], [0, 0, 1, 1], [], []>} : vector<8x32xf32>, vector<32x32xf32>, vector<8x32xf32> -> vector<8x32xf32>
    %262 = arith.addf %249, %261 : vector<8x32xf32>
    %263 = arith.negf %262 : vector<8x32xf32>
    %264 = math.exp %263 : vector<8x32xf32>
    %cst_240 = arith.constant 1.000000e+00 : f32
    %265 = vector.broadcast %cst_240 : f32 to vector<8x32xf32>
    %266 = arith.addf %265, %264 : vector<8x32xf32>
    %267 = arith.divf %265, %266 : vector<8x32xf32>
    %c1_241 = arith.constant 1 : index
    %c1_242 = arith.constant 1 : index
    %c0_243 = arith.constant 0 : index
    %c0_244 = arith.constant 0 : index
    %268 = vector.load %arg3[%c1_241, %c1_242, %c0_243, %c0_244] : memref<2x4x32x32xf32, #tpu.memory_space<vmem>>, vector<1x1x32x32xf32>
    %269 = vector.shape_cast %268 : vector<1x1x32x32xf32> to vector<32x32xf32>
    %cst_245 = arith.constant dense<0.000000e+00> : vector<8x32xf32>
    %270 = tpu.matmul %192, %269, %cst_245 {dimension_numbers = #tpu.dot_dimension_numbers<[1], [0], [0], [1], [0, 0, 1, 1], [], []>} : vector<8x32xf32>, vector<32x32xf32>, vector<8x32xf32> -> vector<8x32xf32>
    %271 = arith.addf %252, %270 : vector<8x32xf32>
    %272 = arith.negf %271 : vector<8x32xf32>
    %273 = math.exp %272 : vector<8x32xf32>
    %cst_246 = arith.constant 1.000000e+00 : f32
    %274 = vector.broadcast %cst_246 : f32 to vector<8x32xf32>
    %275 = arith.addf %274, %273 : vector<8x32xf32>
    %276 = arith.divf %274, %275 : vector<8x32xf32>
    %c1_247 = arith.constant 1 : index
    %c2_248 = arith.constant 2 : index
    %c0_249 = arith.constant 0 : index
    %c0_250 = arith.constant 0 : index
    %277 = vector.load %arg3[%c1_247, %c2_248, %c0_249, %c0_250] : memref<2x4x32x32xf32, #tpu.memory_space<vmem>>, vector<1x1x32x32xf32>
    %278 = vector.shape_cast %277 : vector<1x1x32x32xf32> to vector<32x32xf32>
    %cst_251 = arith.constant dense<0.000000e+00> : vector<8x32xf32>
    %279 = tpu.matmul %192, %278, %cst_251 {dimension_numbers = #tpu.dot_dimension_numbers<[1], [0], [0], [1], [0, 0, 1, 1], [], []>} : vector<8x32xf32>, vector<32x32xf32>, vector<8x32xf32> -> vector<8x32xf32>
    %280 = arith.addf %255, %279 : vector<8x32xf32>
    %281 = math.tanh %280 : vector<8x32xf32>
    %c1_252 = arith.constant 1 : index
    %c3_253 = arith.constant 3 : index
    %c0_254 = arith.constant 0 : index
    %c0_255 = arith.constant 0 : index
    %282 = vector.load %arg3[%c1_252, %c3_253, %c0_254, %c0_255] : memref<2x4x32x32xf32, #tpu.memory_space<vmem>>, vector<1x1x32x32xf32>
    %283 = vector.shape_cast %282 : vector<1x1x32x32xf32> to vector<32x32xf32>
    %cst_256 = arith.constant dense<0.000000e+00> : vector<8x32xf32>
    %284 = tpu.matmul %192, %283, %cst_256 {dimension_numbers = #tpu.dot_dimension_numbers<[1], [0], [0], [1], [0, 0, 1, 1], [], []>} : vector<8x32xf32>, vector<32x32xf32>, vector<8x32xf32> -> vector<8x32xf32>
    %285 = arith.addf %258, %284 : vector<8x32xf32>
    %286 = arith.negf %285 : vector<8x32xf32>
    %287 = math.exp %286 : vector<8x32xf32>
    %cst_257 = arith.constant 1.000000e+00 : f32
    %288 = vector.broadcast %cst_257 : f32 to vector<8x32xf32>
    %289 = arith.addf %288, %287 : vector<8x32xf32>
    %290 = arith.divf %288, %289 : vector<8x32xf32>
    %291 = arith.mulf %276, %190 : vector<8x32xf32>
    %292 = arith.mulf %267, %281 : vector<8x32xf32>
    %293 = arith.addf %291, %292 : vector<8x32xf32>
    %294 = math.tanh %293 : vector<8x32xf32>
    %295 = arith.mulf %290, %294 : vector<8x32xf32>
    %c2_i32 = arith.constant 2 : i32
    %c8_i32_258 = arith.constant 8 : i32
    %296 = arith.muli %c2_i32, %c8_i32_258 : i32
    %297 = tpu.assume_multiple %296, 8 : i32
    %c0_259 = arith.constant 0 : index
    %c0_260 = arith.constant 0 : index
    %298 = arith.index_cast %297 : i32 to index
    %c0_261 = arith.constant 0 : index
    %299 = vector.load %arg12[%c0_259, %c0_260, %298, %c0_261] : memref<2x4x64x32xf32, #tpu.memory_space<vmem>>, vector<1x1x8x32xf32>
    %300 = vector.shape_cast %299 : vector<1x1x8x32xf32> to vector<8x32xf32>
    %c0_262 = arith.constant 0 : index
    %c1_263 = arith.constant 1 : index
    %301 = arith.index_cast %297 : i32 to index
    %c0_264 = arith.constant 0 : index
    %302 = vector.load %arg12[%c0_262, %c1_263, %301, %c0_264] : memref<2x4x64x32xf32, #tpu.memory_space<vmem>>, vector<1x1x8x32xf32>
    %303 = vector.shape_cast %302 : vector<1x1x8x32xf32> to vector<8x32xf32>
    %c0_265 = arith.constant 0 : index
    %c2_266 = arith.constant 2 : index
    %304 = arith.index_cast %297 : i32 to index
    %c0_267 = arith.constant 0 : index
    %305 = vector.load %arg12[%c0_265, %c2_266, %304, %c0_267] : memref<2x4x64x32xf32, #tpu.memory_space<vmem>>, vector<1x1x8x32xf32>
    %306 = vector.shape_cast %305 : vector<1x1x8x32xf32> to vector<8x32xf32>
    %c0_268 = arith.constant 0 : index
    %c3_269 = arith.constant 3 : index
    %307 = arith.index_cast %297 : i32 to index
    %c0_270 = arith.constant 0 : index
    %308 = vector.load %arg12[%c0_268, %c3_269, %307, %c0_270] : memref<2x4x64x32xf32, #tpu.memory_space<vmem>>, vector<1x1x8x32xf32>
    %309 = vector.shape_cast %308 : vector<1x1x8x32xf32> to vector<8x32xf32>
    %c0_271 = arith.constant 0 : index
    %c0_272 = arith.constant 0 : index
    %c0_273 = arith.constant 0 : index
    %c0_274 = arith.constant 0 : index
    %310 = vector.load %arg3[%c0_271, %c0_272, %c0_273, %c0_274] : memref<2x4x32x32xf32, #tpu.memory_space<vmem>>, vector<1x1x32x32xf32>
    %311 = vector.shape_cast %310 : vector<1x1x32x32xf32> to vector<32x32xf32>
    %cst_275 = arith.constant dense<0.000000e+00> : vector<8x32xf32>
    %312 = tpu.matmul %243, %311, %cst_275 {dimension_numbers = #tpu.dot_dimension_numbers<[1], [0], [0], [1], [0, 0, 1, 1], [], []>} : vector<8x32xf32>, vector<32x32xf32>, vector<8x32xf32> -> vector<8x32xf32>
    %313 = arith.addf %300, %312 : vector<8x32xf32>
    %314 = arith.negf %313 : vector<8x32xf32>
    %315 = math.exp %314 : vector<8x32xf32>
    %cst_276 = arith.constant 1.000000e+00 : f32
    %316 = vector.broadcast %cst_276 : f32 to vector<8x32xf32>
    %317 = arith.addf %316, %315 : vector<8x32xf32>
    %318 = arith.divf %316, %317 : vector<8x32xf32>
    %c0_277 = arith.constant 0 : index
    %c1_278 = arith.constant 1 : index
    %c0_279 = arith.constant 0 : index
    %c0_280 = arith.constant 0 : index
    %319 = vector.load %arg3[%c0_277, %c1_278, %c0_279, %c0_280] : memref<2x4x32x32xf32, #tpu.memory_space<vmem>>, vector<1x1x32x32xf32>
    %320 = vector.shape_cast %319 : vector<1x1x32x32xf32> to vector<32x32xf32>
    %cst_281 = arith.constant dense<0.000000e+00> : vector<8x32xf32>
    %321 = tpu.matmul %243, %320, %cst_281 {dimension_numbers = #tpu.dot_dimension_numbers<[1], [0], [0], [1], [0, 0, 1, 1], [], []>} : vector<8x32xf32>, vector<32x32xf32>, vector<8x32xf32> -> vector<8x32xf32>
    %322 = arith.addf %303, %321 : vector<8x32xf32>
    %323 = arith.negf %322 : vector<8x32xf32>
    %324 = math.exp %323 : vector<8x32xf32>
    %cst_282 = arith.constant 1.000000e+00 : f32
    %325 = vector.broadcast %cst_282 : f32 to vector<8x32xf32>
    %326 = arith.addf %325, %324 : vector<8x32xf32>
    %327 = arith.divf %325, %326 : vector<8x32xf32>
    %c0_283 = arith.constant 0 : index
    %c2_284 = arith.constant 2 : index
    %c0_285 = arith.constant 0 : index
    %c0_286 = arith.constant 0 : index
    %328 = vector.load %arg3[%c0_283, %c2_284, %c0_285, %c0_286] : memref<2x4x32x32xf32, #tpu.memory_space<vmem>>, vector<1x1x32x32xf32>
    %329 = vector.shape_cast %328 : vector<1x1x32x32xf32> to vector<32x32xf32>
    %cst_287 = arith.constant dense<0.000000e+00> : vector<8x32xf32>
    %330 = tpu.matmul %243, %329, %cst_287 {dimension_numbers = #tpu.dot_dimension_numbers<[1], [0], [0], [1], [0, 0, 1, 1], [], []>} : vector<8x32xf32>, vector<32x32xf32>, vector<8x32xf32> -> vector<8x32xf32>
    %331 = arith.addf %306, %330 : vector<8x32xf32>
    %332 = math.tanh %331 : vector<8x32xf32>
    %c0_288 = arith.constant 0 : index
    %c3_289 = arith.constant 3 : index
    %c0_290 = arith.constant 0 : index
    %c0_291 = arith.constant 0 : index
    %333 = vector.load %arg3[%c0_288, %c3_289, %c0_290, %c0_291] : memref<2x4x32x32xf32, #tpu.memory_space<vmem>>, vector<1x1x32x32xf32>
    %334 = vector.shape_cast %333 : vector<1x1x32x32xf32> to vector<32x32xf32>
    %cst_292 = arith.constant dense<0.000000e+00> : vector<8x32xf32>
    %335 = tpu.matmul %243, %334, %cst_292 {dimension_numbers = #tpu.dot_dimension_numbers<[1], [0], [0], [1], [0, 0, 1, 1], [], []>} : vector<8x32xf32>, vector<32x32xf32>, vector<8x32xf32> -> vector<8x32xf32>
    %336 = arith.addf %309, %335 : vector<8x32xf32>
    %337 = arith.negf %336 : vector<8x32xf32>
    %338 = math.exp %337 : vector<8x32xf32>
    %cst_293 = arith.constant 1.000000e+00 : f32
    %339 = vector.broadcast %cst_293 : f32 to vector<8x32xf32>
    %340 = arith.addf %339, %338 : vector<8x32xf32>
    %341 = arith.divf %339, %340 : vector<8x32xf32>
    %342 = arith.mulf %327, %241 : vector<8x32xf32>
    %343 = arith.mulf %318, %332 : vector<8x32xf32>
    %344 = arith.addf %342, %343 : vector<8x32xf32>
    %345 = math.tanh %344 : vector<8x32xf32>
    %346 = arith.mulf %341, %345 : vector<8x32xf32>
    %c7_i32_294 = arith.constant 7 : i32
    %347 = arith.subi %c7_i32_294, %c2_i32 : i32
    %c8_i32_295 = arith.constant 8 : i32
    %348 = arith.muli %347, %c8_i32_295 : i32
    %349 = tpu.assume_multiple %348, 8 : i32
    %c1_296 = arith.constant 1 : index
    %c0_297 = arith.constant 0 : index
    %350 = arith.index_cast %349 : i32 to index
    %c0_298 = arith.constant 0 : index
    %351 = vector.load %arg12[%c1_296, %c0_297, %350, %c0_298] : memref<2x4x64x32xf32, #tpu.memory_space<vmem>>, vector<1x1x8x32xf32>
    %352 = vector.shape_cast %351 : vector<1x1x8x32xf32> to vector<8x32xf32>
    %c1_299 = arith.constant 1 : index
    %c1_300 = arith.constant 1 : index
    %353 = arith.index_cast %349 : i32 to index
    %c0_301 = arith.constant 0 : index
    %354 = vector.load %arg12[%c1_299, %c1_300, %353, %c0_301] : memref<2x4x64x32xf32, #tpu.memory_space<vmem>>, vector<1x1x8x32xf32>
    %355 = vector.shape_cast %354 : vector<1x1x8x32xf32> to vector<8x32xf32>
    %c1_302 = arith.constant 1 : index
    %c2_303 = arith.constant 2 : index
    %356 = arith.index_cast %349 : i32 to index
    %c0_304 = arith.constant 0 : index
    %357 = vector.load %arg12[%c1_302, %c2_303, %356, %c0_304] : memref<2x4x64x32xf32, #tpu.memory_space<vmem>>, vector<1x1x8x32xf32>
    %358 = vector.shape_cast %357 : vector<1x1x8x32xf32> to vector<8x32xf32>
    %c1_305 = arith.constant 1 : index
    %c3_306 = arith.constant 3 : index
    %359 = arith.index_cast %349 : i32 to index
    %c0_307 = arith.constant 0 : index
    %360 = vector.load %arg12[%c1_305, %c3_306, %359, %c0_307] : memref<2x4x64x32xf32, #tpu.memory_space<vmem>>, vector<1x1x8x32xf32>
    %361 = vector.shape_cast %360 : vector<1x1x8x32xf32> to vector<8x32xf32>
    %c1_308 = arith.constant 1 : index
    %c0_309 = arith.constant 0 : index
    %c0_310 = arith.constant 0 : index
    %c0_311 = arith.constant 0 : index
    %362 = vector.load %arg3[%c1_308, %c0_309, %c0_310, %c0_311] : memref<2x4x32x32xf32, #tpu.memory_space<vmem>>, vector<1x1x32x32xf32>
    %363 = vector.shape_cast %362 : vector<1x1x32x32xf32> to vector<32x32xf32>
    %cst_312 = arith.constant dense<0.000000e+00> : vector<8x32xf32>
    %364 = tpu.matmul %295, %363, %cst_312 {dimension_numbers = #tpu.dot_dimension_numbers<[1], [0], [0], [1], [0, 0, 1, 1], [], []>} : vector<8x32xf32>, vector<32x32xf32>, vector<8x32xf32> -> vector<8x32xf32>
    %365 = arith.addf %352, %364 : vector<8x32xf32>
    %366 = arith.negf %365 : vector<8x32xf32>
    %367 = math.exp %366 : vector<8x32xf32>
    %cst_313 = arith.constant 1.000000e+00 : f32
    %368 = vector.broadcast %cst_313 : f32 to vector<8x32xf32>
    %369 = arith.addf %368, %367 : vector<8x32xf32>
    %370 = arith.divf %368, %369 : vector<8x32xf32>
    %c1_314 = arith.constant 1 : index
    %c1_315 = arith.constant 1 : index
    %c0_316 = arith.constant 0 : index
    %c0_317 = arith.constant 0 : index
    %371 = vector.load %arg3[%c1_314, %c1_315, %c0_316, %c0_317] : memref<2x4x32x32xf32, #tpu.memory_space<vmem>>, vector<1x1x32x32xf32>
    %372 = vector.shape_cast %371 : vector<1x1x32x32xf32> to vector<32x32xf32>
    %cst_318 = arith.constant dense<0.000000e+00> : vector<8x32xf32>
    %373 = tpu.matmul %295, %372, %cst_318 {dimension_numbers = #tpu.dot_dimension_numbers<[1], [0], [0], [1], [0, 0, 1, 1], [], []>} : vector<8x32xf32>, vector<32x32xf32>, vector<8x32xf32> -> vector<8x32xf32>
    %374 = arith.addf %355, %373 : vector<8x32xf32>
    %375 = arith.negf %374 : vector<8x32xf32>
    %376 = math.exp %375 : vector<8x32xf32>
    %cst_319 = arith.constant 1.000000e+00 : f32
    %377 = vector.broadcast %cst_319 : f32 to vector<8x32xf32>
    %378 = arith.addf %377, %376 : vector<8x32xf32>
    %379 = arith.divf %377, %378 : vector<8x32xf32>
    %c1_320 = arith.constant 1 : index
    %c2_321 = arith.constant 2 : index
    %c0_322 = arith.constant 0 : index
    %c0_323 = arith.constant 0 : index
    %380 = vector.load %arg3[%c1_320, %c2_321, %c0_322, %c0_323] : memref<2x4x32x32xf32, #tpu.memory_space<vmem>>, vector<1x1x32x32xf32>
    %381 = vector.shape_cast %380 : vector<1x1x32x32xf32> to vector<32x32xf32>
    %cst_324 = arith.constant dense<0.000000e+00> : vector<8x32xf32>
    %382 = tpu.matmul %295, %381, %cst_324 {dimension_numbers = #tpu.dot_dimension_numbers<[1], [0], [0], [1], [0, 0, 1, 1], [], []>} : vector<8x32xf32>, vector<32x32xf32>, vector<8x32xf32> -> vector<8x32xf32>
    %383 = arith.addf %358, %382 : vector<8x32xf32>
    %384 = math.tanh %383 : vector<8x32xf32>
    %c1_325 = arith.constant 1 : index
    %c3_326 = arith.constant 3 : index
    %c0_327 = arith.constant 0 : index
    %c0_328 = arith.constant 0 : index
    %385 = vector.load %arg3[%c1_325, %c3_326, %c0_327, %c0_328] : memref<2x4x32x32xf32, #tpu.memory_space<vmem>>, vector<1x1x32x32xf32>
    %386 = vector.shape_cast %385 : vector<1x1x32x32xf32> to vector<32x32xf32>
    %cst_329 = arith.constant dense<0.000000e+00> : vector<8x32xf32>
    %387 = tpu.matmul %295, %386, %cst_329 {dimension_numbers = #tpu.dot_dimension_numbers<[1], [0], [0], [1], [0, 0, 1, 1], [], []>} : vector<8x32xf32>, vector<32x32xf32>, vector<8x32xf32> -> vector<8x32xf32>
    %388 = arith.addf %361, %387 : vector<8x32xf32>
    %389 = arith.negf %388 : vector<8x32xf32>
    %390 = math.exp %389 : vector<8x32xf32>
    %cst_330 = arith.constant 1.000000e+00 : f32
    %391 = vector.broadcast %cst_330 : f32 to vector<8x32xf32>
    %392 = arith.addf %391, %390 : vector<8x32xf32>
    %393 = arith.divf %391, %392 : vector<8x32xf32>
    %394 = arith.mulf %379, %293 : vector<8x32xf32>
    %395 = arith.mulf %370, %384 : vector<8x32xf32>
    %396 = arith.addf %394, %395 : vector<8x32xf32>
    %397 = math.tanh %396 : vector<8x32xf32>
    %398 = arith.mulf %393, %397 : vector<8x32xf32>
    %c3_i32 = arith.constant 3 : i32
    %c8_i32_331 = arith.constant 8 : i32
    %399 = arith.muli %c3_i32, %c8_i32_331 : i32
    %400 = tpu.assume_multiple %399, 8 : i32
    %c0_332 = arith.constant 0 : index
    %c0_333 = arith.constant 0 : index
    %401 = arith.index_cast %400 : i32 to index
    %c0_334 = arith.constant 0 : index
    %402 = vector.load %arg12[%c0_332, %c0_333, %401, %c0_334] : memref<2x4x64x32xf32, #tpu.memory_space<vmem>>, vector<1x1x8x32xf32>
    %403 = vector.shape_cast %402 : vector<1x1x8x32xf32> to vector<8x32xf32>
    %c0_335 = arith.constant 0 : index
    %c1_336 = arith.constant 1 : index
    %404 = arith.index_cast %400 : i32 to index
    %c0_337 = arith.constant 0 : index
    %405 = vector.load %arg12[%c0_335, %c1_336, %404, %c0_337] : memref<2x4x64x32xf32, #tpu.memory_space<vmem>>, vector<1x1x8x32xf32>
    %406 = vector.shape_cast %405 : vector<1x1x8x32xf32> to vector<8x32xf32>
    %c0_338 = arith.constant 0 : index
    %c2_339 = arith.constant 2 : index
    %407 = arith.index_cast %400 : i32 to index
    %c0_340 = arith.constant 0 : index
    %408 = vector.load %arg12[%c0_338, %c2_339, %407, %c0_340] : memref<2x4x64x32xf32, #tpu.memory_space<vmem>>, vector<1x1x8x32xf32>
    %409 = vector.shape_cast %408 : vector<1x1x8x32xf32> to vector<8x32xf32>
    %c0_341 = arith.constant 0 : index
    %c3_342 = arith.constant 3 : index
    %410 = arith.index_cast %400 : i32 to index
    %c0_343 = arith.constant 0 : index
    %411 = vector.load %arg12[%c0_341, %c3_342, %410, %c0_343] : memref<2x4x64x32xf32, #tpu.memory_space<vmem>>, vector<1x1x8x32xf32>
    %412 = vector.shape_cast %411 : vector<1x1x8x32xf32> to vector<8x32xf32>
    %c0_344 = arith.constant 0 : index
    %c0_345 = arith.constant 0 : index
    %c0_346 = arith.constant 0 : index
    %c0_347 = arith.constant 0 : index
    %413 = vector.load %arg3[%c0_344, %c0_345, %c0_346, %c0_347] : memref<2x4x32x32xf32, #tpu.memory_space<vmem>>, vector<1x1x32x32xf32>
    %414 = vector.shape_cast %413 : vector<1x1x32x32xf32> to vector<32x32xf32>
    %cst_348 = arith.constant dense<0.000000e+00> : vector<8x32xf32>
    %415 = tpu.matmul %346, %414, %cst_348 {dimension_numbers = #tpu.dot_dimension_numbers<[1], [0], [0], [1], [0, 0, 1, 1], [], []>} : vector<8x32xf32>, vector<32x32xf32>, vector<8x32xf32> -> vector<8x32xf32>
    %416 = arith.addf %403, %415 : vector<8x32xf32>
    %417 = arith.negf %416 : vector<8x32xf32>
    %418 = math.exp %417 : vector<8x32xf32>
    %cst_349 = arith.constant 1.000000e+00 : f32
    %419 = vector.broadcast %cst_349 : f32 to vector<8x32xf32>
    %420 = arith.addf %419, %418 : vector<8x32xf32>
    %421 = arith.divf %419, %420 : vector<8x32xf32>
    %c0_350 = arith.constant 0 : index
    %c1_351 = arith.constant 1 : index
    %c0_352 = arith.constant 0 : index
    %c0_353 = arith.constant 0 : index
    %422 = vector.load %arg3[%c0_350, %c1_351, %c0_352, %c0_353] : memref<2x4x32x32xf32, #tpu.memory_space<vmem>>, vector<1x1x32x32xf32>
    %423 = vector.shape_cast %422 : vector<1x1x32x32xf32> to vector<32x32xf32>
    %cst_354 = arith.constant dense<0.000000e+00> : vector<8x32xf32>
    %424 = tpu.matmul %346, %423, %cst_354 {dimension_numbers = #tpu.dot_dimension_numbers<[1], [0], [0], [1], [0, 0, 1, 1], [], []>} : vector<8x32xf32>, vector<32x32xf32>, vector<8x32xf32> -> vector<8x32xf32>
    %425 = arith.addf %406, %424 : vector<8x32xf32>
    %426 = arith.negf %425 : vector<8x32xf32>
    %427 = math.exp %426 : vector<8x32xf32>
    %cst_355 = arith.constant 1.000000e+00 : f32
    %428 = vector.broadcast %cst_355 : f32 to vector<8x32xf32>
    %429 = arith.addf %428, %427 : vector<8x32xf32>
    %430 = arith.divf %428, %429 : vector<8x32xf32>
    %c0_356 = arith.constant 0 : index
    %c2_357 = arith.constant 2 : index
    %c0_358 = arith.constant 0 : index
    %c0_359 = arith.constant 0 : index
    %431 = vector.load %arg3[%c0_356, %c2_357, %c0_358, %c0_359] : memref<2x4x32x32xf32, #tpu.memory_space<vmem>>, vector<1x1x32x32xf32>
    %432 = vector.shape_cast %431 : vector<1x1x32x32xf32> to vector<32x32xf32>
    %cst_360 = arith.constant dense<0.000000e+00> : vector<8x32xf32>
    %433 = tpu.matmul %346, %432, %cst_360 {dimension_numbers = #tpu.dot_dimension_numbers<[1], [0], [0], [1], [0, 0, 1, 1], [], []>} : vector<8x32xf32>, vector<32x32xf32>, vector<8x32xf32> -> vector<8x32xf32>
    %434 = arith.addf %409, %433 : vector<8x32xf32>
    %435 = math.tanh %434 : vector<8x32xf32>
    %c0_361 = arith.constant 0 : index
    %c3_362 = arith.constant 3 : index
    %c0_363 = arith.constant 0 : index
    %c0_364 = arith.constant 0 : index
    %436 = vector.load %arg3[%c0_361, %c3_362, %c0_363, %c0_364] : memref<2x4x32x32xf32, #tpu.memory_space<vmem>>, vector<1x1x32x32xf32>
    %437 = vector.shape_cast %436 : vector<1x1x32x32xf32> to vector<32x32xf32>
    %cst_365 = arith.constant dense<0.000000e+00> : vector<8x32xf32>
    %438 = tpu.matmul %346, %437, %cst_365 {dimension_numbers = #tpu.dot_dimension_numbers<[1], [0], [0], [1], [0, 0, 1, 1], [], []>} : vector<8x32xf32>, vector<32x32xf32>, vector<8x32xf32> -> vector<8x32xf32>
    %439 = arith.addf %412, %438 : vector<8x32xf32>
    %440 = arith.negf %439 : vector<8x32xf32>
    %441 = math.exp %440 : vector<8x32xf32>
    %cst_366 = arith.constant 1.000000e+00 : f32
    %442 = vector.broadcast %cst_366 : f32 to vector<8x32xf32>
    %443 = arith.addf %442, %441 : vector<8x32xf32>
    %444 = arith.divf %442, %443 : vector<8x32xf32>
    %445 = arith.mulf %430, %344 : vector<8x32xf32>
    %446 = arith.mulf %421, %435 : vector<8x32xf32>
    %447 = arith.addf %445, %446 : vector<8x32xf32>
    %448 = math.tanh %447 : vector<8x32xf32>
    %449 = arith.mulf %444, %448 : vector<8x32xf32>
    %c7_i32_367 = arith.constant 7 : i32
    %450 = arith.subi %c7_i32_367, %c3_i32 : i32
    %c8_i32_368 = arith.constant 8 : i32
    %451 = arith.muli %450, %c8_i32_368 : i32
    %452 = tpu.assume_multiple %451, 8 : i32
    %c1_369 = arith.constant 1 : index
    %c0_370 = arith.constant 0 : index
    %453 = arith.index_cast %452 : i32 to index
    %c0_371 = arith.constant 0 : index
    %454 = vector.load %arg12[%c1_369, %c0_370, %453, %c0_371] : memref<2x4x64x32xf32, #tpu.memory_space<vmem>>, vector<1x1x8x32xf32>
    %455 = vector.shape_cast %454 : vector<1x1x8x32xf32> to vector<8x32xf32>
    %c1_372 = arith.constant 1 : index
    %c1_373 = arith.constant 1 : index
    %456 = arith.index_cast %452 : i32 to index
    %c0_374 = arith.constant 0 : index
    %457 = vector.load %arg12[%c1_372, %c1_373, %456, %c0_374] : memref<2x4x64x32xf32, #tpu.memory_space<vmem>>, vector<1x1x8x32xf32>
    %458 = vector.shape_cast %457 : vector<1x1x8x32xf32> to vector<8x32xf32>
    %c1_375 = arith.constant 1 : index
    %c2_376 = arith.constant 2 : index
    %459 = arith.index_cast %452 : i32 to index
    %c0_377 = arith.constant 0 : index
    %460 = vector.load %arg12[%c1_375, %c2_376, %459, %c0_377] : memref<2x4x64x32xf32, #tpu.memory_space<vmem>>, vector<1x1x8x32xf32>
    %461 = vector.shape_cast %460 : vector<1x1x8x32xf32> to vector<8x32xf32>
    %c1_378 = arith.constant 1 : index
    %c3_379 = arith.constant 3 : index
    %462 = arith.index_cast %452 : i32 to index
    %c0_380 = arith.constant 0 : index
    %463 = vector.load %arg12[%c1_378, %c3_379, %462, %c0_380] : memref<2x4x64x32xf32, #tpu.memory_space<vmem>>, vector<1x1x8x32xf32>
    %464 = vector.shape_cast %463 : vector<1x1x8x32xf32> to vector<8x32xf32>
    %c1_381 = arith.constant 1 : index
    %c0_382 = arith.constant 0 : index
    %c0_383 = arith.constant 0 : index
    %c0_384 = arith.constant 0 : index
    %465 = vector.load %arg3[%c1_381, %c0_382, %c0_383, %c0_384] : memref<2x4x32x32xf32, #tpu.memory_space<vmem>>, vector<1x1x32x32xf32>
    %466 = vector.shape_cast %465 : vector<1x1x32x32xf32> to vector<32x32xf32>
    %cst_385 = arith.constant dense<0.000000e+00> : vector<8x32xf32>
    %467 = tpu.matmul %398, %466, %cst_385 {dimension_numbers = #tpu.dot_dimension_numbers<[1], [0], [0], [1], [0, 0, 1, 1], [], []>} : vector<8x32xf32>, vector<32x32xf32>, vector<8x32xf32> -> vector<8x32xf32>
    %468 = arith.addf %455, %467 : vector<8x32xf32>
    %469 = arith.negf %468 : vector<8x32xf32>
    %470 = math.exp %469 : vector<8x32xf32>
    %cst_386 = arith.constant 1.000000e+00 : f32
    %471 = vector.broadcast %cst_386 : f32 to vector<8x32xf32>
    %472 = arith.addf %471, %470 : vector<8x32xf32>
    %473 = arith.divf %471, %472 : vector<8x32xf32>
    %c1_387 = arith.constant 1 : index
    %c1_388 = arith.constant 1 : index
    %c0_389 = arith.constant 0 : index
    %c0_390 = arith.constant 0 : index
    %474 = vector.load %arg3[%c1_387, %c1_388, %c0_389, %c0_390] : memref<2x4x32x32xf32, #tpu.memory_space<vmem>>, vector<1x1x32x32xf32>
    %475 = vector.shape_cast %474 : vector<1x1x32x32xf32> to vector<32x32xf32>
    %cst_391 = arith.constant dense<0.000000e+00> : vector<8x32xf32>
    %476 = tpu.matmul %398, %475, %cst_391 {dimension_numbers = #tpu.dot_dimension_numbers<[1], [0], [0], [1], [0, 0, 1, 1], [], []>} : vector<8x32xf32>, vector<32x32xf32>, vector<8x32xf32> -> vector<8x32xf32>
    %477 = arith.addf %458, %476 : vector<8x32xf32>
    %478 = arith.negf %477 : vector<8x32xf32>
    %479 = math.exp %478 : vector<8x32xf32>
    %cst_392 = arith.constant 1.000000e+00 : f32
    %480 = vector.broadcast %cst_392 : f32 to vector<8x32xf32>
    %481 = arith.addf %480, %479 : vector<8x32xf32>
    %482 = arith.divf %480, %481 : vector<8x32xf32>
    %c1_393 = arith.constant 1 : index
    %c2_394 = arith.constant 2 : index
    %c0_395 = arith.constant 0 : index
    %c0_396 = arith.constant 0 : index
    %483 = vector.load %arg3[%c1_393, %c2_394, %c0_395, %c0_396] : memref<2x4x32x32xf32, #tpu.memory_space<vmem>>, vector<1x1x32x32xf32>
    %484 = vector.shape_cast %483 : vector<1x1x32x32xf32> to vector<32x32xf32>
    %cst_397 = arith.constant dense<0.000000e+00> : vector<8x32xf32>
    %485 = tpu.matmul %398, %484, %cst_397 {dimension_numbers = #tpu.dot_dimension_numbers<[1], [0], [0], [1], [0, 0, 1, 1], [], []>} : vector<8x32xf32>, vector<32x32xf32>, vector<8x32xf32> -> vector<8x32xf32>
    %486 = arith.addf %461, %485 : vector<8x32xf32>
    %487 = math.tanh %486 : vector<8x32xf32>
    %c1_398 = arith.constant 1 : index
    %c3_399 = arith.constant 3 : index
    %c0_400 = arith.constant 0 : index
    %c0_401 = arith.constant 0 : index
    %488 = vector.load %arg3[%c1_398, %c3_399, %c0_400, %c0_401] : memref<2x4x32x32xf32, #tpu.memory_space<vmem>>, vector<1x1x32x32xf32>
    %489 = vector.shape_cast %488 : vector<1x1x32x32xf32> to vector<32x32xf32>
    %cst_402 = arith.constant dense<0.000000e+00> : vector<8x32xf32>
    %490 = tpu.matmul %398, %489, %cst_402 {dimension_numbers = #tpu.dot_dimension_numbers<[1], [0], [0], [1], [0, 0, 1, 1], [], []>} : vector<8x32xf32>, vector<32x32xf32>, vector<8x32xf32> -> vector<8x32xf32>
    %491 = arith.addf %464, %490 : vector<8x32xf32>
    %492 = arith.negf %491 : vector<8x32xf32>
    %493 = math.exp %492 : vector<8x32xf32>
    %cst_403 = arith.constant 1.000000e+00 : f32
    %494 = vector.broadcast %cst_403 : f32 to vector<8x32xf32>
    %495 = arith.addf %494, %493 : vector<8x32xf32>
    %496 = arith.divf %494, %495 : vector<8x32xf32>
    %497 = arith.mulf %482, %396 : vector<8x32xf32>
    %498 = arith.mulf %473, %487 : vector<8x32xf32>
    %499 = arith.addf %497, %498 : vector<8x32xf32>
    %500 = math.tanh %499 : vector<8x32xf32>
    %501 = arith.mulf %496, %500 : vector<8x32xf32>
    %c4_i32 = arith.constant 4 : i32
    %c8_i32_404 = arith.constant 8 : i32
    %502 = arith.muli %c4_i32, %c8_i32_404 : i32
    %503 = tpu.assume_multiple %502, 8 : i32
    %c0_405 = arith.constant 0 : index
    %c0_406 = arith.constant 0 : index
    %504 = arith.index_cast %503 : i32 to index
    %c0_407 = arith.constant 0 : index
    %505 = vector.load %arg12[%c0_405, %c0_406, %504, %c0_407] : memref<2x4x64x32xf32, #tpu.memory_space<vmem>>, vector<1x1x8x32xf32>
    %506 = vector.shape_cast %505 : vector<1x1x8x32xf32> to vector<8x32xf32>
    %c0_408 = arith.constant 0 : index
    %c1_409 = arith.constant 1 : index
    %507 = arith.index_cast %503 : i32 to index
    %c0_410 = arith.constant 0 : index
    %508 = vector.load %arg12[%c0_408, %c1_409, %507, %c0_410] : memref<2x4x64x32xf32, #tpu.memory_space<vmem>>, vector<1x1x8x32xf32>
    %509 = vector.shape_cast %508 : vector<1x1x8x32xf32> to vector<8x32xf32>
    %c0_411 = arith.constant 0 : index
    %c2_412 = arith.constant 2 : index
    %510 = arith.index_cast %503 : i32 to index
    %c0_413 = arith.constant 0 : index
    %511 = vector.load %arg12[%c0_411, %c2_412, %510, %c0_413] : memref<2x4x64x32xf32, #tpu.memory_space<vmem>>, vector<1x1x8x32xf32>
    %512 = vector.shape_cast %511 : vector<1x1x8x32xf32> to vector<8x32xf32>
    %c0_414 = arith.constant 0 : index
    %c3_415 = arith.constant 3 : index
    %513 = arith.index_cast %503 : i32 to index
    %c0_416 = arith.constant 0 : index
    %514 = vector.load %arg12[%c0_414, %c3_415, %513, %c0_416] : memref<2x4x64x32xf32, #tpu.memory_space<vmem>>, vector<1x1x8x32xf32>
    %515 = vector.shape_cast %514 : vector<1x1x8x32xf32> to vector<8x32xf32>
    %c0_417 = arith.constant 0 : index
    %c0_418 = arith.constant 0 : index
    %c0_419 = arith.constant 0 : index
    %c0_420 = arith.constant 0 : index
    %516 = vector.load %arg3[%c0_417, %c0_418, %c0_419, %c0_420] : memref<2x4x32x32xf32, #tpu.memory_space<vmem>>, vector<1x1x32x32xf32>
    %517 = vector.shape_cast %516 : vector<1x1x32x32xf32> to vector<32x32xf32>
    %cst_421 = arith.constant dense<0.000000e+00> : vector<8x32xf32>
    %518 = tpu.matmul %449, %517, %cst_421 {dimension_numbers = #tpu.dot_dimension_numbers<[1], [0], [0], [1], [0, 0, 1, 1], [], []>} : vector<8x32xf32>, vector<32x32xf32>, vector<8x32xf32> -> vector<8x32xf32>
    %519 = arith.addf %506, %518 : vector<8x32xf32>
    %520 = arith.negf %519 : vector<8x32xf32>
    %521 = math.exp %520 : vector<8x32xf32>
    %cst_422 = arith.constant 1.000000e+00 : f32
    %522 = vector.broadcast %cst_422 : f32 to vector<8x32xf32>
    %523 = arith.addf %522, %521 : vector<8x32xf32>
    %524 = arith.divf %522, %523 : vector<8x32xf32>
    %c0_423 = arith.constant 0 : index
    %c1_424 = arith.constant 1 : index
    %c0_425 = arith.constant 0 : index
    %c0_426 = arith.constant 0 : index
    %525 = vector.load %arg3[%c0_423, %c1_424, %c0_425, %c0_426] : memref<2x4x32x32xf32, #tpu.memory_space<vmem>>, vector<1x1x32x32xf32>
    %526 = vector.shape_cast %525 : vector<1x1x32x32xf32> to vector<32x32xf32>
    %cst_427 = arith.constant dense<0.000000e+00> : vector<8x32xf32>
    %527 = tpu.matmul %449, %526, %cst_427 {dimension_numbers = #tpu.dot_dimension_numbers<[1], [0], [0], [1], [0, 0, 1, 1], [], []>} : vector<8x32xf32>, vector<32x32xf32>, vector<8x32xf32> -> vector<8x32xf32>
    %528 = arith.addf %509, %527 : vector<8x32xf32>
    %529 = arith.negf %528 : vector<8x32xf32>
    %530 = math.exp %529 : vector<8x32xf32>
    %cst_428 = arith.constant 1.000000e+00 : f32
    %531 = vector.broadcast %cst_428 : f32 to vector<8x32xf32>
    %532 = arith.addf %531, %530 : vector<8x32xf32>
    %533 = arith.divf %531, %532 : vector<8x32xf32>
    %c0_429 = arith.constant 0 : index
    %c2_430 = arith.constant 2 : index
    %c0_431 = arith.constant 0 : index
    %c0_432 = arith.constant 0 : index
    %534 = vector.load %arg3[%c0_429, %c2_430, %c0_431, %c0_432] : memref<2x4x32x32xf32, #tpu.memory_space<vmem>>, vector<1x1x32x32xf32>
    %535 = vector.shape_cast %534 : vector<1x1x32x32xf32> to vector<32x32xf32>
    %cst_433 = arith.constant dense<0.000000e+00> : vector<8x32xf32>
    %536 = tpu.matmul %449, %535, %cst_433 {dimension_numbers = #tpu.dot_dimension_numbers<[1], [0], [0], [1], [0, 0, 1, 1], [], []>} : vector<8x32xf32>, vector<32x32xf32>, vector<8x32xf32> -> vector<8x32xf32>
    %537 = arith.addf %512, %536 : vector<8x32xf32>
    %538 = math.tanh %537 : vector<8x32xf32>
    %c0_434 = arith.constant 0 : index
    %c3_435 = arith.constant 3 : index
    %c0_436 = arith.constant 0 : index
    %c0_437 = arith.constant 0 : index
    %539 = vector.load %arg3[%c0_434, %c3_435, %c0_436, %c0_437] : memref<2x4x32x32xf32, #tpu.memory_space<vmem>>, vector<1x1x32x32xf32>
    %540 = vector.shape_cast %539 : vector<1x1x32x32xf32> to vector<32x32xf32>
    %cst_438 = arith.constant dense<0.000000e+00> : vector<8x32xf32>
    %541 = tpu.matmul %449, %540, %cst_438 {dimension_numbers = #tpu.dot_dimension_numbers<[1], [0], [0], [1], [0, 0, 1, 1], [], []>} : vector<8x32xf32>, vector<32x32xf32>, vector<8x32xf32> -> vector<8x32xf32>
    %542 = arith.addf %515, %541 : vector<8x32xf32>
    %543 = arith.negf %542 : vector<8x32xf32>
    %544 = math.exp %543 : vector<8x32xf32>
    %cst_439 = arith.constant 1.000000e+00 : f32
    %545 = vector.broadcast %cst_439 : f32 to vector<8x32xf32>
    %546 = arith.addf %545, %544 : vector<8x32xf32>
    %547 = arith.divf %545, %546 : vector<8x32xf32>
    %548 = arith.mulf %533, %447 : vector<8x32xf32>
    %549 = arith.mulf %524, %538 : vector<8x32xf32>
    %550 = arith.addf %548, %549 : vector<8x32xf32>
    %551 = math.tanh %550 : vector<8x32xf32>
    %552 = arith.mulf %547, %551 : vector<8x32xf32>
    %c7_i32_440 = arith.constant 7 : i32
    %553 = arith.subi %c7_i32_440, %c4_i32 : i32
    %c8_i32_441 = arith.constant 8 : i32
    %554 = arith.muli %553, %c8_i32_441 : i32
    %555 = tpu.assume_multiple %554, 8 : i32
    %c1_442 = arith.constant 1 : index
    %c0_443 = arith.constant 0 : index
    %556 = arith.index_cast %555 : i32 to index
    %c0_444 = arith.constant 0 : index
    %557 = vector.load %arg12[%c1_442, %c0_443, %556, %c0_444] : memref<2x4x64x32xf32, #tpu.memory_space<vmem>>, vector<1x1x8x32xf32>
    %558 = vector.shape_cast %557 : vector<1x1x8x32xf32> to vector<8x32xf32>
    %c1_445 = arith.constant 1 : index
    %c1_446 = arith.constant 1 : index
    %559 = arith.index_cast %555 : i32 to index
    %c0_447 = arith.constant 0 : index
    %560 = vector.load %arg12[%c1_445, %c1_446, %559, %c0_447] : memref<2x4x64x32xf32, #tpu.memory_space<vmem>>, vector<1x1x8x32xf32>
    %561 = vector.shape_cast %560 : vector<1x1x8x32xf32> to vector<8x32xf32>
    %c1_448 = arith.constant 1 : index
    %c2_449 = arith.constant 2 : index
    %562 = arith.index_cast %555 : i32 to index
    %c0_450 = arith.constant 0 : index
    %563 = vector.load %arg12[%c1_448, %c2_449, %562, %c0_450] : memref<2x4x64x32xf32, #tpu.memory_space<vmem>>, vector<1x1x8x32xf32>
    %564 = vector.shape_cast %563 : vector<1x1x8x32xf32> to vector<8x32xf32>
    %c1_451 = arith.constant 1 : index
    %c3_452 = arith.constant 3 : index
    %565 = arith.index_cast %555 : i32 to index
    %c0_453 = arith.constant 0 : index
    %566 = vector.load %arg12[%c1_451, %c3_452, %565, %c0_453] : memref<2x4x64x32xf32, #tpu.memory_space<vmem>>, vector<1x1x8x32xf32>
    %567 = vector.shape_cast %566 : vector<1x1x8x32xf32> to vector<8x32xf32>
    %c1_454 = arith.constant 1 : index
    %c0_455 = arith.constant 0 : index
    %c0_456 = arith.constant 0 : index
    %c0_457 = arith.constant 0 : index
    %568 = vector.load %arg3[%c1_454, %c0_455, %c0_456, %c0_457] : memref<2x4x32x32xf32, #tpu.memory_space<vmem>>, vector<1x1x32x32xf32>
    %569 = vector.shape_cast %568 : vector<1x1x32x32xf32> to vector<32x32xf32>
    %cst_458 = arith.constant dense<0.000000e+00> : vector<8x32xf32>
    %570 = tpu.matmul %501, %569, %cst_458 {dimension_numbers = #tpu.dot_dimension_numbers<[1], [0], [0], [1], [0, 0, 1, 1], [], []>} : vector<8x32xf32>, vector<32x32xf32>, vector<8x32xf32> -> vector<8x32xf32>
    %571 = arith.addf %558, %570 : vector<8x32xf32>
    %572 = arith.negf %571 : vector<8x32xf32>
    %573 = math.exp %572 : vector<8x32xf32>
    %cst_459 = arith.constant 1.000000e+00 : f32
    %574 = vector.broadcast %cst_459 : f32 to vector<8x32xf32>
    %575 = arith.addf %574, %573 : vector<8x32xf32>
    %576 = arith.divf %574, %575 : vector<8x32xf32>
    %c1_460 = arith.constant 1 : index
    %c1_461 = arith.constant 1 : index
    %c0_462 = arith.constant 0 : index
    %c0_463 = arith.constant 0 : index
    %577 = vector.load %arg3[%c1_460, %c1_461, %c0_462, %c0_463] : memref<2x4x32x32xf32, #tpu.memory_space<vmem>>, vector<1x1x32x32xf32>
    %578 = vector.shape_cast %577 : vector<1x1x32x32xf32> to vector<32x32xf32>
    %cst_464 = arith.constant dense<0.000000e+00> : vector<8x32xf32>
    %579 = tpu.matmul %501, %578, %cst_464 {dimension_numbers = #tpu.dot_dimension_numbers<[1], [0], [0], [1], [0, 0, 1, 1], [], []>} : vector<8x32xf32>, vector<32x32xf32>, vector<8x32xf32> -> vector<8x32xf32>
    %580 = arith.addf %561, %579 : vector<8x32xf32>
    %581 = arith.negf %580 : vector<8x32xf32>
    %582 = math.exp %581 : vector<8x32xf32>
    %cst_465 = arith.constant 1.000000e+00 : f32
    %583 = vector.broadcast %cst_465 : f32 to vector<8x32xf32>
    %584 = arith.addf %583, %582 : vector<8x32xf32>
    %585 = arith.divf %583, %584 : vector<8x32xf32>
    %c1_466 = arith.constant 1 : index
    %c2_467 = arith.constant 2 : index
    %c0_468 = arith.constant 0 : index
    %c0_469 = arith.constant 0 : index
    %586 = vector.load %arg3[%c1_466, %c2_467, %c0_468, %c0_469] : memref<2x4x32x32xf32, #tpu.memory_space<vmem>>, vector<1x1x32x32xf32>
    %587 = vector.shape_cast %586 : vector<1x1x32x32xf32> to vector<32x32xf32>
    %cst_470 = arith.constant dense<0.000000e+00> : vector<8x32xf32>
    %588 = tpu.matmul %501, %587, %cst_470 {dimension_numbers = #tpu.dot_dimension_numbers<[1], [0], [0], [1], [0, 0, 1, 1], [], []>} : vector<8x32xf32>, vector<32x32xf32>, vector<8x32xf32> -> vector<8x32xf32>
    %589 = arith.addf %564, %588 : vector<8x32xf32>
    %590 = math.tanh %589 : vector<8x32xf32>
    %c1_471 = arith.constant 1 : index
    %c3_472 = arith.constant 3 : index
    %c0_473 = arith.constant 0 : index
    %c0_474 = arith.constant 0 : index
    %591 = vector.load %arg3[%c1_471, %c3_472, %c0_473, %c0_474] : memref<2x4x32x32xf32, #tpu.memory_space<vmem>>, vector<1x1x32x32xf32>
    %592 = vector.shape_cast %591 : vector<1x1x32x32xf32> to vector<32x32xf32>
    %cst_475 = arith.constant dense<0.000000e+00> : vector<8x32xf32>
    %593 = tpu.matmul %501, %592, %cst_475 {dimension_numbers = #tpu.dot_dimension_numbers<[1], [0], [0], [1], [0, 0, 1, 1], [], []>} : vector<8x32xf32>, vector<32x32xf32>, vector<8x32xf32> -> vector<8x32xf32>
    %594 = arith.addf %567, %593 : vector<8x32xf32>
    %595 = arith.negf %594 : vector<8x32xf32>
    %596 = math.exp %595 : vector<8x32xf32>
    %cst_476 = arith.constant 1.000000e+00 : f32
    %597 = vector.broadcast %cst_476 : f32 to vector<8x32xf32>
    %598 = arith.addf %597, %596 : vector<8x32xf32>
    %599 = arith.divf %597, %598 : vector<8x32xf32>
    %600 = arith.mulf %585, %499 : vector<8x32xf32>
    %601 = arith.mulf %576, %590 : vector<8x32xf32>
    %602 = arith.addf %600, %601 : vector<8x32xf32>
    %603 = math.tanh %602 : vector<8x32xf32>
    %604 = arith.mulf %599, %603 : vector<8x32xf32>
    %c5_i32 = arith.constant 5 : i32
    %c8_i32_477 = arith.constant 8 : i32
    %605 = arith.muli %c5_i32, %c8_i32_477 : i32
    %606 = tpu.assume_multiple %605, 8 : i32
    %c0_478 = arith.constant 0 : index
    %c0_479 = arith.constant 0 : index
    %607 = arith.index_cast %606 : i32 to index
    %c0_480 = arith.constant 0 : index
    %608 = vector.load %arg12[%c0_478, %c0_479, %607, %c0_480] : memref<2x4x64x32xf32, #tpu.memory_space<vmem>>, vector<1x1x8x32xf32>
    %609 = vector.shape_cast %608 : vector<1x1x8x32xf32> to vector<8x32xf32>
    %c0_481 = arith.constant 0 : index
    %c1_482 = arith.constant 1 : index
    %610 = arith.index_cast %606 : i32 to index
    %c0_483 = arith.constant 0 : index
    %611 = vector.load %arg12[%c0_481, %c1_482, %610, %c0_483] : memref<2x4x64x32xf32, #tpu.memory_space<vmem>>, vector<1x1x8x32xf32>
    %612 = vector.shape_cast %611 : vector<1x1x8x32xf32> to vector<8x32xf32>
    %c0_484 = arith.constant 0 : index
    %c2_485 = arith.constant 2 : index
    %613 = arith.index_cast %606 : i32 to index
    %c0_486 = arith.constant 0 : index
    %614 = vector.load %arg12[%c0_484, %c2_485, %613, %c0_486] : memref<2x4x64x32xf32, #tpu.memory_space<vmem>>, vector<1x1x8x32xf32>
    %615 = vector.shape_cast %614 : vector<1x1x8x32xf32> to vector<8x32xf32>
    %c0_487 = arith.constant 0 : index
    %c3_488 = arith.constant 3 : index
    %616 = arith.index_cast %606 : i32 to index
    %c0_489 = arith.constant 0 : index
    %617 = vector.load %arg12[%c0_487, %c3_488, %616, %c0_489] : memref<2x4x64x32xf32, #tpu.memory_space<vmem>>, vector<1x1x8x32xf32>
    %618 = vector.shape_cast %617 : vector<1x1x8x32xf32> to vector<8x32xf32>
    %c0_490 = arith.constant 0 : index
    %c0_491 = arith.constant 0 : index
    %c0_492 = arith.constant 0 : index
    %c0_493 = arith.constant 0 : index
    %619 = vector.load %arg3[%c0_490, %c0_491, %c0_492, %c0_493] : memref<2x4x32x32xf32, #tpu.memory_space<vmem>>, vector<1x1x32x32xf32>
    %620 = vector.shape_cast %619 : vector<1x1x32x32xf32> to vector<32x32xf32>
    %cst_494 = arith.constant dense<0.000000e+00> : vector<8x32xf32>
    %621 = tpu.matmul %552, %620, %cst_494 {dimension_numbers = #tpu.dot_dimension_numbers<[1], [0], [0], [1], [0, 0, 1, 1], [], []>} : vector<8x32xf32>, vector<32x32xf32>, vector<8x32xf32> -> vector<8x32xf32>
    %622 = arith.addf %609, %621 : vector<8x32xf32>
    %623 = arith.negf %622 : vector<8x32xf32>
    %624 = math.exp %623 : vector<8x32xf32>
    %cst_495 = arith.constant 1.000000e+00 : f32
    %625 = vector.broadcast %cst_495 : f32 to vector<8x32xf32>
    %626 = arith.addf %625, %624 : vector<8x32xf32>
    %627 = arith.divf %625, %626 : vector<8x32xf32>
    %c0_496 = arith.constant 0 : index
    %c1_497 = arith.constant 1 : index
    %c0_498 = arith.constant 0 : index
    %c0_499 = arith.constant 0 : index
    %628 = vector.load %arg3[%c0_496, %c1_497, %c0_498, %c0_499] : memref<2x4x32x32xf32, #tpu.memory_space<vmem>>, vector<1x1x32x32xf32>
    %629 = vector.shape_cast %628 : vector<1x1x32x32xf32> to vector<32x32xf32>
    %cst_500 = arith.constant dense<0.000000e+00> : vector<8x32xf32>
    %630 = tpu.matmul %552, %629, %cst_500 {dimension_numbers = #tpu.dot_dimension_numbers<[1], [0], [0], [1], [0, 0, 1, 1], [], []>} : vector<8x32xf32>, vector<32x32xf32>, vector<8x32xf32> -> vector<8x32xf32>
    %631 = arith.addf %612, %630 : vector<8x32xf32>
    %632 = arith.negf %631 : vector<8x32xf32>
    %633 = math.exp %632 : vector<8x32xf32>
    %cst_501 = arith.constant 1.000000e+00 : f32
    %634 = vector.broadcast %cst_501 : f32 to vector<8x32xf32>
    %635 = arith.addf %634, %633 : vector<8x32xf32>
    %636 = arith.divf %634, %635 : vector<8x32xf32>
    %c0_502 = arith.constant 0 : index
    %c2_503 = arith.constant 2 : index
    %c0_504 = arith.constant 0 : index
    %c0_505 = arith.constant 0 : index
    %637 = vector.load %arg3[%c0_502, %c2_503, %c0_504, %c0_505] : memref<2x4x32x32xf32, #tpu.memory_space<vmem>>, vector<1x1x32x32xf32>
    %638 = vector.shape_cast %637 : vector<1x1x32x32xf32> to vector<32x32xf32>
    %cst_506 = arith.constant dense<0.000000e+00> : vector<8x32xf32>
    %639 = tpu.matmul %552, %638, %cst_506 {dimension_numbers = #tpu.dot_dimension_numbers<[1], [0], [0], [1], [0, 0, 1, 1], [], []>} : vector<8x32xf32>, vector<32x32xf32>, vector<8x32xf32> -> vector<8x32xf32>
    %640 = arith.addf %615, %639 : vector<8x32xf32>
    %641 = math.tanh %640 : vector<8x32xf32>
    %c0_507 = arith.constant 0 : index
    %c3_508 = arith.constant 3 : index
    %c0_509 = arith.constant 0 : index
    %c0_510 = arith.constant 0 : index
    %642 = vector.load %arg3[%c0_507, %c3_508, %c0_509, %c0_510] : memref<2x4x32x32xf32, #tpu.memory_space<vmem>>, vector<1x1x32x32xf32>
    %643 = vector.shape_cast %642 : vector<1x1x32x32xf32> to vector<32x32xf32>
    %cst_511 = arith.constant dense<0.000000e+00> : vector<8x32xf32>
    %644 = tpu.matmul %552, %643, %cst_511 {dimension_numbers = #tpu.dot_dimension_numbers<[1], [0], [0], [1], [0, 0, 1, 1], [], []>} : vector<8x32xf32>, vector<32x32xf32>, vector<8x32xf32> -> vector<8x32xf32>
    %645 = arith.addf %618, %644 : vector<8x32xf32>
    %646 = arith.negf %645 : vector<8x32xf32>
    %647 = math.exp %646 : vector<8x32xf32>
    %cst_512 = arith.constant 1.000000e+00 : f32
    %648 = vector.broadcast %cst_512 : f32 to vector<8x32xf32>
    %649 = arith.addf %648, %647 : vector<8x32xf32>
    %650 = arith.divf %648, %649 : vector<8x32xf32>
    %651 = arith.mulf %636, %550 : vector<8x32xf32>
    %652 = arith.mulf %627, %641 : vector<8x32xf32>
    %653 = arith.addf %651, %652 : vector<8x32xf32>
    %654 = math.tanh %653 : vector<8x32xf32>
    %655 = arith.mulf %650, %654 : vector<8x32xf32>
    %c7_i32_513 = arith.constant 7 : i32
    %656 = arith.subi %c7_i32_513, %c5_i32 : i32
    %c8_i32_514 = arith.constant 8 : i32
    %657 = arith.muli %656, %c8_i32_514 : i32
    %658 = tpu.assume_multiple %657, 8 : i32
    %c1_515 = arith.constant 1 : index
    %c0_516 = arith.constant 0 : index
    %659 = arith.index_cast %658 : i32 to index
    %c0_517 = arith.constant 0 : index
    %660 = vector.load %arg12[%c1_515, %c0_516, %659, %c0_517] : memref<2x4x64x32xf32, #tpu.memory_space<vmem>>, vector<1x1x8x32xf32>
    %661 = vector.shape_cast %660 : vector<1x1x8x32xf32> to vector<8x32xf32>
    %c1_518 = arith.constant 1 : index
    %c1_519 = arith.constant 1 : index
    %662 = arith.index_cast %658 : i32 to index
    %c0_520 = arith.constant 0 : index
    %663 = vector.load %arg12[%c1_518, %c1_519, %662, %c0_520] : memref<2x4x64x32xf32, #tpu.memory_space<vmem>>, vector<1x1x8x32xf32>
    %664 = vector.shape_cast %663 : vector<1x1x8x32xf32> to vector<8x32xf32>
    %c1_521 = arith.constant 1 : index
    %c2_522 = arith.constant 2 : index
    %665 = arith.index_cast %658 : i32 to index
    %c0_523 = arith.constant 0 : index
    %666 = vector.load %arg12[%c1_521, %c2_522, %665, %c0_523] : memref<2x4x64x32xf32, #tpu.memory_space<vmem>>, vector<1x1x8x32xf32>
    %667 = vector.shape_cast %666 : vector<1x1x8x32xf32> to vector<8x32xf32>
    %c1_524 = arith.constant 1 : index
    %c3_525 = arith.constant 3 : index
    %668 = arith.index_cast %658 : i32 to index
    %c0_526 = arith.constant 0 : index
    %669 = vector.load %arg12[%c1_524, %c3_525, %668, %c0_526] : memref<2x4x64x32xf32, #tpu.memory_space<vmem>>, vector<1x1x8x32xf32>
    %670 = vector.shape_cast %669 : vector<1x1x8x32xf32> to vector<8x32xf32>
    %c1_527 = arith.constant 1 : index
    %c0_528 = arith.constant 0 : index
    %c0_529 = arith.constant 0 : index
    %c0_530 = arith.constant 0 : index
    %671 = vector.load %arg3[%c1_527, %c0_528, %c0_529, %c0_530] : memref<2x4x32x32xf32, #tpu.memory_space<vmem>>, vector<1x1x32x32xf32>
    %672 = vector.shape_cast %671 : vector<1x1x32x32xf32> to vector<32x32xf32>
    %cst_531 = arith.constant dense<0.000000e+00> : vector<8x32xf32>
    %673 = tpu.matmul %604, %672, %cst_531 {dimension_numbers = #tpu.dot_dimension_numbers<[1], [0], [0], [1], [0, 0, 1, 1], [], []>} : vector<8x32xf32>, vector<32x32xf32>, vector<8x32xf32> -> vector<8x32xf32>
    %674 = arith.addf %661, %673 : vector<8x32xf32>
    %675 = arith.negf %674 : vector<8x32xf32>
    %676 = math.exp %675 : vector<8x32xf32>
    %cst_532 = arith.constant 1.000000e+00 : f32
    %677 = vector.broadcast %cst_532 : f32 to vector<8x32xf32>
    %678 = arith.addf %677, %676 : vector<8x32xf32>
    %679 = arith.divf %677, %678 : vector<8x32xf32>
    %c1_533 = arith.constant 1 : index
    %c1_534 = arith.constant 1 : index
    %c0_535 = arith.constant 0 : index
    %c0_536 = arith.constant 0 : index
    %680 = vector.load %arg3[%c1_533, %c1_534, %c0_535, %c0_536] : memref<2x4x32x32xf32, #tpu.memory_space<vmem>>, vector<1x1x32x32xf32>
    %681 = vector.shape_cast %680 : vector<1x1x32x32xf32> to vector<32x32xf32>
    %cst_537 = arith.constant dense<0.000000e+00> : vector<8x32xf32>
    %682 = tpu.matmul %604, %681, %cst_537 {dimension_numbers = #tpu.dot_dimension_numbers<[1], [0], [0], [1], [0, 0, 1, 1], [], []>} : vector<8x32xf32>, vector<32x32xf32>, vector<8x32xf32> -> vector<8x32xf32>
    %683 = arith.addf %664, %682 : vector<8x32xf32>
    %684 = arith.negf %683 : vector<8x32xf32>
    %685 = math.exp %684 : vector<8x32xf32>
    %cst_538 = arith.constant 1.000000e+00 : f32
    %686 = vector.broadcast %cst_538 : f32 to vector<8x32xf32>
    %687 = arith.addf %686, %685 : vector<8x32xf32>
    %688 = arith.divf %686, %687 : vector<8x32xf32>
    %c1_539 = arith.constant 1 : index
    %c2_540 = arith.constant 2 : index
    %c0_541 = arith.constant 0 : index
    %c0_542 = arith.constant 0 : index
    %689 = vector.load %arg3[%c1_539, %c2_540, %c0_541, %c0_542] : memref<2x4x32x32xf32, #tpu.memory_space<vmem>>, vector<1x1x32x32xf32>
    %690 = vector.shape_cast %689 : vector<1x1x32x32xf32> to vector<32x32xf32>
    %cst_543 = arith.constant dense<0.000000e+00> : vector<8x32xf32>
    %691 = tpu.matmul %604, %690, %cst_543 {dimension_numbers = #tpu.dot_dimension_numbers<[1], [0], [0], [1], [0, 0, 1, 1], [], []>} : vector<8x32xf32>, vector<32x32xf32>, vector<8x32xf32> -> vector<8x32xf32>
    %692 = arith.addf %667, %691 : vector<8x32xf32>
    %693 = math.tanh %692 : vector<8x32xf32>
    %c1_544 = arith.constant 1 : index
    %c3_545 = arith.constant 3 : index
    %c0_546 = arith.constant 0 : index
    %c0_547 = arith.constant 0 : index
    %694 = vector.load %arg3[%c1_544, %c3_545, %c0_546, %c0_547] : memref<2x4x32x32xf32, #tpu.memory_space<vmem>>, vector<1x1x32x32xf32>
    %695 = vector.shape_cast %694 : vector<1x1x32x32xf32> to vector<32x32xf32>
    %cst_548 = arith.constant dense<0.000000e+00> : vector<8x32xf32>
    %696 = tpu.matmul %604, %695, %cst_548 {dimension_numbers = #tpu.dot_dimension_numbers<[1], [0], [0], [1], [0, 0, 1, 1], [], []>} : vector<8x32xf32>, vector<32x32xf32>, vector<8x32xf32> -> vector<8x32xf32>
    %697 = arith.addf %670, %696 : vector<8x32xf32>
    %698 = arith.negf %697 : vector<8x32xf32>
    %699 = math.exp %698 : vector<8x32xf32>
    %cst_549 = arith.constant 1.000000e+00 : f32
    %700 = vector.broadcast %cst_549 : f32 to vector<8x32xf32>
    %701 = arith.addf %700, %699 : vector<8x32xf32>
    %702 = arith.divf %700, %701 : vector<8x32xf32>
    %703 = arith.mulf %688, %602 : vector<8x32xf32>
    %704 = arith.mulf %679, %693 : vector<8x32xf32>
    %705 = arith.addf %703, %704 : vector<8x32xf32>
    %706 = math.tanh %705 : vector<8x32xf32>
    %707 = arith.mulf %702, %706 : vector<8x32xf32>
    %c6_i32 = arith.constant 6 : i32
    %c8_i32_550 = arith.constant 8 : i32
    %708 = arith.muli %c6_i32, %c8_i32_550 : i32
    %709 = tpu.assume_multiple %708, 8 : i32
    %c0_551 = arith.constant 0 : index
    %c0_552 = arith.constant 0 : index
    %710 = arith.index_cast %709 : i32 to index
    %c0_553 = arith.constant 0 : index
    %711 = vector.load %arg12[%c0_551, %c0_552, %710, %c0_553] : memref<2x4x64x32xf32, #tpu.memory_space<vmem>>, vector<1x1x8x32xf32>
    %712 = vector.shape_cast %711 : vector<1x1x8x32xf32> to vector<8x32xf32>
    %c0_554 = arith.constant 0 : index
    %c1_555 = arith.constant 1 : index
    %713 = arith.index_cast %709 : i32 to index
    %c0_556 = arith.constant 0 : index
    %714 = vector.load %arg12[%c0_554, %c1_555, %713, %c0_556] : memref<2x4x64x32xf32, #tpu.memory_space<vmem>>, vector<1x1x8x32xf32>
    %715 = vector.shape_cast %714 : vector<1x1x8x32xf32> to vector<8x32xf32>
    %c0_557 = arith.constant 0 : index
    %c2_558 = arith.constant 2 : index
    %716 = arith.index_cast %709 : i32 to index
    %c0_559 = arith.constant 0 : index
    %717 = vector.load %arg12[%c0_557, %c2_558, %716, %c0_559] : memref<2x4x64x32xf32, #tpu.memory_space<vmem>>, vector<1x1x8x32xf32>
    %718 = vector.shape_cast %717 : vector<1x1x8x32xf32> to vector<8x32xf32>
    %c0_560 = arith.constant 0 : index
    %c3_561 = arith.constant 3 : index
    %719 = arith.index_cast %709 : i32 to index
    %c0_562 = arith.constant 0 : index
    %720 = vector.load %arg12[%c0_560, %c3_561, %719, %c0_562] : memref<2x4x64x32xf32, #tpu.memory_space<vmem>>, vector<1x1x8x32xf32>
    %721 = vector.shape_cast %720 : vector<1x1x8x32xf32> to vector<8x32xf32>
    %c0_563 = arith.constant 0 : index
    %c0_564 = arith.constant 0 : index
    %c0_565 = arith.constant 0 : index
    %c0_566 = arith.constant 0 : index
    %722 = vector.load %arg3[%c0_563, %c0_564, %c0_565, %c0_566] : memref<2x4x32x32xf32, #tpu.memory_space<vmem>>, vector<1x1x32x32xf32>
    %723 = vector.shape_cast %722 : vector<1x1x32x32xf32> to vector<32x32xf32>
    %cst_567 = arith.constant dense<0.000000e+00> : vector<8x32xf32>
    %724 = tpu.matmul %655, %723, %cst_567 {dimension_numbers = #tpu.dot_dimension_numbers<[1], [0], [0], [1], [0, 0, 1, 1], [], []>} : vector<8x32xf32>, vector<32x32xf32>, vector<8x32xf32> -> vector<8x32xf32>
    %725 = arith.addf %712, %724 : vector<8x32xf32>
    %726 = arith.negf %725 : vector<8x32xf32>
    %727 = math.exp %726 : vector<8x32xf32>
    %cst_568 = arith.constant 1.000000e+00 : f32
    %728 = vector.broadcast %cst_568 : f32 to vector<8x32xf32>
    %729 = arith.addf %728, %727 : vector<8x32xf32>
    %730 = arith.divf %728, %729 : vector<8x32xf32>
    %c0_569 = arith.constant 0 : index
    %c1_570 = arith.constant 1 : index
    %c0_571 = arith.constant 0 : index
    %c0_572 = arith.constant 0 : index
    %731 = vector.load %arg3[%c0_569, %c1_570, %c0_571, %c0_572] : memref<2x4x32x32xf32, #tpu.memory_space<vmem>>, vector<1x1x32x32xf32>
    %732 = vector.shape_cast %731 : vector<1x1x32x32xf32> to vector<32x32xf32>
    %cst_573 = arith.constant dense<0.000000e+00> : vector<8x32xf32>
    %733 = tpu.matmul %655, %732, %cst_573 {dimension_numbers = #tpu.dot_dimension_numbers<[1], [0], [0], [1], [0, 0, 1, 1], [], []>} : vector<8x32xf32>, vector<32x32xf32>, vector<8x32xf32> -> vector<8x32xf32>
    %734 = arith.addf %715, %733 : vector<8x32xf32>
    %735 = arith.negf %734 : vector<8x32xf32>
    %736 = math.exp %735 : vector<8x32xf32>
    %cst_574 = arith.constant 1.000000e+00 : f32
    %737 = vector.broadcast %cst_574 : f32 to vector<8x32xf32>
    %738 = arith.addf %737, %736 : vector<8x32xf32>
    %739 = arith.divf %737, %738 : vector<8x32xf32>
    %c0_575 = arith.constant 0 : index
    %c2_576 = arith.constant 2 : index
    %c0_577 = arith.constant 0 : index
    %c0_578 = arith.constant 0 : index
    %740 = vector.load %arg3[%c0_575, %c2_576, %c0_577, %c0_578] : memref<2x4x32x32xf32, #tpu.memory_space<vmem>>, vector<1x1x32x32xf32>
    %741 = vector.shape_cast %740 : vector<1x1x32x32xf32> to vector<32x32xf32>
    %cst_579 = arith.constant dense<0.000000e+00> : vector<8x32xf32>
    %742 = tpu.matmul %655, %741, %cst_579 {dimension_numbers = #tpu.dot_dimension_numbers<[1], [0], [0], [1], [0, 0, 1, 1], [], []>} : vector<8x32xf32>, vector<32x32xf32>, vector<8x32xf32> -> vector<8x32xf32>
    %743 = arith.addf %718, %742 : vector<8x32xf32>
    %744 = math.tanh %743 : vector<8x32xf32>
    %c0_580 = arith.constant 0 : index
    %c3_581 = arith.constant 3 : index
    %c0_582 = arith.constant 0 : index
    %c0_583 = arith.constant 0 : index
    %745 = vector.load %arg3[%c0_580, %c3_581, %c0_582, %c0_583] : memref<2x4x32x32xf32, #tpu.memory_space<vmem>>, vector<1x1x32x32xf32>
    %746 = vector.shape_cast %745 : vector<1x1x32x32xf32> to vector<32x32xf32>
    %cst_584 = arith.constant dense<0.000000e+00> : vector<8x32xf32>
    %747 = tpu.matmul %655, %746, %cst_584 {dimension_numbers = #tpu.dot_dimension_numbers<[1], [0], [0], [1], [0, 0, 1, 1], [], []>} : vector<8x32xf32>, vector<32x32xf32>, vector<8x32xf32> -> vector<8x32xf32>
    %748 = arith.addf %721, %747 : vector<8x32xf32>
    %749 = arith.negf %748 : vector<8x32xf32>
    %750 = math.exp %749 : vector<8x32xf32>
    %cst_585 = arith.constant 1.000000e+00 : f32
    %751 = vector.broadcast %cst_585 : f32 to vector<8x32xf32>
    %752 = arith.addf %751, %750 : vector<8x32xf32>
    %753 = arith.divf %751, %752 : vector<8x32xf32>
    %754 = arith.mulf %739, %653 : vector<8x32xf32>
    %755 = arith.mulf %730, %744 : vector<8x32xf32>
    %756 = arith.addf %754, %755 : vector<8x32xf32>
    %757 = math.tanh %756 : vector<8x32xf32>
    %758 = arith.mulf %753, %757 : vector<8x32xf32>
    %c7_i32_586 = arith.constant 7 : i32
    %759 = arith.subi %c7_i32_586, %c6_i32 : i32
    %c8_i32_587 = arith.constant 8 : i32
    %760 = arith.muli %759, %c8_i32_587 : i32
    %761 = tpu.assume_multiple %760, 8 : i32
    %c1_588 = arith.constant 1 : index
    %c0_589 = arith.constant 0 : index
    %762 = arith.index_cast %761 : i32 to index
    %c0_590 = arith.constant 0 : index
    %763 = vector.load %arg12[%c1_588, %c0_589, %762, %c0_590] : memref<2x4x64x32xf32, #tpu.memory_space<vmem>>, vector<1x1x8x32xf32>
    %764 = vector.shape_cast %763 : vector<1x1x8x32xf32> to vector<8x32xf32>
    %c1_591 = arith.constant 1 : index
    %c1_592 = arith.constant 1 : index
    %765 = arith.index_cast %761 : i32 to index
    %c0_593 = arith.constant 0 : index
    %766 = vector.load %arg12[%c1_591, %c1_592, %765, %c0_593] : memref<2x4x64x32xf32, #tpu.memory_space<vmem>>, vector<1x1x8x32xf32>
    %767 = vector.shape_cast %766 : vector<1x1x8x32xf32> to vector<8x32xf32>
    %c1_594 = arith.constant 1 : index
    %c2_595 = arith.constant 2 : index
    %768 = arith.index_cast %761 : i32 to index
    %c0_596 = arith.constant 0 : index
    %769 = vector.load %arg12[%c1_594, %c2_595, %768, %c0_596] : memref<2x4x64x32xf32, #tpu.memory_space<vmem>>, vector<1x1x8x32xf32>
    %770 = vector.shape_cast %769 : vector<1x1x8x32xf32> to vector<8x32xf32>
    %c1_597 = arith.constant 1 : index
    %c3_598 = arith.constant 3 : index
    %771 = arith.index_cast %761 : i32 to index
    %c0_599 = arith.constant 0 : index
    %772 = vector.load %arg12[%c1_597, %c3_598, %771, %c0_599] : memref<2x4x64x32xf32, #tpu.memory_space<vmem>>, vector<1x1x8x32xf32>
    %773 = vector.shape_cast %772 : vector<1x1x8x32xf32> to vector<8x32xf32>
    %c1_600 = arith.constant 1 : index
    %c0_601 = arith.constant 0 : index
    %c0_602 = arith.constant 0 : index
    %c0_603 = arith.constant 0 : index
    %774 = vector.load %arg3[%c1_600, %c0_601, %c0_602, %c0_603] : memref<2x4x32x32xf32, #tpu.memory_space<vmem>>, vector<1x1x32x32xf32>
    %775 = vector.shape_cast %774 : vector<1x1x32x32xf32> to vector<32x32xf32>
    %cst_604 = arith.constant dense<0.000000e+00> : vector<8x32xf32>
    %776 = tpu.matmul %707, %775, %cst_604 {dimension_numbers = #tpu.dot_dimension_numbers<[1], [0], [0], [1], [0, 0, 1, 1], [], []>} : vector<8x32xf32>, vector<32x32xf32>, vector<8x32xf32> -> vector<8x32xf32>
    %777 = arith.addf %764, %776 : vector<8x32xf32>
    %778 = arith.negf %777 : vector<8x32xf32>
    %779 = math.exp %778 : vector<8x32xf32>
    %cst_605 = arith.constant 1.000000e+00 : f32
    %780 = vector.broadcast %cst_605 : f32 to vector<8x32xf32>
    %781 = arith.addf %780, %779 : vector<8x32xf32>
    %782 = arith.divf %780, %781 : vector<8x32xf32>
    %c1_606 = arith.constant 1 : index
    %c1_607 = arith.constant 1 : index
    %c0_608 = arith.constant 0 : index
    %c0_609 = arith.constant 0 : index
    %783 = vector.load %arg3[%c1_606, %c1_607, %c0_608, %c0_609] : memref<2x4x32x32xf32, #tpu.memory_space<vmem>>, vector<1x1x32x32xf32>
    %784 = vector.shape_cast %783 : vector<1x1x32x32xf32> to vector<32x32xf32>
    %cst_610 = arith.constant dense<0.000000e+00> : vector<8x32xf32>
    %785 = tpu.matmul %707, %784, %cst_610 {dimension_numbers = #tpu.dot_dimension_numbers<[1], [0], [0], [1], [0, 0, 1, 1], [], []>} : vector<8x32xf32>, vector<32x32xf32>, vector<8x32xf32> -> vector<8x32xf32>
    %786 = arith.addf %767, %785 : vector<8x32xf32>
    %787 = arith.negf %786 : vector<8x32xf32>
    %788 = math.exp %787 : vector<8x32xf32>
    %cst_611 = arith.constant 1.000000e+00 : f32
    %789 = vector.broadcast %cst_611 : f32 to vector<8x32xf32>
    %790 = arith.addf %789, %788 : vector<8x32xf32>
    %791 = arith.divf %789, %790 : vector<8x32xf32>
    %c1_612 = arith.constant 1 : index
    %c2_613 = arith.constant 2 : index
    %c0_614 = arith.constant 0 : index
    %c0_615 = arith.constant 0 : index
    %792 = vector.load %arg3[%c1_612, %c2_613, %c0_614, %c0_615] : memref<2x4x32x32xf32, #tpu.memory_space<vmem>>, vector<1x1x32x32xf32>
    %793 = vector.shape_cast %792 : vector<1x1x32x32xf32> to vector<32x32xf32>
    %cst_616 = arith.constant dense<0.000000e+00> : vector<8x32xf32>
    %794 = tpu.matmul %707, %793, %cst_616 {dimension_numbers = #tpu.dot_dimension_numbers<[1], [0], [0], [1], [0, 0, 1, 1], [], []>} : vector<8x32xf32>, vector<32x32xf32>, vector<8x32xf32> -> vector<8x32xf32>
    %795 = arith.addf %770, %794 : vector<8x32xf32>
    %796 = math.tanh %795 : vector<8x32xf32>
    %c1_617 = arith.constant 1 : index
    %c3_618 = arith.constant 3 : index
    %c0_619 = arith.constant 0 : index
    %c0_620 = arith.constant 0 : index
    %797 = vector.load %arg3[%c1_617, %c3_618, %c0_619, %c0_620] : memref<2x4x32x32xf32, #tpu.memory_space<vmem>>, vector<1x1x32x32xf32>
    %798 = vector.shape_cast %797 : vector<1x1x32x32xf32> to vector<32x32xf32>
    %cst_621 = arith.constant dense<0.000000e+00> : vector<8x32xf32>
    %799 = tpu.matmul %707, %798, %cst_621 {dimension_numbers = #tpu.dot_dimension_numbers<[1], [0], [0], [1], [0, 0, 1, 1], [], []>} : vector<8x32xf32>, vector<32x32xf32>, vector<8x32xf32> -> vector<8x32xf32>
    %800 = arith.addf %773, %799 : vector<8x32xf32>
    %801 = arith.negf %800 : vector<8x32xf32>
    %802 = math.exp %801 : vector<8x32xf32>
    %cst_622 = arith.constant 1.000000e+00 : f32
    %803 = vector.broadcast %cst_622 : f32 to vector<8x32xf32>
    %804 = arith.addf %803, %802 : vector<8x32xf32>
    %805 = arith.divf %803, %804 : vector<8x32xf32>
    %806 = arith.mulf %791, %705 : vector<8x32xf32>
    %807 = arith.mulf %782, %796 : vector<8x32xf32>
    %808 = arith.addf %806, %807 : vector<8x32xf32>
    %809 = math.tanh %808 : vector<8x32xf32>
    %810 = arith.mulf %805, %809 : vector<8x32xf32>
    %c7_i32_623 = arith.constant 7 : i32
    %c8_i32_624 = arith.constant 8 : i32
    %811 = arith.muli %c7_i32_623, %c8_i32_624 : i32
    %812 = tpu.assume_multiple %811, 8 : i32
    %c0_625 = arith.constant 0 : index
    %c0_626 = arith.constant 0 : index
    %813 = arith.index_cast %812 : i32 to index
    %c0_627 = arith.constant 0 : index
    %814 = vector.load %arg12[%c0_625, %c0_626, %813, %c0_627] : memref<2x4x64x32xf32, #tpu.memory_space<vmem>>, vector<1x1x8x32xf32>
    %815 = vector.shape_cast %814 : vector<1x1x8x32xf32> to vector<8x32xf32>
    %c0_628 = arith.constant 0 : index
    %c1_629 = arith.constant 1 : index
    %816 = arith.index_cast %812 : i32 to index
    %c0_630 = arith.constant 0 : index
    %817 = vector.load %arg12[%c0_628, %c1_629, %816, %c0_630] : memref<2x4x64x32xf32, #tpu.memory_space<vmem>>, vector<1x1x8x32xf32>
    %818 = vector.shape_cast %817 : vector<1x1x8x32xf32> to vector<8x32xf32>
    %c0_631 = arith.constant 0 : index
    %c2_632 = arith.constant 2 : index
    %819 = arith.index_cast %812 : i32 to index
    %c0_633 = arith.constant 0 : index
    %820 = vector.load %arg12[%c0_631, %c2_632, %819, %c0_633] : memref<2x4x64x32xf32, #tpu.memory_space<vmem>>, vector<1x1x8x32xf32>
    %821 = vector.shape_cast %820 : vector<1x1x8x32xf32> to vector<8x32xf32>
    %c0_634 = arith.constant 0 : index
    %c3_635 = arith.constant 3 : index
    %822 = arith.index_cast %812 : i32 to index
    %c0_636 = arith.constant 0 : index
    %823 = vector.load %arg12[%c0_634, %c3_635, %822, %c0_636] : memref<2x4x64x32xf32, #tpu.memory_space<vmem>>, vector<1x1x8x32xf32>
    %824 = vector.shape_cast %823 : vector<1x1x8x32xf32> to vector<8x32xf32>
    %c0_637 = arith.constant 0 : index
    %c0_638 = arith.constant 0 : index
    %c0_639 = arith.constant 0 : index
    %c0_640 = arith.constant 0 : index
    %825 = vector.load %arg3[%c0_637, %c0_638, %c0_639, %c0_640] : memref<2x4x32x32xf32, #tpu.memory_space<vmem>>, vector<1x1x32x32xf32>
    %826 = vector.shape_cast %825 : vector<1x1x32x32xf32> to vector<32x32xf32>
    %cst_641 = arith.constant dense<0.000000e+00> : vector<8x32xf32>
    %827 = tpu.matmul %758, %826, %cst_641 {dimension_numbers = #tpu.dot_dimension_numbers<[1], [0], [0], [1], [0, 0, 1, 1], [], []>} : vector<8x32xf32>, vector<32x32xf32>, vector<8x32xf32> -> vector<8x32xf32>
    %828 = arith.addf %815, %827 : vector<8x32xf32>
    %829 = arith.negf %828 : vector<8x32xf32>
    %830 = math.exp %829 : vector<8x32xf32>
    %cst_642 = arith.constant 1.000000e+00 : f32
    %831 = vector.broadcast %cst_642 : f32 to vector<8x32xf32>
    %832 = arith.addf %831, %830 : vector<8x32xf32>
    %833 = arith.divf %831, %832 : vector<8x32xf32>
    %c0_643 = arith.constant 0 : index
    %c1_644 = arith.constant 1 : index
    %c0_645 = arith.constant 0 : index
    %c0_646 = arith.constant 0 : index
    %834 = vector.load %arg3[%c0_643, %c1_644, %c0_645, %c0_646] : memref<2x4x32x32xf32, #tpu.memory_space<vmem>>, vector<1x1x32x32xf32>
    %835 = vector.shape_cast %834 : vector<1x1x32x32xf32> to vector<32x32xf32>
    %cst_647 = arith.constant dense<0.000000e+00> : vector<8x32xf32>
    %836 = tpu.matmul %758, %835, %cst_647 {dimension_numbers = #tpu.dot_dimension_numbers<[1], [0], [0], [1], [0, 0, 1, 1], [], []>} : vector<8x32xf32>, vector<32x32xf32>, vector<8x32xf32> -> vector<8x32xf32>
    %837 = arith.addf %818, %836 : vector<8x32xf32>
    %838 = arith.negf %837 : vector<8x32xf32>
    %839 = math.exp %838 : vector<8x32xf32>
    %cst_648 = arith.constant 1.000000e+00 : f32
    %840 = vector.broadcast %cst_648 : f32 to vector<8x32xf32>
    %841 = arith.addf %840, %839 : vector<8x32xf32>
    %842 = arith.divf %840, %841 : vector<8x32xf32>
    %c0_649 = arith.constant 0 : index
    %c2_650 = arith.constant 2 : index
    %c0_651 = arith.constant 0 : index
    %c0_652 = arith.constant 0 : index
    %843 = vector.load %arg3[%c0_649, %c2_650, %c0_651, %c0_652] : memref<2x4x32x32xf32, #tpu.memory_space<vmem>>, vector<1x1x32x32xf32>
    %844 = vector.shape_cast %843 : vector<1x1x32x32xf32> to vector<32x32xf32>
    %cst_653 = arith.constant dense<0.000000e+00> : vector<8x32xf32>
    %845 = tpu.matmul %758, %844, %cst_653 {dimension_numbers = #tpu.dot_dimension_numbers<[1], [0], [0], [1], [0, 0, 1, 1], [], []>} : vector<8x32xf32>, vector<32x32xf32>, vector<8x32xf32> -> vector<8x32xf32>
    %846 = arith.addf %821, %845 : vector<8x32xf32>
    %847 = math.tanh %846 : vector<8x32xf32>
    %c0_654 = arith.constant 0 : index
    %c3_655 = arith.constant 3 : index
    %c0_656 = arith.constant 0 : index
    %c0_657 = arith.constant 0 : index
    %848 = vector.load %arg3[%c0_654, %c3_655, %c0_656, %c0_657] : memref<2x4x32x32xf32, #tpu.memory_space<vmem>>, vector<1x1x32x32xf32>
    %849 = vector.shape_cast %848 : vector<1x1x32x32xf32> to vector<32x32xf32>
    %cst_658 = arith.constant dense<0.000000e+00> : vector<8x32xf32>
    %850 = tpu.matmul %758, %849, %cst_658 {dimension_numbers = #tpu.dot_dimension_numbers<[1], [0], [0], [1], [0, 0, 1, 1], [], []>} : vector<8x32xf32>, vector<32x32xf32>, vector<8x32xf32> -> vector<8x32xf32>
    %851 = arith.addf %824, %850 : vector<8x32xf32>
    %852 = arith.negf %851 : vector<8x32xf32>
    %853 = math.exp %852 : vector<8x32xf32>
    %cst_659 = arith.constant 1.000000e+00 : f32
    %854 = vector.broadcast %cst_659 : f32 to vector<8x32xf32>
    %855 = arith.addf %854, %853 : vector<8x32xf32>
    %856 = arith.divf %854, %855 : vector<8x32xf32>
    %857 = arith.mulf %842, %756 : vector<8x32xf32>
    %858 = arith.mulf %833, %847 : vector<8x32xf32>
    %859 = arith.addf %857, %858 : vector<8x32xf32>
    %860 = math.tanh %859 : vector<8x32xf32>
    %861 = arith.mulf %856, %860 : vector<8x32xf32>
    %c7_i32_660 = arith.constant 7 : i32
    %862 = arith.subi %c7_i32_660, %c7_i32_623 : i32
    %c8_i32_661 = arith.constant 8 : i32
    %863 = arith.muli %862, %c8_i32_661 : i32
    %864 = tpu.assume_multiple %863, 8 : i32
    %c1_662 = arith.constant 1 : index
    %c0_663 = arith.constant 0 : index
    %865 = arith.index_cast %864 : i32 to index
    %c0_664 = arith.constant 0 : index
    %866 = vector.load %arg12[%c1_662, %c0_663, %865, %c0_664] : memref<2x4x64x32xf32, #tpu.memory_space<vmem>>, vector<1x1x8x32xf32>
    %867 = vector.shape_cast %866 : vector<1x1x8x32xf32> to vector<8x32xf32>
    %c1_665 = arith.constant 1 : index
    %c1_666 = arith.constant 1 : index
    %868 = arith.index_cast %864 : i32 to index
    %c0_667 = arith.constant 0 : index
    %869 = vector.load %arg12[%c1_665, %c1_666, %868, %c0_667] : memref<2x4x64x32xf32, #tpu.memory_space<vmem>>, vector<1x1x8x32xf32>
    %870 = vector.shape_cast %869 : vector<1x1x8x32xf32> to vector<8x32xf32>
    %c1_668 = arith.constant 1 : index
    %c2_669 = arith.constant 2 : index
    %871 = arith.index_cast %864 : i32 to index
    %c0_670 = arith.constant 0 : index
    %872 = vector.load %arg12[%c1_668, %c2_669, %871, %c0_670] : memref<2x4x64x32xf32, #tpu.memory_space<vmem>>, vector<1x1x8x32xf32>
    %873 = vector.shape_cast %872 : vector<1x1x8x32xf32> to vector<8x32xf32>
    %c1_671 = arith.constant 1 : index
    %c3_672 = arith.constant 3 : index
    %874 = arith.index_cast %864 : i32 to index
    %c0_673 = arith.constant 0 : index
    %875 = vector.load %arg12[%c1_671, %c3_672, %874, %c0_673] : memref<2x4x64x32xf32, #tpu.memory_space<vmem>>, vector<1x1x8x32xf32>
    %876 = vector.shape_cast %875 : vector<1x1x8x32xf32> to vector<8x32xf32>
    %c1_674 = arith.constant 1 : index
    %c0_675 = arith.constant 0 : index
    %c0_676 = arith.constant 0 : index
    %c0_677 = arith.constant 0 : index
    %877 = vector.load %arg3[%c1_674, %c0_675, %c0_676, %c0_677] : memref<2x4x32x32xf32, #tpu.memory_space<vmem>>, vector<1x1x32x32xf32>
    %878 = vector.shape_cast %877 : vector<1x1x32x32xf32> to vector<32x32xf32>
    %cst_678 = arith.constant dense<0.000000e+00> : vector<8x32xf32>
    %879 = tpu.matmul %810, %878, %cst_678 {dimension_numbers = #tpu.dot_dimension_numbers<[1], [0], [0], [1], [0, 0, 1, 1], [], []>} : vector<8x32xf32>, vector<32x32xf32>, vector<8x32xf32> -> vector<8x32xf32>
    %880 = arith.addf %867, %879 : vector<8x32xf32>
    %881 = arith.negf %880 : vector<8x32xf32>
    %882 = math.exp %881 : vector<8x32xf32>
    %cst_679 = arith.constant 1.000000e+00 : f32
    %883 = vector.broadcast %cst_679 : f32 to vector<8x32xf32>
    %884 = arith.addf %883, %882 : vector<8x32xf32>
    %885 = arith.divf %883, %884 : vector<8x32xf32>
    %c1_680 = arith.constant 1 : index
    %c1_681 = arith.constant 1 : index
    %c0_682 = arith.constant 0 : index
    %c0_683 = arith.constant 0 : index
    %886 = vector.load %arg3[%c1_680, %c1_681, %c0_682, %c0_683] : memref<2x4x32x32xf32, #tpu.memory_space<vmem>>, vector<1x1x32x32xf32>
    %887 = vector.shape_cast %886 : vector<1x1x32x32xf32> to vector<32x32xf32>
    %cst_684 = arith.constant dense<0.000000e+00> : vector<8x32xf32>
    %888 = tpu.matmul %810, %887, %cst_684 {dimension_numbers = #tpu.dot_dimension_numbers<[1], [0], [0], [1], [0, 0, 1, 1], [], []>} : vector<8x32xf32>, vector<32x32xf32>, vector<8x32xf32> -> vector<8x32xf32>
    %889 = arith.addf %870, %888 : vector<8x32xf32>
    %890 = arith.negf %889 : vector<8x32xf32>
    %891 = math.exp %890 : vector<8x32xf32>
    %cst_685 = arith.constant 1.000000e+00 : f32
    %892 = vector.broadcast %cst_685 : f32 to vector<8x32xf32>
    %893 = arith.addf %892, %891 : vector<8x32xf32>
    %894 = arith.divf %892, %893 : vector<8x32xf32>
    %c1_686 = arith.constant 1 : index
    %c2_687 = arith.constant 2 : index
    %c0_688 = arith.constant 0 : index
    %c0_689 = arith.constant 0 : index
    %895 = vector.load %arg3[%c1_686, %c2_687, %c0_688, %c0_689] : memref<2x4x32x32xf32, #tpu.memory_space<vmem>>, vector<1x1x32x32xf32>
    %896 = vector.shape_cast %895 : vector<1x1x32x32xf32> to vector<32x32xf32>
    %cst_690 = arith.constant dense<0.000000e+00> : vector<8x32xf32>
    %897 = tpu.matmul %810, %896, %cst_690 {dimension_numbers = #tpu.dot_dimension_numbers<[1], [0], [0], [1], [0, 0, 1, 1], [], []>} : vector<8x32xf32>, vector<32x32xf32>, vector<8x32xf32> -> vector<8x32xf32>
    %898 = arith.addf %873, %897 : vector<8x32xf32>
    %899 = math.tanh %898 : vector<8x32xf32>
    %c1_691 = arith.constant 1 : index
    %c3_692 = arith.constant 3 : index
    %c0_693 = arith.constant 0 : index
    %c0_694 = arith.constant 0 : index
    %900 = vector.load %arg3[%c1_691, %c3_692, %c0_693, %c0_694] : memref<2x4x32x32xf32, #tpu.memory_space<vmem>>, vector<1x1x32x32xf32>
    %901 = vector.shape_cast %900 : vector<1x1x32x32xf32> to vector<32x32xf32>
    %cst_695 = arith.constant dense<0.000000e+00> : vector<8x32xf32>
    %902 = tpu.matmul %810, %901, %cst_695 {dimension_numbers = #tpu.dot_dimension_numbers<[1], [0], [0], [1], [0, 0, 1, 1], [], []>} : vector<8x32xf32>, vector<32x32xf32>, vector<8x32xf32> -> vector<8x32xf32>
    %903 = arith.addf %876, %902 : vector<8x32xf32>
    %904 = arith.negf %903 : vector<8x32xf32>
    %905 = math.exp %904 : vector<8x32xf32>
    %cst_696 = arith.constant 1.000000e+00 : f32
    %906 = vector.broadcast %cst_696 : f32 to vector<8x32xf32>
    %907 = arith.addf %906, %905 : vector<8x32xf32>
    %908 = arith.divf %906, %907 : vector<8x32xf32>
    %909 = arith.mulf %894, %808 : vector<8x32xf32>
    %910 = arith.mulf %885, %899 : vector<8x32xf32>
    %911 = arith.addf %909, %910 : vector<8x32xf32>
    %912 = math.tanh %911 : vector<8x32xf32>
    %913 = arith.mulf %908, %912 : vector<8x32xf32>
    %c8_i32_697 = arith.constant 8 : i32
    %c0_698 = arith.constant 0 : index
    %c0_699 = arith.constant 0 : index
    %c0_700 = arith.constant 0 : index
    %914 = vector.load %arg10[%c0_698, %c0_699, %c0_700] : memref<2x8x32xf32, #tpu.memory_space<vmem>>, vector<1x8x32xf32>
    %915 = vector.shape_cast %914 : vector<1x8x32xf32> to vector<8x32xf32>
    %916 = vector.shape_cast %861 : vector<8x32xf32> to vector<1x8x32xf32>
    tpu.vector_store %arg10[%c0_698, %c0_699, %c0_700], %916 {strides = array<i32>} : memref<2x8x32xf32, #tpu.memory_space<vmem>>, vector<1x8x32xf32>,
    %c1_701 = arith.constant 1 : index
    %c0_702 = arith.constant 0 : index
    %c0_703 = arith.constant 0 : index
    %917 = vector.load %arg10[%c1_701, %c0_702, %c0_703] : memref<2x8x32xf32, #tpu.memory_space<vmem>>, vector<1x8x32xf32>
    %918 = vector.shape_cast %917 : vector<1x8x32xf32> to vector<8x32xf32>
    %919 = vector.shape_cast %913 : vector<8x32xf32> to vector<1x8x32xf32>
    tpu.vector_store %arg10[%c1_701, %c0_702, %c0_703], %919 {strides = array<i32>} : memref<2x8x32xf32, #tpu.memory_space<vmem>>, vector<1x8x32xf32>,
    %c0_704 = arith.constant 0 : index
    %c0_705 = arith.constant 0 : index
    %c0_706 = arith.constant 0 : index
    %920 = vector.load %arg11[%c0_704, %c0_705, %c0_706] : memref<2x8x32xf32, #tpu.memory_space<vmem>>, vector<1x8x32xf32>
    %921 = vector.shape_cast %920 : vector<1x8x32xf32> to vector<8x32xf32>
    %922 = vector.shape_cast %859 : vector<8x32xf32> to vector<1x8x32xf32>
    tpu.vector_store %arg11[%c0_704, %c0_705, %c0_706], %922 {strides = array<i32>} : memref<2x8x32xf32, #tpu.memory_space<vmem>>, vector<1x8x32xf32>,
    %c1_707 = arith.constant 1 : index
    %c0_708 = arith.constant 0 : index
    %c0_709 = arith.constant 0 : index
    %923 = vector.load %arg11[%c1_707, %c0_708, %c0_709] : memref<2x8x32xf32, #tpu.memory_space<vmem>>, vector<1x8x32xf32>
    %924 = vector.shape_cast %923 : vector<1x8x32xf32> to vector<8x32xf32>
    %925 = vector.shape_cast %911 : vector<8x32xf32> to vector<1x8x32xf32>
    tpu.vector_store %arg11[%c1_707, %c0_708, %c0_709], %925 {strides = array<i32>} : memref<2x8x32xf32, #tpu.memory_space<vmem>>, vector<1x8x32xf32>,
    %c0_710 = arith.constant 0 : index
    %c0_711 = arith.constant 0 : index
    %c0_712 = arith.constant 0 : index
    %926 = vector.load %arg7[%c0_710, %c0_711, %c0_712] : memref<2x32x4xf32, #tpu.memory_space<vmem>>, vector<1x32x4xf32>
    %927 = vector.shape_cast %926 : vector<1x32x4xf32> to vector<32x4xf32>
    %cst_713 = arith.constant dense<0.000000e+00> : vector<8x4xf32>
    %928 = tpu.matmul %861, %927, %cst_713 {dimension_numbers = #tpu.dot_dimension_numbers<[1], [0], [0], [1], [0, 0, 1, 1], [], []>} : vector<8x32xf32>, vector<32x4xf32>, vector<8x4xf32> -> vector<8x4xf32>
    %c1_714 = arith.constant 1 : index
    %c0_715 = arith.constant 0 : index
    %c0_716 = arith.constant 0 : index
    %929 = vector.load %arg7[%c1_714, %c0_715, %c0_716] : memref<2x32x4xf32, #tpu.memory_space<vmem>>, vector<1x32x4xf32>
    %930 = vector.shape_cast %929 : vector<1x32x4xf32> to vector<32x4xf32>
    %cst_717 = arith.constant dense<0.000000e+00> : vector<8x4xf32>
    %931 = tpu.matmul %913, %930, %cst_717 {dimension_numbers = #tpu.dot_dimension_numbers<[1], [0], [0], [1], [0, 0, 1, 1], [], []>} : vector<8x32xf32>, vector<32x4xf32>, vector<8x4xf32> -> vector<8x4xf32>
    %932 = arith.addf %928, %931 : vector<8x4xf32>
    %c0_718 = arith.constant 0 : index
    %c0_719 = arith.constant 0 : index
    %933 = vector.load %arg8[%c0_718, %c0_719] : memref<1x4xf32, #tpu.memory_space<vmem>>, vector<1x4xf32>
    %934 = vector.broadcast %933 : vector<1x4xf32> to vector<8x4xf32>
    %935 = arith.addf %932, %934 : vector<8x4xf32>
    %c0_720 = arith.constant 0 : index
    %c0_721 = arith.constant 0 : index
    %936 = vector.load %arg9[%c0_720, %c0_721] : memref<8x4xf32, #tpu.memory_space<vmem>>, vector<8x4xf32>
    tpu.vector_store %arg9[%c0_720, %c0_721], %935 {strides = array<i32>} : memref<8x4xf32, #tpu.memory_space<vmem>>, vector<8x4xf32>,
    return
  }
  func.func @transform_0(%arg0: i32) -> (i32, i32, i32) {
    %c0_i32 = arith.constant 0 : i32
    %c0_i32_0 = arith.constant 0 : i32
    %c0_i32_1 = arith.constant 0 : i32
    return %arg0, %c0_i32, %c0_i32_0 : i32, i32, i32
  }
  func.func @transform_1(%arg0: i32) -> (i32, i32, i32, i32) {
    %c0_i32 = arith.constant 0 : i32
    %c0_i32_0 = arith.constant 0 : i32
    %c0_i32_1 = arith.constant 0 : i32
    %c0_i32_2 = arith.constant 0 : i32
    %c0_i32_3 = arith.constant 0 : i32
    return %c0_i32, %c0_i32_0, %c0_i32_1, %c0_i32_2 : i32, i32, i32, i32
  }
  func.func @transform_2(%arg0: i32) -> (i32, i32, i32, i32) {
    %c0_i32 = arith.constant 0 : i32
    %c0_i32_0 = arith.constant 0 : i32
    %c0_i32_1 = arith.constant 0 : i32
    %c0_i32_2 = arith.constant 0 : i32
    %c0_i32_3 = arith.constant 0 : i32
    return %c0_i32, %c0_i32_0, %c0_i32_1, %c0_i32_2 : i32, i32, i32, i32
  }
  func.func @transform_3(%arg0: i32) -> (i32, i32, i32, i32) {
    %c0_i32 = arith.constant 0 : i32
    %c0_i32_0 = arith.constant 0 : i32
    %c0_i32_1 = arith.constant 0 : i32
    %c0_i32_2 = arith.constant 0 : i32
    %c0_i32_3 = arith.constant 0 : i32
    return %c0_i32, %c0_i32_0, %c0_i32_1, %c0_i32_2 : i32, i32, i32, i32
  }
  func.func @transform_4(%arg0: i32) -> (i32, i32, i32) {
    %c0_i32 = arith.constant 0 : i32
    %c0_i32_0 = arith.constant 0 : i32
    %c0_i32_1 = arith.constant 0 : i32
    return %c0_i32, %arg0, %c0_i32_0 : i32, i32, i32
  }
  func.func @transform_5(%arg0: i32) -> (i32, i32, i32) {
    %c0_i32 = arith.constant 0 : i32
    %c0_i32_0 = arith.constant 0 : i32
    %c0_i32_1 = arith.constant 0 : i32
    return %c0_i32, %arg0, %c0_i32_0 : i32, i32, i32
  }
  func.func @transform_6(%arg0: i32) -> (i32, i32, i32) {
    %c0_i32 = arith.constant 0 : i32
    %c0_i32_0 = arith.constant 0 : i32
    %c0_i32_1 = arith.constant 0 : i32
    %c0_i32_2 = arith.constant 0 : i32
    return %c0_i32, %c0_i32_0, %c0_i32_1 : i32, i32, i32
  }
  func.func @transform_7(%arg0: i32) -> (i32, i32) {
    %c0_i32 = arith.constant 0 : i32
    %c0_i32_0 = arith.constant 0 : i32
    %c0_i32_1 = arith.constant 0 : i32
    return %c0_i32, %c0_i32_0 : i32, i32
  }
  func.func @transform_8(%arg0: i32) -> (i32, i32) {
    %c0_i32 = arith.constant 0 : i32
    %c0_i32_0 = arith.constant 0 : i32
    return %arg0, %c0_i32 : i32, i32
  }
  func.func @transform_9(%arg0: i32) -> (i32, i32, i32) {
    %c0_i32 = arith.constant 0 : i32
    %c0_i32_0 = arith.constant 0 : i32
    %c0_i32_1 = arith.constant 0 : i32
    return %c0_i32, %arg0, %c0_i32_0 : i32, i32, i32
  }
  func.func @transform_10(%arg0: i32) -> (i32, i32, i32) {
    %c0_i32 = arith.constant 0 : i32
    %c0_i32_0 = arith.constant 0 : i32
    %c0_i32_1 = arith.constant 0 : i32
    return %c0_i32, %arg0, %c0_i32_0 : i32, i32, i32
  }
}

</mosaic_0001>

<bundles_post_ra>
// kernel: tpu_custom_call.1
= control target key start
LH: loop header
LB: loop body
LE: loop exit
PB: predicated region body
PF: predicated region fallthrough
CT: control target
= control target key end

     0   :  { %16 = vsyncpa [#allocation4], 0  ;;  %s9776_s0 = inlined_call_operand.vmem [shape: f32[1,64,4], index: 0, kind: input, shape index: {}]   ;;  %s9777_s1 = inlined_call_operand.vmem [shape: f32[2,4,4,32], index: 1, kind: input, shape index: {}]   ;;  %s9778_s2 = inlined_call_operand.hbm [shape: f32[2,4,32,32], index: 2, kind: input, shape index: {}]   ;;  %s9779_s3 = inlined_call_operand.vmem [shape: f32[2,4,1,32], index: 3, kind: input, shape index: {}]   ;;  %s9780_s4 = inlined_call_operand.vmem [shape: f32[2,8,32], index: 4, kind: input, shape index: {}]   ;;  %s9781_s5 = inlined_call_operand.vmem [shape: f32[2,8,32], index: 5, kind: input, shape index: {}]   ;;  %s9782_s6 = inlined_call_operand.vmem [shape: f32[2,32,4], index: 6, kind: input, shape index: {}]   ;;  %s9783_s7 = inlined_call_operand.vmem [shape: f32[1,4], index: 7, kind: input, shape index: {}]   ;;  %s9784_s8 = inlined_call_operand.vmem [shape: f32[8,4], index: 8, kind: output, shape index: {0}]   ;;  %s9785_s9 = inlined_call_operand.hbm [shape: f32[2,8,32], index: 9, kind: output, shape index: {1}]   ;;  %s9786_s10 = inlined_call_operand.hbm [shape: f32[2,8,32], index: 10, kind: output, shape index: {2}]  }
   0x1   :  { %17 = vsyncpa [#allocation5], 0 }
   0x2   :  { %18 = vsyncpa [#allocation8], 0  ;;  %s8411_s13 = smov [#allocation3]  }
   0x3   :  { %s28_s14 = sshll.u32 %s8411_s13, 4  ;;  %s29_s14 = int_to_ptr.vmem [resolvable:$true] %s28_s14 }
   0x4   :  { %s8353_s15 = scalar_lea.vmem %s29_s14, 4096  ;;  %p8358_p1 = scmp.lt.s32.totalorder %s29_s14, %s29_s14 }
   0x5   :  { %p8354_p0 = scmp.ne.s32.totalorder %s29_s14, %s8353_s15  ;;  %p8359_p2 = scmp.lt.s32.totalorder %s8353_s15, %s8353_s15 }
   0x7   :  { %p8360_p3 = por %p8359_p2, %p8358_p1 }
   0x9   :  { %p8361_p4 = pnand %p8360_p3, %p8354_p0 }
   0xb   :  { %8364 = shalt.err (!%p8361_p4)
}
   0xc   :  { %s8412_s16 = smov 128   ;;  %s8413_s17 = smov 8  }
   0xd   :  { %34 = dma.hbm_to_vmem [thread:$0]  %s9778_s2, 4096, %s29_s14, [#allocation4], %s8412_s16, %s8412_s16, %s8413_s17  }
   0xe   :  { %8405 = dma.done.wait [#allocation4], 4096  }
   0xf   :  { %8406 = vsyncadd [#allocation4], 4294963200  ;;  %vm89_vm0 = vcmask 1043456   ;;  %vm64_vm1 = vcmask 31744   ;;  %v56_v0 = vld [vmem:[%s9777_s1] sm:$0xf] }
  0x10   :  { %v6573_v1 = vld [vmem:[%s9777_s1 + $0x4] sm:$0xf]  ;;  %7180 = vmatprep.subr.msk.mxu0 %vm89_vm0, %v56_v0  ;;  %v8495_v3 = vld [vmem:[%s9776_s0 + $0x8] sm:$0xff]  ;;  %v8516_v6 = vld [vmem:[%s9776_s0 + $0x10] sm:$0xff]  ;;  %v8414_v16 = vmov 0.0   ;;  %vm198_vm2 = vcmask 261120  }
  0x11   :  { %v8488_v2 = vld [vmem:[%s9776_s0] sm:$0xff]  ;;  %7194 = vmatprep.subr.msk.mxu1 %vm89_vm0, %v6573_v1  ;;  %7181 = vmatpush3.msk.msra.mxu0 %vm89_vm0, %v56_v0  ;;  %v6585_v4 = vld [vmem:[%s9777_s1 + $0x8] sm:$0xf]  ;;  %v6597_v5 = vld [vmem:[%s9777_s1 + $0xc] sm:$0xf]  ;;  %vm8415_vm3 = vmmov 0  }
  0x12   :  { %7182 = vmatprep.mubr.msk.f32.mxu0 %vm64_vm1, %v8488_v2  ;;  %7195 = vmatpush3.msk.msra.mxu1 %vm89_vm0, %v6573_v1  ;;  %v8523_v7 = vld [vmem:[%s9776_s0 + $0x18] sm:$0xff]  ;;  %v8530_v8 = vld [vmem:[%s9776_s0 + $0x20] sm:$0xff]  ;;  %v6609_v9 = vld [vmem:[%s9777_s1 + $0x10] sm:$0xf]  ;;  %s8417_s27 = smov [#allocation7]  }
  0x13   :  { %7196 = vmatprep.mubr.msk.f32.mxu1 %vm64_vm1, %v8488_v2  ;;  %7183 = vmatmul.mubr.msk.f32.vlgmr.msra.gmra.mxu0 %vm64_vm1, %v8495_v3  ;;  %v6621_v10 = vld [vmem:[%s9777_s1 + $0x14] sm:$0xf]  ;;  %v8553_v11 = vld [vmem:[%s9776_s0 + $0x28] sm:$0xff]  ;;  %v8573_v13 = vld [vmem:[%s9776_s0 + $0x38] sm:$0xff] }
  0x14   :  { %7197 = vmatmul.mubr.msk.f32.vlgmr.msra.gmra.mxu1 %vm64_vm1, %v8495_v3  ;;  %7208 = vmatprep.subr.msk.mxu0 %vm89_vm0, %v6585_v4  ;;  %v8558_v12 = vld [vmem:[%s9776_s0 + $0x30] sm:$0xff]  ;;  %v6633_v14 = vld [vmem:[%s9777_s1 + $0x18] sm:$0xf]  ;;  %v6645_v15 = vld [vmem:[%s9777_s1 + $0x1c] sm:$0xf]  ;;  %s6489_s0 = sshll.u32 %s8417_s27, 4  ;;  %s6490_s0 = int_to_ptr.vmem [resolvable:$true] %s6489_s0 }
  0x15   :  { %7222 = vmatprep.subr.msk.mxu1 %vm89_vm0, %v6597_v5  ;;  %7209 = vmatpush3.msk.msra.mxu0 %vm89_vm0, %v6585_v4  ;;  %v8661_v17 = vld [vmem:[#allocation3 + $0x18] sm:$0xff]  ;;  %v8675_v19 = vld [vmem:[#allocation3 + $0x10] sm:$0xff]  ;;  %v8691_v21 = vld [vmem:[#allocation3 + $0x8] sm:$0xff] }
  0x16   :  { %7223 = vmatpush3.msk.msra.mxu1 %vm89_vm0, %v6597_v5  ;;  %7185 = vmatprep.mubr.msk.f32.mxu0 %vm64_vm1, %v8516_v6  ;;  %v8663_v18 = vld [vmem:[#allocation3 + $0x38] sm:$0xff]  ;;  %v8677_v20 = vld [vmem:[#allocation3 + $0x30] sm:$0xff]  ;;  %v8693_v22 = vld [vmem:[#allocation3 + $0x28] sm:$0xff] }
  0x17   :  { %7199 = vmatprep.mubr.msk.f32.mxu1 %vm64_vm1, %v8516_v6  ;;  %7186 = vmatmul.mubr.msk.f32.gmra.mxu0 %vm64_vm1, %v8523_v7  ;;  %v8707_v23 = vld [vmem:[#allocation3] sm:$0xff]  ;;  %v8726_v26 = vld [vmem:[#allocation3 + $0x58] sm:$0xff]  ;;  %v8734_v28 = vld [vmem:[#allocation3 + $0x50] sm:$0xff] }
  0x18   :  { %7200 = vmatmul.mubr.msk.f32.gmra.mxu1 %vm64_vm1, %v8523_v7  ;;  %7188 = vmatprep.mubr.msk.f32.mxu0 %vm64_vm1, %v8530_v8  ;;  %v8709_v24 = vld [vmem:[#allocation3 + $0x20] sm:$0xff]  ;;  %v8728_v27 = vld [vmem:[#allocation3 + $0x78] sm:$0xff]  ;;  %v8736_v29 = vld [vmem:[#allocation3 + $0x70] sm:$0xff] }
  0x19   :  { %7202 = vmatprep.mubr.msk.f32.mxu1 %vm64_vm1, %v8530_v8  ;;  %7236 = vmatprep.subr.msk.mxu0 %vm89_vm0, %v6609_v9  ;;  %v1096_v25 = vld [vmem:[%s9780_s4] sm:$0xff]  ;;  %v8742_v30 = vld [vmem:[#allocation3 + $0x48] sm:$0xff]  ;;  %v8764_v34 = vld [vmem:[#allocation3 + $0x98] sm:$0xff] }
  0x1a   :  { %7250 = vmatprep.subr.msk.mxu1 %vm89_vm0, %v6621_v10  ;;  %v8744_v31 = vld [vmem:[#allocation3 + $0x68] sm:$0xff]  ;;  %v8750_v32 = vld [vmem:[#allocation3 + $0x40] sm:$0xff]  ;;  %v8766_v35 = vld [vmem:[#allocation3 + $0xb8] sm:$0xff] }
  0x1b   :  { %7189 = vmatmul.mubr.msk.f32.gmra.mxu0 %vm64_vm1, %v8553_v11  ;;  %v8754_v33 = vld [vmem:[#allocation3 + $0x60] sm:$0xff]  ;;  %v8772_v36 = vld [vmem:[#allocation3 + $0x90] sm:$0xff]  ;;  %v8780_v38 = vld [vmem:[#allocation3 + $0x88] sm:$0xff] }
  0x1c   :  { %7203 = vmatmul.mubr.msk.f32.gmra.mxu1 %vm64_vm1, %v8553_v11  ;;  %7191 = vmatprep.mubr.msk.f32.mxu0 %vm64_vm1, %v8558_v12  ;;  %v8774_v37 = vld [vmem:[#allocation3 + $0xb0] sm:$0xff]  ;;  %v8782_v39 = vld [vmem:[#allocation3 + $0xa8] sm:$0xff]  ;;  %v8788_v40 = vld [vmem:[#allocation3 + $0x80] sm:$0xff] }
  0x1d   :  { %7205 = vmatprep.mubr.msk.f32.mxu1 %vm64_vm1, %v8558_v12  ;;  %v8792_v41 = vld [vmem:[#allocation3 + $0xa0] sm:$0xff]  ;;  %v6657_v42 = vld [vmem:[%s9780_s4 + $0x8] sm:$0xff]  ;;  %v8805_v43 = vld [vmem:[#allocation3 + $0xd8] sm:$0xff] }
  0x1e   :  { %v8807_v44 = vld [vmem:[#allocation3 + $0xf8] sm:$0xff]  ;;  %v8813_v45 = vld [vmem:[#allocation3 + $0xd0] sm:$0xff]  ;;  %v8821_v47 = vld [vmem:[#allocation3 + $0xc8] sm:$0xff] }
  0x1f   :  { %7192 = vmatmul.mubr.msk.f32.gmra.mxu0 %vm64_vm1, %v8573_v13  ;;  %v8815_v46 = vld [vmem:[#allocation3 + $0xf0] sm:$0xff]  ;;  %v8823_v48 = vld [vmem:[#allocation3 + $0xe8] sm:$0xff]  ;;  %v8829_v49 = vld [vmem:[#allocation3 + $0xc0] sm:$0xff] }
  0x20   :  { %7206 = vmatmul.mubr.msk.f32.gmra.mxu1 %vm64_vm1, %v8573_v13  ;;  %7210 = vmatprep.mubr.msk.f32.mxu0 %vm64_vm1, %v8488_v2  ;;  %v8833_v50 = vld [vmem:[#allocation3 + $0xe0] sm:$0xff] }
  0x21   :  { %7224 = vmatprep.mubr.msk.f32.mxu1 %vm64_vm1, %v8488_v2  ;;  %v6563_v51 = vld [vmem:[%s9779_s3] ss:$0 sm:$0xff]  ;;  %v6575_v52 = vld [vmem:[%s9779_s3 + $0x1] ss:$0 sm:$0xff] }
  0x23   :  { %7211 = vmatmul.mubr.msk.f32.vlgmr.msra.gmra.mxu0 %vm64_vm1, %v8495_v3 }
  0x24   :  { %7225 = vmatmul.mubr.msk.f32.vlgmr.msra.gmra.mxu1 %vm64_vm1, %v8495_v3  ;;  %7237 = vmatpush3.msk.msra.mxu0 %vm89_vm0, %v6609_v9 }
  0x25   :  { %7251 = vmatpush3.msk.msra.mxu1 %vm89_vm0, %v6621_v10  ;;  %7213 = vmatprep.mubr.msk.f32.mxu0 %vm64_vm1, %v8516_v6 }
  0x26   :  { %7227 = vmatprep.mubr.msk.f32.mxu1 %vm64_vm1, %v8516_v6  ;;  %7264 = vmatprep.subr.msk.mxu0 %vm89_vm0, %v6633_v14 }
  0x27   :  { %7278 = vmatprep.subr.msk.mxu1 %vm89_vm0, %v6645_v15  ;;  %7214 = vmatmul.mubr.msk.f32.gmra.mxu0 %vm64_vm1, %v8523_v7 }
  0x28   :  { %7228 = vmatmul.mubr.msk.f32.gmra.mxu1 %vm64_vm1, %v8523_v7  ;;  %7216 = vmatprep.mubr.msk.f32.mxu0 %vm64_vm1, %v8530_v8 }
  0x29   :  { %7230 = vmatprep.mubr.msk.f32.mxu1 %vm64_vm1, %v8530_v8 }
  0x2b   :  { %7217 = vmatmul.mubr.msk.f32.gmra.mxu0 %vm64_vm1, %v8553_v11 }
  0x2c   :  { %7231 = vmatmul.mubr.msk.f32.gmra.mxu1 %vm64_vm1, %v8553_v11  ;;  %7219 = vmatprep.mubr.msk.f32.mxu0 %vm64_vm1, %v8558_v12 }
  0x2d   :  { %7233 = vmatprep.mubr.msk.f32.mxu1 %vm64_vm1, %v8558_v12 }
  0x2f   :  { %7220 = vmatmul.mubr.msk.f32.gmra.mxu0 %vm64_vm1, %v8573_v13 }
  0x30   :  { %7234 = vmatmul.mubr.msk.f32.gmra.mxu1 %vm64_vm1, %v8573_v13  ;;  %7238 = vmatprep.mubr.msk.f32.mxu0 %vm64_vm1, %v8488_v2 }
  0x31   :  { %7252 = vmatprep.mubr.msk.f32.mxu1 %vm64_vm1, %v8488_v2 }
  0x33   :  { %7239 = vmatmul.mubr.msk.f32.vlgmr.msra.gmra.mxu0 %vm64_vm1, %v8495_v3 }
  0x34   :  { %7253 = vmatmul.mubr.msk.f32.vlgmr.msra.gmra.mxu1 %vm64_vm1, %v8495_v3  ;;  %7265 = vmatpush3.msk.msra.mxu0 %vm89_vm0, %v6633_v14 }
  0x35   :  { %7279 = vmatpush3.msk.msra.mxu1 %vm89_vm0, %v6645_v15  ;;  %7241 = vmatprep.mubr.msk.f32.mxu0 %vm64_vm1, %v8516_v6 }
  0x36   :  { %7255 = vmatprep.mubr.msk.f32.mxu1 %vm64_vm1, %v8516_v6  ;;  %7292 = vmatprep.subr.mxu0 %v8414_v16 }
  0x37   :  { %7303 = vmatprep.subr.mxu1 %v8414_v16  ;;  %7242 = vmatmul.mubr.msk.f32.gmra.mxu0 %vm64_vm1, %v8523_v7 }
  0x38   :  { %7256 = vmatmul.mubr.msk.f32.gmra.mxu1 %vm64_vm1, %v8523_v7  ;;  %7244 = vmatprep.mubr.msk.f32.mxu0 %vm64_vm1, %v8530_v8 }
  0x39   :  { %7258 = vmatprep.mubr.msk.f32.mxu1 %vm64_vm1, %v8530_v8 }
  0x3b   :  { %7245 = vmatmul.mubr.msk.f32.gmra.mxu0 %vm64_vm1, %v8553_v11 }
  0x3c   :  { %7259 = vmatmul.mubr.msk.f32.gmra.mxu1 %vm64_vm1, %v8553_v11  ;;  %7247 = vmatprep.mubr.msk.f32.mxu0 %vm64_vm1, %v8558_v12 }
  0x3d   :  { %7261 = vmatprep.mubr.msk.f32.mxu1 %vm64_vm1, %v8558_v12 }
  0x3f   :  { %7248 = vmatmul.mubr.msk.f32.gmra.mxu0 %vm64_vm1, %v8573_v13 }
  0x40   :  { %7262 = vmatmul.mubr.msk.f32.gmra.mxu1 %vm64_vm1, %v8573_v13  ;;  %7266 = vmatprep.mubr.msk.f32.mxu0 %vm64_vm1, %v8488_v2 }
  0x41   :  { %7280 = vmatprep.mubr.msk.f32.mxu1 %vm64_vm1, %v8488_v2 }
  0x43   :  { %7267 = vmatmul.mubr.msk.f32.vlgmr.msra.gmra.mxu0 %vm64_vm1, %v8495_v3 }
  0x44   :  { %7281 = vmatmul.mubr.msk.f32.vlgmr.msra.gmra.mxu1 %vm64_vm1, %v8495_v3  ;;  %7293 = vmatpush3.msra.mxu0 %v8661_v17 }
  0x45   :  { %7304 = vmatpush3.msra.mxu1 %v8663_v18  ;;  %7269 = vmatprep.mubr.msk.f32.mxu0 %vm64_vm1, %v8516_v6 }
  0x46   :  { %7283 = vmatprep.mubr.msk.f32.mxu1 %vm64_vm1, %v8516_v6  ;;  %7294 = vmatprep.subr.mxu0 %v8414_v16 }
  0x47   :  { %7305 = vmatprep.subr.mxu1 %v8414_v16  ;;  %7270 = vmatmul.mubr.msk.f32.gmra.mxu0 %vm64_vm1, %v8523_v7 }
  0x48   :  { %7284 = vmatmul.mubr.msk.f32.gmra.mxu1 %vm64_vm1, %v8523_v7  ;;  %7295 = vmatpush3.msra.mxu0 %v8675_v19 }
  0x49   :  { %7306 = vmatpush3.msra.mxu1 %v8677_v20  ;;  %7272 = vmatprep.mubr.msk.f32.mxu0 %vm64_vm1, %v8530_v8 }
  0x4a   :  { %7286 = vmatprep.mubr.msk.f32.mxu1 %vm64_vm1, %v8530_v8  ;;  %7296 = vmatprep.subr.mxu0 %v8414_v16 }
  0x4b   :  { %7307 = vmatprep.subr.mxu1 %v8414_v16  ;;  %7273 = vmatmul.mubr.msk.f32.gmra.mxu0 %vm64_vm1, %v8553_v11 }
  0x4c   :  { %7287 = vmatmul.mubr.msk.f32.gmra.mxu1 %vm64_vm1, %v8553_v11  ;;  %7297 = vmatpush3.msra.mxu0 %v8691_v21 }
  0x4d   :  { %7308 = vmatpush3.msra.mxu1 %v8693_v22  ;;  %7275 = vmatprep.mubr.msk.f32.mxu0 %vm64_vm1, %v8558_v12 }
  0x4e   :  { %7289 = vmatprep.mubr.msk.f32.mxu1 %vm64_vm1, %v8558_v12  ;;  %7298 = vmatprep.subr.mxu0 %v8414_v16 }
  0x4f   :  { %7309 = vmatprep.subr.mxu1 %v8414_v16  ;;  %7276 = vmatmul.mubr.msk.f32.gmra.mxu0 %vm64_vm1, %v8573_v13 }
  0x50   :  { %7290 = vmatmul.mubr.msk.f32.gmra.mxu1 %vm64_vm1, %v8573_v13  ;;  %7299 = vmatpush3.msra.mxu0 %v8707_v23 }
  0x51   :  { %7310 = vmatpush3.msra.mxu1 %v8709_v24  ;;  %7300 = vmatprep.mubr.msk.f32.mxu0 %vm8415_vm3, %v8414_v16 }
  0x52   :  { %7311 = vmatprep.mubr.msk.f32.mxu1 %vm8415_vm3, %v8414_v16  ;;  %7314 = vmatprep.subr.mxu0 %v8414_v16 }
  0x53   :  { %7325 = vmatprep.subr.mxu1 %v8414_v16  ;;  %7301 = vmatmul.mubr.msk.f32.vlgmr.msra.gmra.mxu0 %vm198_vm2, %v1096_v25 }
  0x54   :  { %7312 = vmatmul.mubr.msk.f32.vlgmr.msra.gmra.mxu1 %vm198_vm2, %v1096_v25  ;;  %7315 = vmatpush3.msra.mxu0 %v8726_v26 }
  0x55   :  { %7326 = vmatpush3.msra.mxu1 %v8728_v27  ;;  %7316 = vmatprep.subr.mxu0 %v8414_v16 }
  0x56   :  { %7327 = vmatprep.subr.mxu1 %v8414_v16  ;;  %7317 = vmatpush3.msra.mxu0 %v8734_v28 }
  0x57   :  { %7328 = vmatpush3.msra.mxu1 %v8736_v29  ;;  %7318 = vmatprep.subr.mxu0 %v8414_v16 }
  0x58   :  { %7329 = vmatprep.subr.mxu1 %v8414_v16  ;;  %7319 = vmatpush3.msra.mxu0 %v8742_v30 }
  0x59   :  { %7330 = vmatpush3.msra.mxu1 %v8744_v31  ;;  %7320 = vmatprep.subr.mxu0 %v8414_v16 }
  0x5a   :  { %7331 = vmatprep.subr.mxu1 %v8414_v16  ;;  %7321 = vmatpush3.msra.mxu0 %v8750_v32 }
  0x5b   :  { %7322 = vmatprep.mubr.msk.f32.mxu0 %vm8415_vm3, %v8414_v16  ;;  %7332 = vmatpush3.msra.mxu1 %v8754_v33 }
  0x5c   :  { %7333 = vmatprep.mubr.msk.f32.mxu1 %vm8415_vm3, %v8414_v16  ;;  %7323 = vmatmul.mubr.msk.f32.vlgmr.msra.gmra.mxu0 %vm198_vm2, %v1096_v25 }
  0x5d   :  { %7334 = vmatmul.mubr.msk.f32.vlgmr.msra.gmra.mxu1 %vm198_vm2, %v1096_v25  ;;  %7336 = vmatprep.subr.mxu0 %v8414_v16 }
  0x5e   :  { %7347 = vmatprep.subr.mxu1 %v8414_v16  ;;  %7337 = vmatpush3.msra.mxu0 %v8764_v34 }
  0x5f   :  { %7348 = vmatpush3.msra.mxu1 %v8766_v35  ;;  %7338 = vmatprep.subr.mxu0 %v8414_v16 }
  0x60   :  { %7349 = vmatprep.subr.mxu1 %v8414_v16  ;;  %7339 = vmatpush3.msra.mxu0 %v8772_v36 }
  0x61   :  { %7350 = vmatpush3.msra.mxu1 %v8774_v37  ;;  %7340 = vmatprep.subr.mxu0 %v8414_v16 }
  0x62   :  { %7351 = vmatprep.subr.mxu1 %v8414_v16  ;;  %7341 = vmatpush3.msra.mxu0 %v8780_v38 }
  0x63   :  { %7352 = vmatpush3.msra.mxu1 %v8782_v39  ;;  %7342 = vmatprep.subr.mxu0 %v8414_v16 }
  0x64   :  { %7353 = vmatprep.subr.mxu1 %v8414_v16  ;;  %7343 = vmatpush3.msra.mxu0 %v8788_v40 }
  0x65   :  { %7344 = vmatprep.mubr.msk.f32.mxu0 %vm8415_vm3, %v8414_v16  ;;  %7354 = vmatpush3.msra.mxu1 %v8792_v41 }
  0x66   :  { %7355 = vmatprep.mubr.msk.f32.mxu1 %vm8415_vm3, %v8414_v16  ;;  %7345 = vmatmul.mubr.msk.f32.vlgmr.msra.gmra.mxu0 %vm198_vm2, %v6657_v42 }
  0x67   :  { %7356 = vmatmul.mubr.msk.f32.vlgmr.msra.gmra.mxu1 %vm198_vm2, %v6657_v42  ;;  %7358 = vmatprep.subr.mxu0 %v8414_v16 }
  0x68   :  { %7369 = vmatprep.subr.mxu1 %v8414_v16  ;;  %7359 = vmatpush3.msra.mxu0 %v8805_v43 }
  0x69   :  { %7370 = vmatpush3.msra.mxu1 %v8807_v44  ;;  %7360 = vmatprep.subr.mxu0 %v8414_v16 }
  0x6a   :  { %7371 = vmatprep.subr.mxu1 %v8414_v16  ;;  %7361 = vmatpush3.msra.mxu0 %v8813_v45 }
  0x6b   :  { %7372 = vmatpush3.msra.mxu1 %v8815_v46  ;;  %7362 = vmatprep.subr.mxu0 %v8414_v16 }
  0x6c   :  { %7373 = vmatprep.subr.mxu1 %v8414_v16  ;;  %7363 = vmatpush3.msra.mxu0 %v8821_v47 }
  0x6d   :  { %7374 = vmatpush3.msra.mxu1 %v8823_v48  ;;  %7364 = vmatprep.subr.mxu0 %v8414_v16 }
  0x6e   :  { %7375 = vmatprep.subr.mxu1 %v8414_v16  ;;  %7365 = vmatpush3.msra.mxu0 %v8829_v49 }
  0x6f   :  { %7366 = vmatprep.mubr.msk.f32.mxu0 %vm8415_vm3, %v8414_v16  ;;  %7376 = vmatpush3.msra.mxu1 %v8833_v50 }
  0x70   :  { %7377 = vmatprep.mubr.msk.f32.mxu1 %vm8415_vm3, %v8414_v16  ;;  %7367 = vmatmul.mubr.msk.f32.vlgmr.msra.gmra.mxu0 %vm198_vm2, %v6657_v42 }
  0x71   :  { %7378 = vmatmul.mubr.msk.f32.vlgmr.msra.gmra.mxu1 %vm198_vm2, %v6657_v42  ;;  %7380 = vmatprep.subr.mxu0 %v8414_v16 }
  0x72   :  { %7391 = vmatprep.subr.mxu1 %v8414_v16  ;;  %7381 = vmatpush3.msra.mxu0 %v8661_v17 }
  0x73   :  { %7392 = vmatpush3.msra.mxu1 %v8663_v18  ;;  %7382 = vmatprep.subr.mxu0 %v8414_v16 }
  0x74   :  { %7393 = vmatprep.subr.mxu1 %v8414_v16  ;;  %7383 = vmatpush3.msra.mxu0 %v8675_v19 }
  0x75   :  { %7394 = vmatpush3.msra.mxu1 %v8677_v20  ;;  %7384 = vmatprep.subr.mxu0 %v8414_v16 }
  0x76   :  { %7395 = vmatprep.subr.mxu1 %v8414_v16  ;;  %7385 = vmatpush3.msra.mxu0 %v8691_v21 }
  0x77   :  { %7396 = vmatpush3.msra.mxu1 %v8693_v22  ;;  %7386 = vmatprep.subr.mxu0 %v8414_v16 }
  0x78   :  { %7397 = vmatprep.subr.mxu1 %v8414_v16  ;;  %7387 = vmatpush3.msra.mxu0 %v8707_v23 }
  0x79   :  { %7398 = vmatpush3.msra.mxu1 %v8709_v24  ;;  %7388 = vmatprep.mubr.msk.f32.mxu0 %vm8415_vm3, %v8414_v16 }
  0x7a   :  { %7399 = vmatprep.mubr.msk.f32.mxu1 %vm8415_vm3, %v8414_v16  ;;  %7402 = vmatprep.subr.mxu0 %v8414_v16 }
  0x7b   :  { %7413 = vmatprep.subr.mxu1 %v8414_v16 }
  0xd3   :  { %v7184_v53 = vpop.f32.mrf.mxu0 }
  0xd4   :  { %v7198_v54 = vpop.f32.mrf.mxu1  ;;  %v165_v55 = vadd.f32 %v7184_v53, %v6563_v51 }
  0xd5   :  { %v292_v56 = vadd.f32 %v7198_v54, %v6575_v52  ;;  %v159_v57 = vpop.f32.mrf.mxu0  ;;  %v6587_v54 = vld [vmem:[%s9779_s3 + $0x2] ss:$0 sm:$0xff] }
  0xd6   :  { %v286_v58 = vpop.f32.mrf.mxu1  ;;  %200 = vst.msk [vmem:[#allocation2 + $0x8] sm:$0xff] %vm198_vm2, %v165_v55  ;;  %v160_v59 = vadd.f32 %v6563_v51, %v159_v57  ;;  %v6599_v55 = vld [vmem:[%s9779_s3 + $0x3] ss:$0 sm:$0xff] }
  0xd7   :  { %327 = vst.msk [vmem:[#allocation2 + $0x48] sm:$0xff] %vm198_vm2, %v292_v56  ;;  %v287_v60 = vadd.f32 %v6575_v52, %v286_v58  ;;  %v7187_v61 = vpop.f32.mrf.mxu0 }
  0xd8   :  { %v7201_v62 = vpop.f32.mrf.mxu1  ;;  %199 = vst.msk [vmem:[#allocation2] sm:$0xff] %vm198_vm2, %v160_v59  ;;  %v175_v63 = vadd.f32 %v7187_v61, %v6563_v51 }
  0xd9   :  { %326 = vst.msk [vmem:[#allocation2 + $0x40] sm:$0xff] %vm198_vm2, %v287_v60  ;;  %v302_v0 = vadd.f32 %v7201_v62, %v6575_v52  ;;  %v169_v1 = vpop.f32.mrf.mxu0 }
  0xda   :  { %v296_v2 = vpop.f32.mrf.mxu1  ;;  %202 = vst.msk [vmem:[#allocation2 + $0x18] sm:$0xff] %vm198_vm2, %v175_v63  ;;  %v170_v3 = vadd.f32 %v6563_v51, %v169_v1 }
  0xdb   :  { %329 = vst.msk [vmem:[#allocation2 + $0x58] sm:$0xff] %vm198_vm2, %v302_v0  ;;  %v297_v4 = vadd.f32 %v6575_v52, %v296_v2  ;;  %v7190_v5 = vpop.f32.mrf.mxu0 }
  0xdc   :  { %v7204_v6 = vpop.f32.mrf.mxu1  ;;  %201 = vst.msk [vmem:[#allocation2 + $0x10] sm:$0xff] %vm198_vm2, %v170_v3  ;;  %v185_v7 = vadd.f32 %v7190_v5, %v6563_v51 }
  0xdd   :  { %328 = vst.msk [vmem:[#allocation2 + $0x50] sm:$0xff] %vm198_vm2, %v297_v4  ;;  %v312_v8 = vadd.f32 %v7204_v6, %v6575_v52  ;;  %v179_v9 = vpop.f32.mrf.mxu0 }
  0xde   :  { %v306_v10 = vpop.f32.mrf.mxu1  ;;  %204 = vst.msk [vmem:[#allocation2 + $0x28] sm:$0xff] %vm198_vm2, %v185_v7  ;;  %v180_v11 = vadd.f32 %v6563_v51, %v179_v9 }
  0xdf   :  { %331 = vst.msk [vmem:[#allocation2 + $0x68] sm:$0xff] %vm198_vm2, %v312_v8  ;;  %v307_v12 = vadd.f32 %v6575_v52, %v306_v10  ;;  %v7193_v13 = vpop.f32.mrf.mxu0 }
  0xe0   :  { %v7207_v14 = vpop.f32.mrf.mxu1  ;;  %203 = vst.msk [vmem:[#allocation2 + $0x20] sm:$0xff] %vm198_vm2, %v180_v11  ;;  %v195_v15 = vadd.f32 %v7193_v13, %v6563_v51 }
  0xe1   :  { %330 = vst.msk [vmem:[#allocation2 + $0x60] sm:$0xff] %vm198_vm2, %v307_v12  ;;  %v322_v25 = vadd.f32 %v7207_v14, %v6575_v52  ;;  %v189_v42 = vpop.f32.mrf.mxu0 }
  0xe2   :  { %v316_v53 = vpop.f32.mrf.mxu1  ;;  %206 = vst.msk [vmem:[#allocation2 + $0x38] sm:$0xff] %vm198_vm2, %v195_v15  ;;  %v190_v56 = vadd.f32 %v6563_v51, %v189_v42 }
  0xe3   :  { %333 = vst.msk [vmem:[#allocation2 + $0x78] sm:$0xff] %vm198_vm2, %v322_v25  ;;  %v317_v57 = vadd.f32 %v6575_v52, %v316_v53  ;;  %v7212_v58 = vpop.f32.mrf.mxu0 }
  0xe4   :  { %v7226_v59 = vpop.f32.mrf.mxu1  ;;  %205 = vst.msk [vmem:[#allocation2 + $0x30] sm:$0xff] %vm198_vm2, %v190_v56  ;;  %v419_v60 = vadd.f32 %v7212_v58, %v6587_v54 }
  0xe5   :  { %332 = vst.msk [vmem:[#allocation2 + $0x70] sm:$0xff] %vm198_vm2, %v317_v57  ;;  %v546_v61 = vadd.f32 %v7226_v59, %v6599_v55  ;;  %v413_v62 = vpop.f32.mrf.mxu0  ;;  %v6611_v59 = vld [vmem:[%s9779_s3 + $0x4] ss:$0 sm:$0xff] }
  0xe6   :  { %v540_v63 = vpop.f32.mrf.mxu1  ;;  %454 = vst.msk [vmem:[#allocation2 + $0x88] sm:$0xff] %vm198_vm2, %v419_v60  ;;  %v414_v0 = vadd.f32 %v6587_v54, %v413_v62  ;;  %v6623_v60 = vld [vmem:[%s9779_s3 + $0x5] ss:$0 sm:$0xff] }
  0xe7   :  { %581 = vst.msk [vmem:[#allocation2 + $0xc8] sm:$0xff] %vm198_vm2, %v546_v61  ;;  %v541_v1 = vadd.f32 %v6599_v55, %v540_v63  ;;  %v7215_v2 = vpop.f32.mrf.mxu0 }
  0xe8   :  { %v7229_v3 = vpop.f32.mrf.mxu1  ;;  %453 = vst.msk [vmem:[#allocation2 + $0x80] sm:$0xff] %vm198_vm2, %v414_v0  ;;  %v429_v51 = vadd.f32 %v7215_v2, %v6587_v54 }
  0xe9   :  { %580 = vst.msk [vmem:[#allocation2 + $0xc0] sm:$0xff] %vm198_vm2, %v541_v1  ;;  %v556_v52 = vadd.f32 %v7229_v3, %v6599_v55  ;;  %v423_v4 = vpop.f32.mrf.mxu0 }
  0xea   :  { %v550_v5 = vpop.f32.mrf.mxu1  ;;  %456 = vst.msk [vmem:[#allocation2 + $0x98] sm:$0xff] %vm198_vm2, %v429_v51  ;;  %v424_v6 = vadd.f32 %v6587_v54, %v423_v4 }
  0xeb   :  { %583 = vst.msk [vmem:[#allocation2 + $0xd8] sm:$0xff] %vm198_vm2, %v556_v52  ;;  %v551_v7 = vadd.f32 %v6599_v55, %v550_v5  ;;  %v7218_v8 = vpop.f32.mrf.mxu0 }
  0xec   :  { %v7232_v9 = vpop.f32.mrf.mxu1  ;;  %455 = vst.msk [vmem:[#allocation2 + $0x90] sm:$0xff] %vm198_vm2, %v424_v6  ;;  %v439_v10 = vadd.f32 %v7218_v8, %v6587_v54 }
  0xed   :  { %582 = vst.msk [vmem:[#allocation2 + $0xd0] sm:$0xff] %vm198_vm2, %v551_v7  ;;  %v566_v11 = vadd.f32 %v7232_v9, %v6599_v55  ;;  %v433_v12 = vpop.f32.mrf.mxu0 }
  0xee   :  { %v560_v13 = vpop.f32.mrf.mxu1  ;;  %458 = vst.msk [vmem:[#allocation2 + $0xa8] sm:$0xff] %vm198_vm2, %v439_v10  ;;  %v434_v14 = vadd.f32 %v6587_v54, %v433_v12 }
  0xef   :  { %585 = vst.msk [vmem:[#allocation2 + $0xe8] sm:$0xff] %vm198_vm2, %v566_v11  ;;  %v561_v15 = vadd.f32 %v6599_v55, %v560_v13  ;;  %v7221_v25 = vpop.f32.mrf.mxu0 }
  0xf0   :  { %v7235_v42 = vpop.f32.mrf.mxu1  ;;  %457 = vst.msk [vmem:[#allocation2 + $0xa0] sm:$0xff] %vm198_vm2, %v434_v14  ;;  %v449_v53 = vadd.f32 %v7221_v25, %v6587_v54 }
  0xf1   :  { %584 = vst.msk [vmem:[#allocation2 + $0xe0] sm:$0xff] %vm198_vm2, %v561_v15  ;;  %v576_v56 = vadd.f32 %v7235_v42, %v6599_v55  ;;  %v443_v57 = vpop.f32.mrf.mxu0 }
  0xf2   :  { %v570_v58 = vpop.f32.mrf.mxu1  ;;  %460 = vst.msk [vmem:[#allocation2 + $0xb8] sm:$0xff] %vm198_vm2, %v449_v53  ;;  %v444_v61 = vadd.f32 %v6587_v54, %v443_v57 }
  0xf3   :  { %587 = vst.msk [vmem:[#allocation2 + $0xf8] sm:$0xff] %vm198_vm2, %v576_v56  ;;  %v571_v62 = vadd.f32 %v6599_v55, %v570_v58  ;;  %v7240_v63 = vpop.f32.mrf.mxu0 }
  0xf4   :  { %v7254_v0 = vpop.f32.mrf.mxu1  ;;  %459 = vst.msk [vmem:[#allocation2 + $0xb0] sm:$0xff] %vm198_vm2, %v444_v61  ;;  %v673_v1 = vadd.f32 %v7240_v63, %v6611_v59 }
  0xf5   :  { %586 = vst.msk [vmem:[#allocation2 + $0xf0] sm:$0xff] %vm198_vm2, %v571_v62  ;;  %v800_v2 = vadd.f32 %v7254_v0, %v6623_v60  ;;  %v667_v3 = vpop.f32.mrf.mxu0  ;;  %v6635_v0 = vld [vmem:[%s9779_s3 + $0x6] ss:$0 sm:$0xff] }
  0xf6   :  { %v794_v51 = vpop.f32.mrf.mxu1  ;;  %708 = vst.msk [vmem:[#allocation2 + $0x108] sm:$0xff] %vm198_vm2, %v673_v1  ;;  %v668_v52 = vadd.f32 %v6611_v59, %v667_v3  ;;  %v6647_v1 = vld [vmem:[%s9779_s3 + $0x7] ss:$0 sm:$0xff] }
  0xf7   :  { %835 = vst.msk [vmem:[#allocation2 + $0x148] sm:$0xff] %vm198_vm2, %v800_v2  ;;  %v795_v4 = vadd.f32 %v6623_v60, %v794_v51  ;;  %v7243_v5 = vpop.f32.mrf.mxu0 }
  0xf8   :  { %v7257_v6 = vpop.f32.mrf.mxu1  ;;  %707 = vst.msk [vmem:[#allocation2 + $0x100] sm:$0xff] %vm198_vm2, %v668_v52  ;;  %v683_v54 = vadd.f32 %v7243_v5, %v6611_v59 }
  0xf9   :  { %834 = vst.msk [vmem:[#allocation2 + $0x140] sm:$0xff] %vm198_vm2, %v795_v4  ;;  %v810_v55 = vadd.f32 %v7257_v6, %v6623_v60  ;;  %v677_v7 = vpop.f32.mrf.mxu0 }
  0xfa   :  { %v804_v8 = vpop.f32.mrf.mxu1  ;;  %710 = vst.msk [vmem:[#allocation2 + $0x118] sm:$0xff] %vm198_vm2, %v683_v54  ;;  %v678_v9 = vadd.f32 %v6611_v59, %v677_v7 }
  0xfb   :  { %837 = vst.msk [vmem:[#allocation2 + $0x158] sm:$0xff] %vm198_vm2, %v810_v55  ;;  %v805_v10 = vadd.f32 %v6623_v60, %v804_v8  ;;  %v7246_v11 = vpop.f32.mrf.mxu0 }
  0xfc   :  { %v7260_v12 = vpop.f32.mrf.mxu1  ;;  %709 = vst.msk [vmem:[#allocation2 + $0x110] sm:$0xff] %vm198_vm2, %v678_v9  ;;  %v693_v13 = vadd.f32 %v7246_v11, %v6611_v59 }
  0xfd   :  { %836 = vst.msk [vmem:[#allocation2 + $0x150] sm:$0xff] %vm198_vm2, %v805_v10  ;;  %v820_v14 = vadd.f32 %v7260_v12, %v6623_v60  ;;  %v687_v15 = vpop.f32.mrf.mxu0 }
  0xfe   :  { %v814_v25 = vpop.f32.mrf.mxu1  ;;  %712 = vst.msk [vmem:[#allocation2 + $0x128] sm:$0xff] %vm198_vm2, %v693_v13  ;;  %v688_v42 = vadd.f32 %v6611_v59, %v687_v15 }
  0xff   :  { %839 = vst.msk [vmem:[#allocation2 + $0x168] sm:$0xff] %vm198_vm2, %v820_v14  ;;  %v815_v53 = vadd.f32 %v6623_v60, %v814_v25  ;;  %v7249_v56 = vpop.f32.mrf.mxu0 }
 0x100   :  { %v7263_v57 = vpop.f32.mrf.mxu1  ;;  %711 = vst.msk [vmem:[#allocation2 + $0x120] sm:$0xff] %vm198_vm2, %v688_v42  ;;  %v703_v58 = vadd.f32 %v7249_v56, %v6611_v59 }
 0x101   :  { %838 = vst.msk [vmem:[#allocation2 + $0x160] sm:$0xff] %vm198_vm2, %v815_v53  ;;  %v830_v61 = vadd.f32 %v7263_v57, %v6623_v60  ;;  %v697_v62 = vpop.f32.mrf.mxu0 }
 0x102   :  { %v824_v63 = vpop.f32.mrf.mxu1  ;;  %714 = vst.msk [vmem:[#allocation2 + $0x138] sm:$0xff] %vm198_vm2, %v703_v58  ;;  %v698_v2 = vadd.f32 %v6611_v59, %v697_v62 }
 0x103   :  { %841 = vst.msk [vmem:[#allocation2 + $0x178] sm:$0xff] %vm198_vm2, %v830_v61  ;;  %v825_v3 = vadd.f32 %v6623_v60, %v824_v63  ;;  %v7268_v51 = vpop.f32.mrf.mxu0 }
 0x104   :  { %v7282_v52 = vpop.f32.mrf.mxu1  ;;  %713 = vst.msk [vmem:[#allocation2 + $0x130] sm:$0xff] %vm198_vm2, %v698_v2  ;;  %v927_v4 = vadd.f32 %v7268_v51, %v6635_v0 }
 0x105   :  { %840 = vst.msk [vmem:[#allocation2 + $0x170] sm:$0xff] %vm198_vm2, %v825_v3  ;;  %v1054_v5 = vadd.f32 %v7282_v52, %v6647_v1  ;;  %v921_v6 = vpop.f32.mrf.mxu0 }
 0x106   :  { %v1048_v54 = vpop.f32.mrf.mxu1  ;;  %962 = vst.msk [vmem:[#allocation2 + $0x188] sm:$0xff] %vm198_vm2, %v927_v4  ;;  %v922_v55 = vadd.f32 %v6635_v0, %v921_v6 }
 0x107   :  { %1089 = vst.msk [vmem:[#allocation2 + $0x1c8] sm:$0xff] %vm198_vm2, %v1054_v5  ;;  %v1049_v7 = vadd.f32 %v6647_v1, %v1048_v54  ;;  %v7271_v8 = vpop.f32.mrf.mxu0  ;;  %v1102_v5 = vld [vmem:[#allocation2] sm:$0xff] }
 0x108   :  { %v7285_v9 = vpop.f32.mrf.mxu1  ;;  %961 = vst.msk [vmem:[#allocation2 + $0x180] sm:$0xff] %vm198_vm2, %v922_v55  ;;  %v937_v59 = vadd.f32 %v7271_v8, %v6635_v0  ;;  %v1105_v54 = vld [vmem:[#allocation2 + $0x40] sm:$0xff] }
 0x109   :  { %1088 = vst.msk [vmem:[#allocation2 + $0x1c0] sm:$0xff] %vm198_vm2, %v1049_v7  ;;  %v1064_v60 = vadd.f32 %v7285_v9, %v6647_v1  ;;  %v931_v10 = vpop.f32.mrf.mxu0 }
 0x10a   :  { %v1058_v11 = vpop.f32.mrf.mxu1  ;;  %964 = vst.msk [vmem:[#allocation2 + $0x198] sm:$0xff] %vm198_vm2, %v937_v59  ;;  %v932_v12 = vadd.f32 %v6635_v0, %v931_v10 }
 0x10b   :  { %1091 = vst.msk [vmem:[#allocation2 + $0x1d8] sm:$0xff] %vm198_vm2, %v1064_v60  ;;  %v1059_v13 = vadd.f32 %v6647_v1, %v1058_v11  ;;  %v7274_v14 = vpop.f32.mrf.mxu0 }
 0x10c   :  { %v7288_v15 = vpop.f32.mrf.mxu1  ;;  %963 = vst.msk [vmem:[#allocation2 + $0x190] sm:$0xff] %vm198_vm2, %v932_v12  ;;  %v947_v25 = vadd.f32 %v7274_v14, %v6635_v0  ;;  %v1111_v12 = vld [vmem:[#allocation2 + $0xc0] sm:$0xff] }
 0x10d   :  { %1090 = vst.msk [vmem:[#allocation2 + $0x1d0] sm:$0xff] %vm198_vm2, %v1059_v13  ;;  %v1074_v42 = vadd.f32 %v7288_v15, %v6647_v1  ;;  %v941_v53 = vpop.f32.mrf.mxu0 }
 0x10e   :  { %v1068_v56 = vpop.f32.mrf.mxu1  ;;  %966 = vst.msk [vmem:[#allocation2 + $0x1a8] sm:$0xff] %vm198_vm2, %v947_v25  ;;  %v942_v57 = vadd.f32 %v6635_v0, %v941_v53  ;;  %v1108_v25 = vld [vmem:[#allocation2 + $0x80] sm:$0xff] }
 0x10f   :  { %1093 = vst.msk [vmem:[#allocation2 + $0x1e8] sm:$0xff] %vm198_vm2, %v1074_v42  ;;  %v1069_v58 = vadd.f32 %v6647_v1, %v1068_v56  ;;  %v7277_v61 = vpop.f32.mrf.mxu0 }
 0x110   :  { %v7291_v62 = vpop.f32.mrf.mxu1  ;;  %965 = vst.msk [vmem:[#allocation2 + $0x1a0] sm:$0xff] %vm198_vm2, %v942_v57  ;;  %v957_v63 = vadd.f32 %v7277_v61, %v6635_v0 }
 0x111   :  { %1092 = vst.msk [vmem:[#allocation2 + $0x1e0] sm:$0xff] %vm198_vm2, %v1069_v58  ;;  %v1084_v2 = vadd.f32 %v7291_v62, %v6647_v1  ;;  %v951_v3 = vpop.f32.mrf.mxu0  ;;  %v1444_v58 = vld [vmem:[#allocation2 + $0x138] sm:$0xff] }
 0x112   :  { %v1078_v51 = vpop.f32.mrf.mxu1  ;;  %968 = vst.msk [vmem:[#allocation2 + $0x1b8] sm:$0xff] %vm198_vm2, %v957_v63  ;;  %v952_v52 = vadd.f32 %v6635_v0, %v951_v3  ;;  %v1448_v62 = vld [vmem:[#allocation2 + $0x178] sm:$0xff] }
 0x113   :  { %1095 = vst.msk [vmem:[#allocation2 + $0x1f8] sm:$0xff] %vm198_vm2, %v1084_v2  ;;  %v1079_v4 = vadd.f32 %v6647_v1, %v1078_v51  ;;  %v1185_v6 = vpop.f32.mrf.mxu0 }
 0x114   :  { %v1267_v55 = vpop.f32.mrf.mxu1  ;;  %967 = vst.msk [vmem:[#allocation2 + $0x1b0] sm:$0xff] %vm198_vm2, %v952_v52  ;;  %v1189_v7 = vadd.f32 %v1185_v6, %v1102_v5 }
 0x115   :  { %1094 = vst.msk [vmem:[#allocation2 + $0x1f0] sm:$0xff] %vm198_vm2, %v1079_v4  ;;  %v1271_v8 = vadd.f32 %v1267_v55, %v1105_v54  ;;  %v7302_v9 = vpop.f32.mrf.mxu0 }
 0x116   :  { %v7313_v59 = vpop.f32.mrf.mxu1  ;;  %v6660_v60 = vmul.f32 -1.442695, %v1189_v7 }
 0x117   :  { %v6662_v10 = vmul.f32 -1.442695, %v1271_v8 }
 0x118   :  { %8025 = vpow2.f32 %v6660_v60 }
 0x119   :  { %8027 = vpow2.f32 %v6662_v10 }
 0x11a   :  { %v1456_v8 = vld [vmem:[#allocation2 + $0x1f8] sm:$0xff] }
 0x11c   :  { %v1349_v11 = vpop.f32.mrf.mxu0 }
 0x11d   :  { %v1426_v0 = vpop.f32.mrf.mxu1  ;;  %v1353_v42 = vadd.f32 %v1349_v11, %v1108_v25  ;;  %v1097_v11 = vld [vmem:[%s9781_s5] sm:$0xff] }
 0x11e   :  { %v1430_v1 = vadd.f32 %v1426_v0, %v1111_v12  ;;  %v7324_v13 = vpop.f32.mrf.mxu0  ;;  %v1452_v0 = vld [vmem:[#allocation2 + $0x1b8] sm:$0xff] }
 0x11f   :  { %v7335_v14 = vpop.f32.mrf.mxu1 }
 0x120   :  { %v6665_v15 = vmul.f32 -1.442695, %v1430_v1 }
 0x122   :  { %8029 = vpow2.f32 %v6665_v15 }
 0x123   :  { %8031 = vtanh.f32 %v1353_v42 }
 0x125   :  { %v8026_v53 = vpop.eup %8025 }
 0x126   :  { %v8028_v56 = vpop.eup %8027  ;;  %v1193_v57 = vadd.f32 1.0, %v8026_v53  ;;  %v1531_v61 = vpop.f32.mrf.mxu0 }
 0x127   :  { %v1613_v63 = vpop.f32.mrf.mxu1  ;;  %v1275_v2 = vadd.f32 1.0, %v8028_v56  ;;  %v1535_v3 = vadd.f32 %v1531_v61, %v1444_v58 }
 0x128   :  { %v1617_v51 = vadd.f32 %v1613_v63, %v1448_v62  ;;  %8033 = vrcp.f32 %v1193_v57  ;;  %v7346_v52 = vpop.f32.mrf.mxu0 }
 0x129   :  { %v7357_v4 = vpop.f32.mrf.mxu1  ;;  %8035 = vrcp.f32 %v1275_v2  ;;  %v6667_v5 = vmul.f32 -1.442695, %v1535_v3 }
 0x12a   :  { %v6669_v6 = vmul.f32 -1.442695, %v1617_v51  ;;  %v6658_v51 = vld [vmem:[%s9781_s5 + $0x8] sm:$0xff] }
 0x12b   :  { %8037 = vpow2.f32 %v6667_v5 }
 0x12c   :  { %8039 = vpow2.f32 %v6669_v6 }
 0x12f   :  { %v8030_v7 = vpop.eup %8029 }
 0x130   :  { %v1695_v54 = vpop.f32.mrf.mxu0  ;;  %v8032_v10 = vpop.eup %8031  ;;  %v1434_v12 = vadd.f32 1.0, %v8030_v7 }
 0x131   :  { %v1772_v55 = vpop.f32.mrf.mxu1  ;;  %v1699_v13 = vadd.f32 %v1695_v54, %v1452_v0  ;;  %v2124_v0 = vld [vmem:[#allocation2 + $0x1f0] sm:$0xff] }
 0x132   :  { %v1776_v9 = vadd.f32 %v1772_v55, %v1456_v8  ;;  %v7368_v59 = vpop.f32.mrf.mxu0  ;;  %8041 = vrcp.f32 %v1434_v12 }
 0x133   :  { %v7379_v60 = vpop.f32.mrf.mxu1  ;;  %8043 = vtanh.f32 %v1699_v13 }
 0x134   :  { %v6672_v25 = vmul.f32 -1.442695, %v1776_v9 }
 0x135   :  { %v8034_v1 = vpop.eup %8033 }
 0x136   :  { %v8036_v14 = vpop.eup %8035  ;;  %v1438_v15 = vmul.f32 %v8034_v1, %v8032_v10  ;;  %8045 = vpow2.f32 %v6672_v25 }
 0x137   :  { %v1437_v42 = vmul.f32 %v8036_v14, %v1097_v11 }
 0x138   :  { %v8038_v53 = vpop.eup %8037 }
 0x139   :  { %v8040_v56 = vpop.eup %8039  ;;  %v8958_v57 = vadd.f32 %v1438_v15, %v1437_v42  ;;  %v1539_v58 = vadd.f32 1.0, %v8038_v53  ;;  %v2120_v42 = vld [vmem:[#allocation2 + $0x1b0] sm:$0xff] }
 0x13a   :  { %v1621_v61 = vadd.f32 1.0, %v8040_v56 }
 0x13b   :  { %8047 = vtanh.f32 %v8958_v57 }
 0x13c   :  { %8049 = vrcp.f32 %v1539_v58 }
 0x13d   :  { %8051 = vrcp.f32 %v1621_v61 }
 0x13f   :  { %v8042_v62 = vpop.eup %8041 }
 0x140   :  { %v8044_v63 = vpop.eup %8043 }
 0x143   :  { %v8046_v2 = vpop.eup %8045 }
 0x144   :  { %v1780_v54 = vadd.f32 1.0, %v8046_v2 }
 0x146   :  { %8053 = vrcp.f32 %v1780_v54 }
 0x148   :  { %v8048_v3 = vpop.eup %8047 }
 0x149   :  { %v8050_v52 = vpop.eup %8049  ;;  %v1441_v4 = vmul.f32 %v8048_v3, %v8042_v62 }
 0x14a   :  { %v8052_v5 = vpop.eup %8051  ;;  %v1784_v6 = vmul.f32 %v8050_v52, %v8044_v63 }
 0x14b   :  { %v1783_v55 = vmul.f32 %v8052_v5, %v6658_v51  ;;  %7389 = vmatmul.mubr.msk.f32.vlgmr.msra.gmra.mxu0 %vm198_vm2, %v1441_v4  ;;  %7400 = vmatmul.mubr.msk.f32.vlgmr.msra.gmra.mxu1 %vm198_vm2, %v1441_v4 }
 0x14c   :  { %7403 = vmatpush3.msra.mxu0 %v8726_v26  ;;  %7414 = vmatpush3.msra.mxu1 %v8728_v27 }
 0x14d   :  { %v8968_v7 = vadd.f32 %v1784_v6, %v1783_v55  ;;  %7404 = vmatprep.subr.mxu0 %v8414_v16  ;;  %7415 = vmatprep.subr.mxu1 %v8414_v16 }
 0x14e   :  { %7405 = vmatpush3.msra.mxu0 %v8734_v28  ;;  %7416 = vmatpush3.msra.mxu1 %v8736_v29 }
 0x14f   :  { %8055 = vtanh.f32 %v8968_v7  ;;  %7406 = vmatprep.subr.mxu0 %v8414_v16  ;;  %7417 = vmatprep.subr.mxu1 %v8414_v16 }
 0x150   :  { %7407 = vmatpush3.msra.mxu0 %v8742_v30  ;;  %7418 = vmatpush3.msra.mxu1 %v8744_v31 }
 0x151   :  { %7408 = vmatprep.subr.mxu0 %v8414_v16  ;;  %7419 = vmatprep.subr.mxu1 %v8414_v16 }
 0x152   :  { %7409 = vmatpush3.msra.mxu0 %v8750_v32  ;;  %7410 = vmatprep.mubr.msk.f32.mxu0 %vm8415_vm3, %v8414_v16  ;;  %v1798_v32 = vld [vmem:[#allocation2 + $0xc8] sm:$0xff] }
 0x153   :  { %7420 = vmatpush3.msra.mxu1 %v8754_v33  ;;  %7421 = vmatprep.mubr.msk.f32.mxu1 %vm8415_vm3, %v8414_v16  ;;  %v8054_v26 = vpop.eup %8053 }
 0x154   :  { %7411 = vmatmul.mubr.msk.f32.vlgmr.msra.gmra.mxu0 %vm198_vm2, %v1441_v4  ;;  %7422 = vmatmul.mubr.msk.f32.vlgmr.msra.gmra.mxu1 %vm198_vm2, %v1441_v4 }
 0x155   :  { %7424 = vmatprep.subr.mxu0 %v8414_v16  ;;  %7435 = vmatprep.subr.mxu1 %v8414_v16 }
 0x156   :  { %7425 = vmatpush3.msra.mxu0 %v8764_v34  ;;  %7436 = vmatpush3.msra.mxu1 %v8766_v35 }
 0x157   :  { %7426 = vmatprep.subr.mxu0 %v8414_v16  ;;  %7437 = vmatprep.subr.mxu1 %v8414_v16 }
 0x158   :  { %7427 = vmatpush3.msra.mxu0 %v8772_v36  ;;  %7438 = vmatpush3.msra.mxu1 %v8774_v37 }
 0x159   :  { %7428 = vmatprep.subr.mxu0 %v8414_v16  ;;  %7439 = vmatprep.subr.mxu1 %v8414_v16 }
 0x15a   :  { %7429 = vmatpush3.msra.mxu0 %v8780_v38  ;;  %7440 = vmatpush3.msra.mxu1 %v8782_v39  ;;  %v1795_v38 = vld [vmem:[#allocation2 + $0x88] sm:$0xff] }
 0x15b   :  { %7430 = vmatprep.subr.mxu0 %v8414_v16  ;;  %7441 = vmatprep.subr.mxu1 %v8414_v16 }
 0x15c   :  { %v8056_v27 = vpop.eup %8055  ;;  %7431 = vmatpush3.msra.mxu0 %v8788_v40  ;;  %7432 = vmatprep.mubr.msk.f32.mxu0 %vm8415_vm3, %v8414_v16 }
 0x15d   :  { %7442 = vmatpush3.msra.mxu1 %v8792_v41  ;;  %7443 = vmatprep.mubr.msk.f32.mxu1 %vm8415_vm3, %v8414_v16  ;;  %v1787_v28 = vmul.f32 %v8056_v27, %v8054_v26 }
 0x15e   :  { %7446 = vmatprep.subr.mxu0 %v8414_v16  ;;  %7457 = vmatprep.subr.mxu1 %v8414_v16 }
 0x15f   :  { %7433 = vmatmul.mubr.msk.f32.vlgmr.msra.gmra.mxu0 %vm198_vm2, %v1787_v28  ;;  %7444 = vmatmul.mubr.msk.f32.vlgmr.msra.gmra.mxu1 %vm198_vm2, %v1787_v28 }
 0x160   :  { %7447 = vmatpush3.msra.mxu0 %v8805_v43  ;;  %7458 = vmatpush3.msra.mxu1 %v8807_v44 }
 0x161   :  { %7448 = vmatprep.subr.mxu0 %v8414_v16  ;;  %7459 = vmatprep.subr.mxu1 %v8414_v16 }
 0x162   :  { %7449 = vmatpush3.msra.mxu0 %v8813_v45  ;;  %7460 = vmatpush3.msra.mxu1 %v8815_v46  ;;  %v2112_v45 = vld [vmem:[#allocation2 + $0x130] sm:$0xff] }
 0x163   :  { %7450 = vmatprep.subr.mxu0 %v8414_v16  ;;  %7461 = vmatprep.subr.mxu1 %v8414_v16 }
 0x164   :  { %7451 = vmatpush3.msra.mxu0 %v8821_v47  ;;  %7462 = vmatpush3.msra.mxu1 %v8823_v48  ;;  %v2116_v47 = vld [vmem:[#allocation2 + $0x170] sm:$0xff] }
 0x165   :  { %7452 = vmatprep.subr.mxu0 %v8414_v16  ;;  %7463 = vmatprep.subr.mxu1 %v8414_v16 }
 0x166   :  { %7453 = vmatpush3.msra.mxu0 %v8829_v49  ;;  %7454 = vmatprep.mubr.msk.f32.mxu0 %vm8415_vm3, %v8414_v16 }
 0x167   :  { %7464 = vmatpush3.msra.mxu1 %v8833_v50  ;;  %7465 = vmatprep.mubr.msk.f32.mxu1 %vm8415_vm3, %v8414_v16 }
 0x168   :  { %7455 = vmatmul.mubr.msk.f32.vlgmr.msra.gmra.mxu0 %vm198_vm2, %v1787_v28  ;;  %7466 = vmatmul.mubr.msk.f32.vlgmr.msra.gmra.mxu1 %vm198_vm2, %v1787_v28 }
 0x169   :  { %7468 = vmatprep.subr.mxu0 %v8414_v16  ;;  %7479 = vmatprep.subr.mxu1 %v8414_v16 }
 0x16a   :  { %7469 = vmatpush3.msra.mxu0 %v8661_v17  ;;  %7480 = vmatpush3.msra.mxu1 %v8663_v18  ;;  %v1789_v17 = vld [vmem:[#allocation2 + $0x8] sm:$0xff] }
 0x16b   :  { %7470 = vmatprep.subr.mxu0 %v8414_v16  ;;  %7481 = vmatprep.subr.mxu1 %v8414_v16 }
 0x16c   :  { %7471 = vmatpush3.msra.mxu0 %v8675_v19  ;;  %7482 = vmatpush3.msra.mxu1 %v8677_v20  ;;  %v1792_v19 = vld [vmem:[#allocation2 + $0x48] sm:$0xff] }
 0x16d   :  { %7472 = vmatprep.subr.mxu0 %v8414_v16  ;;  %7483 = vmatprep.subr.mxu1 %v8414_v16 }
 0x16e   :  { %7473 = vmatpush3.msra.mxu0 %v8691_v21  ;;  %7484 = vmatpush3.msra.mxu1 %v8693_v22 }
 0x16f   :  { %7474 = vmatprep.subr.mxu0 %v8414_v16  ;;  %7485 = vmatprep.subr.mxu1 %v8414_v16 }
 0x170   :  { %7475 = vmatpush3.msra.mxu0 %v8707_v23  ;;  %7486 = vmatpush3.msra.mxu1 %v8709_v24 }
 0x171   :  { %7476 = vmatprep.mubr.msk.f32.mxu0 %vm8415_vm3, %v8414_v16  ;;  %7487 = vmatprep.mubr.msk.f32.mxu1 %vm8415_vm3, %v8414_v16 }
 0x172   :  { %7490 = vmatprep.subr.mxu0 %v8414_v16  ;;  %7501 = vmatprep.subr.mxu1 %v8414_v16 }
 0x20b   :  { %v1868_v18 = vpop.f32.mrf.mxu0  ;;  %v1945_v20 = vpop.f32.mrf.mxu1 }
 0x20c   :  { %v1872_v21 = vadd.f32 %v1868_v18, %v1789_v17  ;;  %v1949_v22 = vadd.f32 %v1945_v20, %v1792_v19  ;;  %v9062_v19 = vld [vmem:[#allocation3 + $0x58] sm:$0xff] }
 0x20d   :  { %v7390_v29 = vpop.f32.mrf.mxu0  ;;  %v7401_v23 = vpop.f32.mrf.mxu1  ;;  %v9065_v20 = vld [vmem:[#allocation3 + $0x78] sm:$0xff] }
 0x20e   :  { %v6674_v30 = vmul.f32 -1.442695, %v1872_v21  ;;  %v6676_v24 = vmul.f32 -1.442695, %v1949_v22  ;;  %v9075_v22 = vld [vmem:[#allocation3 + $0x70] sm:$0xff]  ;;  %v9081_v29 = vld [vmem:[#allocation3 + $0x48] sm:$0xff] }
 0x20f   :  { %v9084_v23 = vld [vmem:[#allocation3 + $0x68] sm:$0xff] }
 0x210   :  { %8057 = vpow2.f32 %v6674_v30  ;;  %v9089_v30 = vld [vmem:[#allocation3 + $0x40] sm:$0xff] }
 0x211   :  { %8059 = vpow2.f32 %v6676_v24  ;;  %v9094_v24 = vld [vmem:[#allocation3 + $0x60] sm:$0xff] }
 0x214   :  { %v2022_v31 = vpop.f32.mrf.mxu0  ;;  %v2094_v33 = vpop.f32.mrf.mxu1 }
 0x215   :  { %v2098_v34 = vadd.f32 %v2094_v33, %v1798_v32  ;;  %v2026_v39 = vadd.f32 %v2022_v31, %v1795_v38  ;;  %v9103_v31 = vld [vmem:[#allocation3 + $0x98] sm:$0xff]  ;;  %v9111_v33 = vld [vmem:[#allocation3 + $0x90] sm:$0xff] }
 0x216   :  { %v7412_v35 = vpop.f32.mrf.mxu0  ;;  %v7423_v36 = vpop.f32.mrf.mxu1  ;;  %v9106_v32 = vld [vmem:[#allocation3 + $0xb8] sm:$0xff] }
 0x217   :  { %v6679_v37 = vmul.f32 -1.442695, %v2098_v34  ;;  %v9114_v34 = vld [vmem:[#allocation3 + $0xb0] sm:$0xff]  ;;  %v9119_v35 = vld [vmem:[#allocation3 + $0x88] sm:$0xff] }
 0x218   :  { %v9122_v36 = vld [vmem:[#allocation3 + $0xa8] sm:$0xff] }
 0x219   :  { %8061 = vpow2.f32 %v6679_v37 }
 0x21a   :  { %8063 = vtanh.f32 %v2026_v39  ;;  %v9127_v39 = vld [vmem:[#allocation3 + $0x80] sm:$0xff] }
 0x21d   :  { %v8058_v40 = vpop.eup %8057 }
 0x21e   :  { %v8060_v41 = vpop.eup %8059  ;;  %v1876_v43 = vadd.f32 1.0, %v8058_v40  ;;  %v9132_v40 = vld [vmem:[#allocation3 + $0xa0] sm:$0xff] }
 0x21f   :  { %v1953_v44 = vadd.f32 1.0, %v8060_v41  ;;  %v2194_v46 = vpop.f32.mrf.mxu0  ;;  %v2271_v48 = vpop.f32.mrf.mxu1 }
 0x220   :  { %8065 = vrcp.f32 %v1876_v43  ;;  %v2198_v49 = vadd.f32 %v2194_v46, %v2112_v45  ;;  %v2275_v50 = vadd.f32 %v2271_v48, %v2116_v47  ;;  %v9141_v43 = vld [vmem:[#allocation3 + $0xd8] sm:$0xff]  ;;  %v9149_v45 = vld [vmem:[#allocation3 + $0xd0] sm:$0xff]  ;;  %v9157_v47 = vld [vmem:[#allocation3 + $0xc8] sm:$0xff] }
 0x221   :  { %8067 = vrcp.f32 %v1953_v44  ;;  %v7434_v8 = vpop.f32.mrf.mxu0  ;;  %v7445_v9 = vpop.f32.mrf.mxu1  ;;  %v9144_v44 = vld [vmem:[#allocation3 + $0xf8] sm:$0xff]  ;;  %v9152_v46 = vld [vmem:[#allocation3 + $0xf0] sm:$0xff]  ;;  %v9160_v48 = vld [vmem:[#allocation3 + $0xe8] sm:$0xff] }
 0x222   :  { %v6681_v59 = vmul.f32 -1.442695, %v2198_v49  ;;  %v6683_v60 = vmul.f32 -1.442695, %v2275_v50  ;;  %v9165_v49 = vld [vmem:[#allocation3 + $0xc0] sm:$0xff]  ;;  %v9179_v8 = vld [vmem:[#allocation3 + $0x18] sm:$0xff] }
 0x223   :  { %v9170_v50 = vld [vmem:[#allocation3 + $0xe0] sm:$0xff]  ;;  %v9182_v9 = vld [vmem:[#allocation3 + $0x38] sm:$0xff] }
 0x224   :  { %8069 = vpow2.f32 %v6681_v59  ;;  %v9187_v59 = vld [vmem:[#allocation3 + $0x10] sm:$0xff] }
 0x225   :  { %8071 = vpow2.f32 %v6683_v60  ;;  %v9190_v60 = vld [vmem:[#allocation3 + $0x30] sm:$0xff] }
 0x226   :  { %v8062_v12 = vpop.eup %8061 }
 0x227   :  { %v8064_v15 = vpop.eup %8063  ;;  %v2102_v25 = vadd.f32 1.0, %v8062_v12  ;;  %v9203_v12 = vld [vmem:[#allocation3] sm:$0xff] }
 0x228   :  { %v2348_v10 = vpop.f32.mrf.mxu0  ;;  %v2420_v11 = vpop.f32.mrf.mxu1 }
 0x229   :  { %v2424_v1 = vadd.f32 %v2420_v11, %v2124_v0  ;;  %v2352_v56 = vadd.f32 %v2348_v10, %v2120_v42  ;;  %8073 = vrcp.f32 %v2102_v25  ;;  %v9195_v10 = vld [vmem:[#allocation3 + $0x8] sm:$0xff]  ;;  %v9206_v0 = vld [vmem:[#allocation3 + $0x20] sm:$0xff] }
 0x22a   :  { %v7456_v13 = vpop.f32.mrf.mxu0  ;;  %v7467_v14 = vpop.f32.mrf.mxu1  ;;  %v9198_v11 = vld [vmem:[#allocation3 + $0x28] sm:$0xff] }
 0x22b   :  { %v6686_v62 = vmul.f32 -1.442695, %v2424_v1  ;;  %8075 = vtanh.f32 %v2352_v56  ;;  %v2437_v1 = vld [vmem:[#allocation2 + $0x10] sm:$0xff] }
 0x22c   :  { %v2440_v14 = vld [vmem:[#allocation2 + $0x50] sm:$0xff] }
 0x22d   :  { %v8066_v53 = vpop.eup %8065  ;;  %8077 = vpow2.f32 %v6686_v62 }
 0x22e   :  { %v8068_v58 = vpop.eup %8067  ;;  %v2106_v61 = vmul.f32 %v8066_v53, %v8064_v15 }
 0x22f   :  { %v2105_v63 = vmul.f32 %v8068_v58, %v8958_v57 }
 0x231   :  { %v8070_v2 = vpop.eup %8069  ;;  %v9056_v3 = vadd.f32 %v2106_v61, %v2105_v63  ;;  %v2446_v63 = vld [vmem:[#allocation2 + $0xd0] sm:$0xff] }
 0x232   :  { %v8072_v51 = vpop.eup %8071  ;;  %v2202_v52 = vadd.f32 1.0, %v8070_v2 }
 0x233   :  { %8079 = vtanh.f32 %v9056_v3  ;;  %v2279_v4 = vadd.f32 1.0, %v8072_v51 }
 0x234   :  { %8081 = vrcp.f32 %v2202_v52 }
 0x235   :  { %8083 = vrcp.f32 %v2279_v4 }
 0x236   :  { %v8074_v5 = vpop.eup %8073 }
 0x238   :  { %v8076_v6 = vpop.eup %8075 }
 0x23a   :  { %v8078_v54 = vpop.eup %8077 }
 0x23b   :  { %v2428_v17 = vadd.f32 1.0, %v8078_v54 }
 0x23d   :  { %8085 = vrcp.f32 %v2428_v17 }
 0x240   :  { %v8080_v55 = vpop.eup %8079 }
 0x241   :  { %v8082_v26 = vpop.eup %8081  ;;  %v2109_v27 = vmul.f32 %v8080_v55, %v8074_v5 }
 0x242   :  { %v8084_v57 = vpop.eup %8083  ;;  %v2432_v28 = vmul.f32 %v8082_v26, %v8076_v6  ;;  %v2443_v6 = vld [vmem:[#allocation2 + $0x90] sm:$0xff] }
 0x243   :  { %v2431_v18 = vmul.f32 %v8084_v57, %v8968_v7  ;;  %7477 = vmatmul.mubr.msk.f32.vlgmr.msra.gmra.mxu0 %vm198_vm2, %v2109_v27  ;;  %7488 = vmatmul.mubr.msk.f32.vlgmr.msra.gmra.mxu1 %vm198_vm2, %v2109_v27  ;;  %v9072_v7 = vld [vmem:[#allocation3 + $0x50] sm:$0xff] }
 0x244   :  { %7491 = vmatpush3.msra.mxu0 %v9062_v19  ;;  %7502 = vmatpush3.msra.mxu1 %v9065_v20 }
 0x245   :  { %v9068_v21 = vadd.f32 %v2432_v28, %v2431_v18  ;;  %7492 = vmatprep.subr.mxu0 %v8414_v16  ;;  %7503 = vmatprep.subr.mxu1 %v8414_v16  ;;  %v2760_v28 = vld [vmem:[#allocation2 + $0x128] sm:$0xff] }
 0x246   :  { %7493 = vmatpush3.msra.mxu0 %v9072_v7  ;;  %7504 = vmatpush3.msra.mxu1 %v9075_v22  ;;  %v2764_v18 = vld [vmem:[#allocation2 + $0x168] sm:$0xff] }
 0x247   :  { %8087 = vtanh.f32 %v9068_v21  ;;  %7494 = vmatprep.subr.mxu0 %v8414_v16  ;;  %7505 = vmatprep.subr.mxu1 %v8414_v16 }
 0x248   :  { %7495 = vmatpush3.msra.mxu0 %v9081_v29  ;;  %7506 = vmatpush3.msra.mxu1 %v9084_v23 }
 0x249   :  { %7496 = vmatprep.subr.mxu0 %v8414_v16  ;;  %7507 = vmatprep.subr.mxu1 %v8414_v16 }
 0x24a   :  { %7497 = vmatpush3.msra.mxu0 %v9089_v30  ;;  %7498 = vmatprep.mubr.msk.f32.mxu0 %vm8415_vm3, %v8414_v16  ;;  %v8086_v37 = vpop.eup %8085 }
 0x24b   :  { %7508 = vmatpush3.msra.mxu1 %v9094_v24  ;;  %7509 = vmatprep.mubr.msk.f32.mxu1 %vm8415_vm3, %v8414_v16 }
 0x24c   :  { %7499 = vmatmul.mubr.msk.f32.vlgmr.msra.gmra.mxu0 %vm198_vm2, %v2109_v27  ;;  %7510 = vmatmul.mubr.msk.f32.vlgmr.msra.gmra.mxu1 %vm198_vm2, %v2109_v27 }
 0x24d   :  { %7512 = vmatprep.subr.mxu0 %v8414_v16  ;;  %7523 = vmatprep.subr.mxu1 %v8414_v16 }
 0x24e   :  { %7513 = vmatpush3.msra.mxu0 %v9103_v31  ;;  %7524 = vmatpush3.msra.mxu1 %v9106_v32 }
 0x24f   :  { %7514 = vmatprep.subr.mxu0 %v8414_v16  ;;  %7525 = vmatprep.subr.mxu1 %v8414_v16 }
 0x250   :  { %7515 = vmatpush3.msra.mxu0 %v9111_v33  ;;  %7526 = vmatpush3.msra.mxu1 %v9114_v34 }
 0x251   :  { %7516 = vmatprep.subr.mxu0 %v8414_v16  ;;  %7527 = vmatprep.subr.mxu1 %v8414_v16 }
 0x252   :  { %7517 = vmatpush3.msra.mxu0 %v9119_v35  ;;  %7528 = vmatpush3.msra.mxu1 %v9122_v36 }
 0x253   :  { %7518 = vmatprep.subr.mxu0 %v8414_v16  ;;  %7529 = vmatprep.subr.mxu1 %v8414_v16 }
 0x254   :  { %v8088_v38 = vpop.eup %8087  ;;  %7519 = vmatpush3.msra.mxu0 %v9127_v39  ;;  %7520 = vmatprep.mubr.msk.f32.mxu0 %vm8415_vm3, %v8414_v16 }
 0x255   :  { %7530 = vmatpush3.msra.mxu1 %v9132_v40  ;;  %7531 = vmatprep.mubr.msk.f32.mxu1 %vm8415_vm3, %v8414_v16  ;;  %v2435_v41 = vmul.f32 %v8088_v38, %v8086_v37 }
 0x256   :  { %7534 = vmatprep.subr.mxu0 %v8414_v16  ;;  %7545 = vmatprep.subr.mxu1 %v8414_v16 }
 0x257   :  { %7521 = vmatmul.mubr.msk.f32.vlgmr.msra.gmra.mxu0 %vm198_vm2, %v2435_v41  ;;  %7532 = vmatmul.mubr.msk.f32.vlgmr.msra.gmra.mxu1 %vm198_vm2, %v2435_v41 }
 0x258   :  { %7535 = vmatpush3.msra.mxu0 %v9141_v43  ;;  %7546 = vmatpush3.msra.mxu1 %v9144_v44 }
 0x259   :  { %7536 = vmatprep.subr.mxu0 %v8414_v16  ;;  %7547 = vmatprep.subr.mxu1 %v8414_v16 }
 0x25a   :  { %7537 = vmatpush3.msra.mxu0 %v9149_v45  ;;  %7548 = vmatpush3.msra.mxu1 %v9152_v46 }
 0x25b   :  { %7538 = vmatprep.subr.mxu0 %v8414_v16  ;;  %7549 = vmatprep.subr.mxu1 %v8414_v16 }
 0x25c   :  { %7539 = vmatpush3.msra.mxu0 %v9157_v47  ;;  %7550 = vmatpush3.msra.mxu1 %v9160_v48 }
 0x25d   :  { %7540 = vmatprep.subr.mxu0 %v8414_v16  ;;  %7551 = vmatprep.subr.mxu1 %v8414_v16 }
 0x25e   :  { %7541 = vmatpush3.msra.mxu0 %v9165_v49  ;;  %7542 = vmatprep.mubr.msk.f32.mxu0 %vm8415_vm3, %v8414_v16 }
 0x25f   :  { %7552 = vmatpush3.msra.mxu1 %v9170_v50  ;;  %7553 = vmatprep.mubr.msk.f32.mxu1 %vm8415_vm3, %v8414_v16 }
 0x260   :  { %7543 = vmatmul.mubr.msk.f32.vlgmr.msra.gmra.mxu0 %vm198_vm2, %v2435_v41  ;;  %7554 = vmatmul.mubr.msk.f32.vlgmr.msra.gmra.mxu1 %vm198_vm2, %v2435_v41 }
 0x261   :  { %7556 = vmatprep.subr.mxu0 %v8414_v16  ;;  %7567 = vmatprep.subr.mxu1 %v8414_v16 }
 0x262   :  { %7557 = vmatpush3.msra.mxu0 %v9179_v8  ;;  %7568 = vmatpush3.msra.mxu1 %v9182_v9 }
 0x263   :  { %7558 = vmatprep.subr.mxu0 %v8414_v16  ;;  %7569 = vmatprep.subr.mxu1 %v8414_v16 }
 0x264   :  { %7559 = vmatpush3.msra.mxu0 %v9187_v59  ;;  %7570 = vmatpush3.msra.mxu1 %v9190_v60 }
 0x265   :  { %7560 = vmatprep.subr.mxu0 %v8414_v16  ;;  %7571 = vmatprep.subr.mxu1 %v8414_v16 }
 0x266   :  { %7561 = vmatpush3.msra.mxu0 %v9195_v10  ;;  %7572 = vmatpush3.msra.mxu1 %v9198_v11 }
 0x267   :  { %7562 = vmatprep.subr.mxu0 %v8414_v16  ;;  %7573 = vmatprep.subr.mxu1 %v8414_v16 }
 0x268   :  { %7563 = vmatpush3.msra.mxu0 %v9203_v12  ;;  %7574 = vmatpush3.msra.mxu1 %v9206_v0 }
 0x269   :  { %7564 = vmatprep.mubr.msk.f32.mxu0 %vm8415_vm3, %v8414_v16  ;;  %7575 = vmatprep.mubr.msk.f32.mxu1 %vm8415_vm3, %v8414_v16 }
 0x26a   :  { %7578 = vmatprep.subr.mxu0 %v8414_v16  ;;  %7589 = vmatprep.subr.mxu1 %v8414_v16 }
 0x303   :  { %v2516_v13 = vpop.f32.mrf.mxu0  ;;  %v2593_v15 = vpop.f32.mrf.mxu1 }
 0x304   :  { %v2520_v25 = vadd.f32 %v2516_v13, %v2437_v1  ;;  %v2597_v42 = vadd.f32 %v2593_v15, %v2440_v14 }
 0x305   :  { %v7478_v53 = vpop.f32.mrf.mxu0  ;;  %v7489_v56 = vpop.f32.mrf.mxu1 }
 0x306   :  { %v6688_v58 = vmul.f32 -1.442695, %v2520_v25  ;;  %v6690_v61 = vmul.f32 -1.442695, %v2597_v42  ;;  %v2772_v56 = vld [vmem:[#allocation2 + $0x1e8] sm:$0xff] }
 0x308   :  { %8089 = vpow2.f32 %v6688_v58 }
 0x309   :  { %8091 = vpow2.f32 %v6690_v61 }
 0x30c   :  { %v2670_v62 = vpop.f32.mrf.mxu0  ;;  %v2742_v2 = vpop.f32.mrf.mxu1 }
 0x30d   :  { %v2746_v51 = vadd.f32 %v2742_v2, %v2446_v63  ;;  %v2674_v54 = vadd.f32 %v2670_v62, %v2443_v6 }
 0x30e   :  { %v7500_v52 = vpop.f32.mrf.mxu0  ;;  %v7511_v4 = vpop.f32.mrf.mxu1 }
 0x30f   :  { %v6693_v5 = vmul.f32 -1.442695, %v2746_v51  ;;  %v2768_v51 = vld [vmem:[#allocation2 + $0x1a8] sm:$0xff] }
 0x311   :  { %8093 = vpow2.f32 %v6693_v5 }
 0x312   :  { %8095 = vtanh.f32 %v2674_v54 }
 0x315   :  { %v8090_v55 = vpop.eup %8089 }
 0x316   :  { %v8092_v26 = vpop.eup %8091  ;;  %v2524_v27 = vadd.f32 1.0, %v8090_v55 }
 0x317   :  { %v2601_v57 = vadd.f32 1.0, %v8092_v26  ;;  %v2842_v17 = vpop.f32.mrf.mxu0  ;;  %v2919_v37 = vpop.f32.mrf.mxu1 }
 0x318   :  { %8097 = vrcp.f32 %v2524_v27  ;;  %v2846_v38 = vadd.f32 %v2842_v17, %v2760_v28  ;;  %v2923_v41 = vadd.f32 %v2919_v37, %v2764_v18 }
 0x319   :  { %8099 = vrcp.f32 %v2601_v57  ;;  %v7522_v1 = vpop.f32.mrf.mxu0  ;;  %v7533_v13 = vpop.f32.mrf.mxu1 }
 0x31a   :  { %v6695_v14 = vmul.f32 -1.442695, %v2846_v38  ;;  %v6697_v15 = vmul.f32 -1.442695, %v2923_v41 }
 0x31c   :  { %8101 = vpow2.f32 %v6695_v14 }
 0x31d   :  { %8103 = vpow2.f32 %v6697_v15 }
 0x31e   :  { %v8094_v53 = vpop.eup %8093 }
 0x31f   :  { %v8096_v63 = vpop.eup %8095  ;;  %v2750_v2 = vadd.f32 1.0, %v8094_v53 }
 0x320   :  { %v2996_v25 = vpop.f32.mrf.mxu0  ;;  %v3068_v42 = vpop.f32.mrf.mxu1 }
 0x321   :  { %v3072_v58 = vadd.f32 %v3068_v42, %v2772_v56  ;;  %v3000_v4 = vadd.f32 %v2996_v25, %v2768_v51  ;;  %8105 = vrcp.f32 %v2750_v2 }
 0x322   :  { %v7544_v61 = vpop.f32.mrf.mxu0  ;;  %v7555_v62 = vpop.f32.mrf.mxu1 }
 0x323   :  { %v6700_v54 = vmul.f32 -1.442695, %v3072_v58  ;;  %8107 = vtanh.f32 %v3000_v4  ;;  %v3085_v58 = vld [vmem:[#allocation2 + $0x18] sm:$0xff] }
 0x324   :  { %v3088_v62 = vld [vmem:[#allocation2 + $0x58] sm:$0xff] }
 0x325   :  { %v8098_v52 = vpop.eup %8097  ;;  %8109 = vpow2.f32 %v6700_v54 }
 0x326   :  { %v8100_v5 = vpop.eup %8099  ;;  %v2754_v6 = vmul.f32 %v8098_v52, %v8096_v63 }
 0x327   :  { %v2753_v55 = vmul.f32 %v8100_v5, %v9056_v3 }
 0x329   :  { %v8102_v26 = vpop.eup %8101  ;;  %v9216_v27 = vadd.f32 %v2754_v6, %v2753_v55  ;;  %v3094_v55 = vld [vmem:[#allocation2 + $0xd8] sm:$0xff] }
 0x32a   :  { %v8104_v57 = vpop.eup %8103  ;;  %v2850_v28 = vadd.f32 1.0, %v8102_v26 }
 0x32b   :  { %8111 = vtanh.f32 %v9216_v27  ;;  %v2927_v17 = vadd.f32 1.0, %v8104_v57 }
 0x32c   :  { %8113 = vrcp.f32 %v2850_v28 }
 0x32d   :  { %8115 = vrcp.f32 %v2927_v17 }
 0x32e   :  { %v8106_v18 = vpop.eup %8105 }
 0x330   :  { %v8108_v37 = vpop.eup %8107 }
 0x332   :  { %v8110_v38 = vpop.eup %8109 }
 0x333   :  { %v3076_v15 = vadd.f32 1.0, %v8110_v38 }
 0x335   :  { %8117 = vrcp.f32 %v3076_v15 }
 0x338   :  { %v8112_v41 = vpop.eup %8111 }
 0x339   :  { %v8114_v1 = vpop.eup %8113  ;;  %v2757_v13 = vmul.f32 %v8112_v41, %v8106_v18 }
 0x33a   :  { %v8116_v3 = vpop.eup %8115  ;;  %v3080_v14 = vmul.f32 %v8114_v1, %v8108_v37  ;;  %v3091_v37 = vld [vmem:[#allocation2 + $0x98] sm:$0xff] }
 0x33b   :  { %v3079_v25 = vmul.f32 %v8116_v3, %v9068_v21  ;;  %7565 = vmatmul.mubr.msk.f32.vlgmr.msra.gmra.mxu0 %vm198_vm2, %v2757_v13  ;;  %7576 = vmatmul.mubr.msk.f32.vlgmr.msra.gmra.mxu1 %vm198_vm2, %v2757_v13 }
 0x33c   :  { %7579 = vmatpush3.msra.mxu0 %v9062_v19  ;;  %7590 = vmatpush3.msra.mxu1 %v9065_v20 }
 0x33d   :  { %v9224_v42 = vadd.f32 %v3080_v14, %v3079_v25  ;;  %7580 = vmatprep.subr.mxu0 %v8414_v16  ;;  %7591 = vmatprep.subr.mxu1 %v8414_v16  ;;  %v3408_v14 = vld [vmem:[#allocation2 + $0x120] sm:$0xff] }
 0x33e   :  { %7581 = vmatpush3.msra.mxu0 %v9072_v7  ;;  %7592 = vmatpush3.msra.mxu1 %v9075_v22  ;;  %v3412_v25 = vld [vmem:[#allocation2 + $0x160] sm:$0xff] }
 0x33f   :  { %8119 = vtanh.f32 %v9224_v42  ;;  %7582 = vmatprep.subr.mxu0 %v8414_v16  ;;  %7593 = vmatprep.subr.mxu1 %v8414_v16 }
 0x340   :  { %7583 = vmatpush3.msra.mxu0 %v9081_v29  ;;  %7594 = vmatpush3.msra.mxu1 %v9084_v23 }
 0x341   :  { %7584 = vmatprep.subr.mxu0 %v8414_v16  ;;  %7595 = vmatprep.subr.mxu1 %v8414_v16 }
 0x342   :  { %7585 = vmatpush3.msra.mxu0 %v9089_v30  ;;  %7586 = vmatprep.mubr.msk.f32.mxu0 %vm8415_vm3, %v8414_v16  ;;  %v8118_v21 = vpop.eup %8117 }
 0x343   :  { %7596 = vmatpush3.msra.mxu1 %v9094_v24  ;;  %7597 = vmatprep.mubr.msk.f32.mxu1 %vm8415_vm3, %v8414_v16 }
 0x344   :  { %7587 = vmatmul.mubr.msk.f32.vlgmr.msra.gmra.mxu0 %vm198_vm2, %v2757_v13  ;;  %7598 = vmatmul.mubr.msk.f32.vlgmr.msra.gmra.mxu1 %vm198_vm2, %v2757_v13 }
 0x345   :  { %7600 = vmatprep.subr.mxu0 %v8414_v16  ;;  %7611 = vmatprep.subr.mxu1 %v8414_v16 }
 0x346   :  { %7601 = vmatpush3.msra.mxu0 %v9103_v31  ;;  %7612 = vmatpush3.msra.mxu1 %v9106_v32 }
 0x347   :  { %7602 = vmatprep.subr.mxu0 %v8414_v16  ;;  %7613 = vmatprep.subr.mxu1 %v8414_v16 }
 0x348   :  { %7603 = vmatpush3.msra.mxu0 %v9111_v33  ;;  %7614 = vmatpush3.msra.mxu1 %v9114_v34 }
 0x349   :  { %7604 = vmatprep.subr.mxu0 %v8414_v16  ;;  %7615 = vmatprep.subr.mxu1 %v8414_v16 }
 0x34a   :  { %7605 = vmatpush3.msra.mxu0 %v9119_v35  ;;  %7616 = vmatpush3.msra.mxu1 %v9122_v36 }
 0x34b   :  { %7606 = vmatprep.subr.mxu0 %v8414_v16  ;;  %7617 = vmatprep.subr.mxu1 %v8414_v16 }
 0x34c   :  { %v8120_v53 = vpop.eup %8119  ;;  %7607 = vmatpush3.msra.mxu0 %v9127_v39  ;;  %7608 = vmatprep.mubr.msk.f32.mxu0 %vm8415_vm3, %v8414_v16 }
 0x34d   :  { %7618 = vmatpush3.msra.mxu1 %v9132_v40  ;;  %7619 = vmatprep.mubr.msk.f32.mxu1 %vm8415_vm3, %v8414_v16  ;;  %v3083_v56 = vmul.f32 %v8120_v53, %v8118_v21 }
 0x34e   :  { %7622 = vmatprep.subr.mxu0 %v8414_v16  ;;  %7633 = vmatprep.subr.mxu1 %v8414_v16 }
 0x34f   :  { %7609 = vmatmul.mubr.msk.f32.vlgmr.msra.gmra.mxu0 %vm198_vm2, %v3083_v56  ;;  %7620 = vmatmul.mubr.msk.f32.vlgmr.msra.gmra.mxu1 %vm198_vm2, %v3083_v56 }
 0x350   :  { %7623 = vmatpush3.msra.mxu0 %v9141_v43  ;;  %7634 = vmatpush3.msra.mxu1 %v9144_v44 }
 0x351   :  { %7624 = vmatprep.subr.mxu0 %v8414_v16  ;;  %7635 = vmatprep.subr.mxu1 %v8414_v16 }
 0x352   :  { %7625 = vmatpush3.msra.mxu0 %v9149_v45  ;;  %7636 = vmatpush3.msra.mxu1 %v9152_v46 }
 0x353   :  { %7626 = vmatprep.subr.mxu0 %v8414_v16  ;;  %7637 = vmatprep.subr.mxu1 %v8414_v16 }
 0x354   :  { %7627 = vmatpush3.msra.mxu0 %v9157_v47  ;;  %7638 = vmatpush3.msra.mxu1 %v9160_v48 }
 0x355   :  { %7628 = vmatprep.subr.mxu0 %v8414_v16  ;;  %7639 = vmatprep.subr.mxu1 %v8414_v16 }
 0x356   :  { %7629 = vmatpush3.msra.mxu0 %v9165_v49  ;;  %7630 = vmatprep.mubr.msk.f32.mxu0 %vm8415_vm3, %v8414_v16 }
 0x357   :  { %7640 = vmatpush3.msra.mxu1 %v9170_v50  ;;  %7641 = vmatprep.mubr.msk.f32.mxu1 %vm8415_vm3, %v8414_v16 }
 0x358   :  { %7631 = vmatmul.mubr.msk.f32.vlgmr.msra.gmra.mxu0 %vm198_vm2, %v3083_v56  ;;  %7642 = vmatmul.mubr.msk.f32.vlgmr.msra.gmra.mxu1 %vm198_vm2, %v3083_v56 }
 0x359   :  { %7644 = vmatprep.subr.mxu0 %v8414_v16  ;;  %7655 = vmatprep.subr.mxu1 %v8414_v16 }
 0x35a   :  { %7645 = vmatpush3.msra.mxu0 %v9179_v8  ;;  %7656 = vmatpush3.msra.mxu1 %v9182_v9 }
 0x35b   :  { %7646 = vmatprep.subr.mxu0 %v8414_v16  ;;  %7657 = vmatprep.subr.mxu1 %v8414_v16 }
 0x35c   :  { %7647 = vmatpush3.msra.mxu0 %v9187_v59  ;;  %7658 = vmatpush3.msra.mxu1 %v9190_v60 }
 0x35d   :  { %7648 = vmatprep.subr.mxu0 %v8414_v16  ;;  %7659 = vmatprep.subr.mxu1 %v8414_v16 }
 0x35e   :  { %7649 = vmatpush3.msra.mxu0 %v9195_v10  ;;  %7660 = vmatpush3.msra.mxu1 %v9198_v11 }
 0x35f   :  { %7650 = vmatprep.subr.mxu0 %v8414_v16  ;;  %7661 = vmatprep.subr.mxu1 %v8414_v16 }
 0x360   :  { %7651 = vmatpush3.msra.mxu0 %v9203_v12  ;;  %7662 = vmatpush3.msra.mxu1 %v9206_v0 }
 0x361   :  { %7652 = vmatprep.mubr.msk.f32.mxu0 %vm8415_vm3, %v8414_v16  ;;  %7663 = vmatprep.mubr.msk.f32.mxu1 %vm8415_vm3, %v8414_v16 }
 0x362   :  { %7666 = vmatprep.subr.mxu0 %v8414_v16  ;;  %7677 = vmatprep.subr.mxu1 %v8414_v16 }
 0x3fb   :  { %v3164_v61 = vpop.f32.mrf.mxu0  ;;  %v3241_v63 = vpop.f32.mrf.mxu1 }
 0x3fc   :  { %v3168_v2 = vadd.f32 %v3164_v61, %v3085_v58  ;;  %v3245_v51 = vadd.f32 %v3241_v63, %v3088_v62 }
 0x3fd   :  { %v7566_v52 = vpop.f32.mrf.mxu0  ;;  %v7577_v4 = vpop.f32.mrf.mxu1 }
 0x3fe   :  { %v6702_v5 = vmul.f32 -1.442695, %v3168_v2  ;;  %v6704_v6 = vmul.f32 -1.442695, %v3245_v51  ;;  %v3420_v4 = vld [vmem:[#allocation2 + $0x1e0] sm:$0xff] }
 0x400   :  { %8121 = vpow2.f32 %v6702_v5 }
 0x401   :  { %8123 = vpow2.f32 %v6704_v6 }
 0x404   :  { %v3318_v54 = vpop.f32.mrf.mxu0  ;;  %v3390_v26 = vpop.f32.mrf.mxu1 }
 0x405   :  { %v3394_v57 = vadd.f32 %v3390_v26, %v3094_v55  ;;  %v3322_v38 = vadd.f32 %v3318_v54, %v3091_v37 }
 0x406   :  { %v7588_v28 = vpop.f32.mrf.mxu0  ;;  %v7599_v17 = vpop.f32.mrf.mxu1 }
 0x407   :  { %v6707_v18 = vmul.f32 -1.442695, %v3394_v57  ;;  %v3416_v57 = vld [vmem:[#allocation2 + $0x1a0] sm:$0xff] }
 0x409   :  { %8125 = vpow2.f32 %v6707_v18 }
 0x40a   :  { %8127 = vtanh.f32 %v3322_v38 }
 0x40d   :  { %v8122_v41 = vpop.eup %8121 }
 0x40e   :  { %v8124_v1 = vpop.eup %8123  ;;  %v3172_v13 = vadd.f32 1.0, %v8122_v41 }
 0x40f   :  { %v3249_v3 = vadd.f32 1.0, %v8124_v1  ;;  %v3490_v15 = vpop.f32.mrf.mxu0  ;;  %v3567_v21 = vpop.f32.mrf.mxu1 }
 0x410   :  { %8129 = vrcp.f32 %v3172_v13  ;;  %v3494_v53 = vadd.f32 %v3490_v15, %v3408_v14  ;;  %v3571_v56 = vadd.f32 %v3567_v21, %v3412_v25 }
 0x411   :  { %8131 = vrcp.f32 %v3249_v3  ;;  %v7610_v58 = vpop.f32.mrf.mxu0  ;;  %v7621_v61 = vpop.f32.mrf.mxu1 }
 0x412   :  { %v6709_v62 = vmul.f32 -1.442695, %v3494_v53  ;;  %v6711_v63 = vmul.f32 -1.442695, %v3571_v56 }
 0x414   :  { %8133 = vpow2.f32 %v6709_v62 }
 0x415   :  { %8135 = vpow2.f32 %v6711_v63 }
 0x416   :  { %v8126_v52 = vpop.eup %8125 }
 0x417   :  { %v8128_v55 = vpop.eup %8127  ;;  %v3398_v26 = vadd.f32 1.0, %v8126_v52 }
 0x418   :  { %v3644_v2 = vpop.f32.mrf.mxu0  ;;  %v3716_v51 = vpop.f32.mrf.mxu1 }
 0x419   :  { %v3720_v5 = vadd.f32 %v3716_v51, %v3420_v4  ;;  %v3648_v17 = vadd.f32 %v3644_v2, %v3416_v57  ;;  %8137 = vrcp.f32 %v3398_v26 }
 0x41a   :  { %v7632_v6 = vpop.f32.mrf.mxu0  ;;  %v7643_v54 = vpop.f32.mrf.mxu1 }
 0x41b   :  { %v6714_v38 = vmul.f32 -1.442695, %v3720_v5  ;;  %8139 = vtanh.f32 %v3648_v17  ;;  %v3733_v5 = vld [vmem:[#allocation2 + $0x20] sm:$0xff] }
 0x41c   :  { %v3735_v54 = vld [vmem:[#allocation2 + $0x60] sm:$0xff] }
 0x41d   :  { %v8130_v28 = vpop.eup %8129  ;;  %8141 = vpow2.f32 %v6714_v38 }
 0x41e   :  { %v8132_v18 = vpop.eup %8131  ;;  %v3402_v37 = vmul.f32 %v8130_v28, %v8128_v55 }
 0x41f   :  { %v3401_v41 = vmul.f32 %v8132_v18, %v9216_v27 }
 0x421   :  { %v8134_v1 = vpop.eup %8133  ;;  %v9312_v13 = vadd.f32 %v3402_v37, %v3401_v41  ;;  %v3739_v41 = vld [vmem:[#allocation2 + $0xe0] sm:$0xff] }
 0x422   :  { %v8136_v3 = vpop.eup %8135  ;;  %v3498_v14 = vadd.f32 1.0, %v8134_v1 }
 0x423   :  { %8143 = vtanh.f32 %v9312_v13  ;;  %v3575_v15 = vadd.f32 1.0, %v8136_v3 }
 0x424   :  { %8145 = vrcp.f32 %v3498_v14 }
 0x425   :  { %8147 = vrcp.f32 %v3575_v15 }
 0x426   :  { %v8138_v25 = vpop.eup %8137 }
 0x428   :  { %v8140_v21 = vpop.eup %8139 }
 0x42a   :  { %v8142_v53 = vpop.eup %8141 }
 0x42b   :  { %v3724_v63 = vadd.f32 1.0, %v8142_v53 }
 0x42d   :  { %8149 = vrcp.f32 %v3724_v63 }
 0x430   :  { %v8144_v56 = vpop.eup %8143 }
 0x431   :  { %v8146_v58 = vpop.eup %8145  ;;  %v3405_v61 = vmul.f32 %v8144_v56, %v8138_v25 }
 0x432   :  { %v8148_v27 = vpop.eup %8147  ;;  %v3728_v62 = vmul.f32 %v8146_v58, %v8140_v21  ;;  %v3737_v21 = vld [vmem:[#allocation2 + $0xa0] sm:$0xff] }
 0x433   :  { %v3727_v2 = vmul.f32 %v8148_v27, %v9224_v42  ;;  %7653 = vmatmul.mubr.msk.f32.vlgmr.msra.gmra.mxu0 %vm198_vm2, %v3405_v61  ;;  %7664 = vmatmul.mubr.msk.f32.vlgmr.msra.gmra.mxu1 %vm198_vm2, %v3405_v61 }
 0x434   :  { %7667 = vmatpush3.msra.mxu0 %v9062_v19  ;;  %7678 = vmatpush3.msra.mxu1 %v9065_v20 }
 0x435   :  { %v9320_v51 = vadd.f32 %v3728_v62, %v3727_v2  ;;  %7668 = vmatprep.subr.mxu0 %v8414_v16  ;;  %7679 = vmatprep.subr.mxu1 %v8414_v16  ;;  %v4053_v62 = vld [vmem:[#allocation2 + $0x118] sm:$0xff] }
 0x436   :  { %7669 = vmatpush3.msra.mxu0 %v9072_v7  ;;  %7680 = vmatpush3.msra.mxu1 %v9075_v22  ;;  %v4056_v2 = vld [vmem:[#allocation2 + $0x158] sm:$0xff] }
 0x437   :  { %8151 = vtanh.f32 %v9320_v51  ;;  %7670 = vmatprep.subr.mxu0 %v8414_v16  ;;  %7681 = vmatprep.subr.mxu1 %v8414_v16 }
 0x438   :  { %7671 = vmatpush3.msra.mxu0 %v9081_v29  ;;  %7682 = vmatpush3.msra.mxu1 %v9084_v23 }
 0x439   :  { %7672 = vmatprep.subr.mxu0 %v8414_v16  ;;  %7683 = vmatprep.subr.mxu1 %v8414_v16 }
 0x43a   :  { %7673 = vmatpush3.msra.mxu0 %v9089_v30  ;;  %7674 = vmatprep.mubr.msk.f32.mxu0 %vm8415_vm3, %v8414_v16  ;;  %v8150_v42 = vpop.eup %8149 }
 0x43b   :  { %7684 = vmatpush3.msra.mxu1 %v9094_v24  ;;  %7685 = vmatprep.mubr.msk.f32.mxu1 %vm8415_vm3, %v8414_v16 }
 0x43c   :  { %7675 = vmatmul.mubr.msk.f32.vlgmr.msra.gmra.mxu0 %vm198_vm2, %v3405_v61  ;;  %7686 = vmatmul.mubr.msk.f32.vlgmr.msra.gmra.mxu1 %vm198_vm2, %v3405_v61 }
 0x43d   :  { %7688 = vmatprep.subr.mxu0 %v8414_v16  ;;  %7699 = vmatprep.subr.mxu1 %v8414_v16 }
 0x43e   :  { %7689 = vmatpush3.msra.mxu0 %v9103_v31  ;;  %7700 = vmatpush3.msra.mxu1 %v9106_v32 }
 0x43f   :  { %7690 = vmatprep.subr.mxu0 %v8414_v16  ;;  %7701 = vmatprep.subr.mxu1 %v8414_v16 }
 0x440   :  { %7691 = vmatpush3.msra.mxu0 %v9111_v33  ;;  %7702 = vmatpush3.msra.mxu1 %v9114_v34 }
 0x441   :  { %7692 = vmatprep.subr.mxu0 %v8414_v16  ;;  %7703 = vmatprep.subr.mxu1 %v8414_v16 }
 0x442   :  { %7693 = vmatpush3.msra.mxu0 %v9119_v35  ;;  %7704 = vmatpush3.msra.mxu1 %v9122_v36 }
 0x443   :  { %7694 = vmatprep.subr.mxu0 %v8414_v16  ;;  %7705 = vmatprep.subr.mxu1 %v8414_v16 }
 0x444   :  { %v8152_v52 = vpop.eup %8151  ;;  %7695 = vmatpush3.msra.mxu0 %v9127_v39  ;;  %7696 = vmatprep.mubr.msk.f32.mxu0 %vm8415_vm3, %v8414_v16 }
 0x445   :  { %7706 = vmatpush3.msra.mxu1 %v9132_v40  ;;  %7707 = vmatprep.mubr.msk.f32.mxu1 %vm8415_vm3, %v8414_v16  ;;  %v3731_v4 = vmul.f32 %v8152_v52, %v8150_v42 }
 0x446   :  { %7710 = vmatprep.subr.mxu0 %v8414_v16  ;;  %7721 = vmatprep.subr.mxu1 %v8414_v16 }
 0x447   :  { %7697 = vmatmul.mubr.msk.f32.vlgmr.msra.gmra.mxu0 %vm198_vm2, %v3731_v4  ;;  %7708 = vmatmul.mubr.msk.f32.vlgmr.msra.gmra.mxu1 %vm198_vm2, %v3731_v4 }
 0x448   :  { %7711 = vmatpush3.msra.mxu0 %v9141_v43  ;;  %7722 = vmatpush3.msra.mxu1 %v9144_v44 }
 0x449   :  { %7712 = vmatprep.subr.mxu0 %v8414_v16  ;;  %7723 = vmatprep.subr.mxu1 %v8414_v16 }
 0x44a   :  { %7713 = vmatpush3.msra.mxu0 %v9149_v45  ;;  %7724 = vmatpush3.msra.mxu1 %v9152_v46 }
 0x44b   :  { %7714 = vmatprep.subr.mxu0 %v8414_v16  ;;  %7725 = vmatprep.subr.mxu1 %v8414_v16 }
 0x44c   :  { %7715 = vmatpush3.msra.mxu0 %v9157_v47  ;;  %7726 = vmatpush3.msra.mxu1 %v9160_v48 }
 0x44d   :  { %7716 = vmatprep.subr.mxu0 %v8414_v16  ;;  %7727 = vmatprep.subr.mxu1 %v8414_v16 }
 0x44e   :  { %7717 = vmatpush3.msra.mxu0 %v9165_v49  ;;  %7718 = vmatprep.mubr.msk.f32.mxu0 %vm8415_vm3, %v8414_v16 }
 0x44f   :  { %7728 = vmatpush3.msra.mxu1 %v9170_v50  ;;  %7729 = vmatprep.mubr.msk.f32.mxu1 %vm8415_vm3, %v8414_v16 }
 0x450   :  { %7719 = vmatmul.mubr.msk.f32.vlgmr.msra.gmra.mxu0 %vm198_vm2, %v3731_v4  ;;  %7730 = vmatmul.mubr.msk.f32.vlgmr.msra.gmra.mxu1 %vm198_vm2, %v3731_v4 }
 0x451   :  { %7732 = vmatprep.subr.mxu0 %v8414_v16  ;;  %7743 = vmatprep.subr.mxu1 %v8414_v16 }
 0x452   :  { %7733 = vmatpush3.msra.mxu0 %v9179_v8  ;;  %7744 = vmatpush3.msra.mxu1 %v9182_v9 }
 0x453   :  { %7734 = vmatprep.subr.mxu0 %v8414_v16  ;;  %7745 = vmatprep.subr.mxu1 %v8414_v16 }
 0x454   :  { %7735 = vmatpush3.msra.mxu0 %v9187_v59  ;;  %7746 = vmatpush3.msra.mxu1 %v9190_v60 }
 0x455   :  { %7736 = vmatprep.subr.mxu0 %v8414_v16  ;;  %7747 = vmatprep.subr.mxu1 %v8414_v16 }
 0x456   :  { %7737 = vmatpush3.msra.mxu0 %v9195_v10  ;;  %7748 = vmatpush3.msra.mxu1 %v9198_v11 }
 0x457   :  { %7738 = vmatprep.subr.mxu0 %v8414_v16  ;;  %7749 = vmatprep.subr.mxu1 %v8414_v16 }
 0x458   :  { %7739 = vmatpush3.msra.mxu0 %v9203_v12  ;;  %7750 = vmatpush3.msra.mxu1 %v9206_v0 }
 0x459   :  { %7740 = vmatprep.mubr.msk.f32.mxu0 %vm8415_vm3, %v8414_v16  ;;  %7751 = vmatprep.mubr.msk.f32.mxu1 %vm8415_vm3, %v8414_v16 }
 0x45a   :  { %7754 = vmatprep.subr.mxu0 %v8414_v16  ;;  %7765 = vmatprep.subr.mxu1 %v8414_v16 }
 0x4f3   :  { %v3809_v6 = vpop.f32.mrf.mxu0  ;;  %v3886_v55 = vpop.f32.mrf.mxu1 }
 0x4f4   :  { %v3813_v26 = vadd.f32 %v3809_v6, %v3733_v5  ;;  %v3890_v57 = vadd.f32 %v3886_v55, %v3735_v54 }
 0x4f5   :  { %v7654_v28 = vpop.f32.mrf.mxu0  ;;  %v7665_v17 = vpop.f32.mrf.mxu1 }
 0x4f6   :  { %v6716_v18 = vmul.f32 -1.442695, %v3813_v26  ;;  %v6718_v37 = vmul.f32 -1.442695, %v3890_v57  ;;  %v4062_v17 = vld [vmem:[#allocation2 + $0x1d8] sm:$0xff] }
 0x4f8   :  { %8153 = vpow2.f32 %v6716_v18 }
 0x4f9   :  { %8155 = vpow2.f32 %v6718_v37 }
 0x4fc   :  { %v3963_v38 = vpop.f32.mrf.mxu0  ;;  %v4035_v1 = vpop.f32.mrf.mxu1 }
 0x4fd   :  { %v4039_v3 = vadd.f32 %v4035_v1, %v3739_v41  ;;  %v3967_v53 = vadd.f32 %v3963_v38, %v3737_v21 }
 0x4fe   :  { %v7676_v14 = vpop.f32.mrf.mxu0  ;;  %v7687_v15 = vpop.f32.mrf.mxu1 }
 0x4ff   :  { %v6721_v25 = vmul.f32 -1.442695, %v4039_v3  ;;  %v4059_v3 = vld [vmem:[#allocation2 + $0x198] sm:$0xff] }
 0x501   :  { %8157 = vpow2.f32 %v6721_v25 }
 0x502   :  { %8159 = vtanh.f32 %v3967_v53 }
 0x505   :  { %v8154_v56 = vpop.eup %8153 }
 0x506   :  { %v8156_v58 = vpop.eup %8155  ;;  %v3817_v61 = vadd.f32 1.0, %v8154_v56 }
 0x507   :  { %v3894_v27 = vadd.f32 1.0, %v8156_v58  ;;  %v4132_v63 = vpop.f32.mrf.mxu0  ;;  %v4209_v42 = vpop.f32.mrf.mxu1 }
 0x508   :  { %8161 = vrcp.f32 %v3817_v61  ;;  %v4136_v52 = vadd.f32 %v4132_v63, %v4053_v62  ;;  %v4213_v4 = vadd.f32 %v4209_v42, %v4056_v2 }
 0x509   :  { %8163 = vrcp.f32 %v3894_v27  ;;  %v7698_v5 = vpop.f32.mrf.mxu0  ;;  %v7709_v6 = vpop.f32.mrf.mxu1 }
 0x50a   :  { %v6723_v54 = vmul.f32 -1.442695, %v4136_v52  ;;  %v6725_v55 = vmul.f32 -1.442695, %v4213_v4 }
 0x50c   :  { %8165 = vpow2.f32 %v6723_v54 }
 0x50d   :  { %8167 = vpow2.f32 %v6725_v55 }
 0x50e   :  { %v8158_v28 = vpop.eup %8157 }
 0x50f   :  { %v8160_v41 = vpop.eup %8159  ;;  %v4043_v1 = vadd.f32 1.0, %v8158_v28 }
 0x510   :  { %v4286_v26 = vpop.f32.mrf.mxu0  ;;  %v4358_v57 = vpop.f32.mrf.mxu1 }
 0x511   :  { %v4362_v18 = vadd.f32 %v4358_v57, %v4062_v17  ;;  %v4290_v15 = vadd.f32 %v4286_v26, %v4059_v3  ;;  %8169 = vrcp.f32 %v4043_v1  ;;  %v4704_v1 = vld [vmem:[#allocation2 + $0x1d0] sm:$0xff] }
 0x512   :  { %v7720_v37 = vpop.f32.mrf.mxu0  ;;  %v7731_v38 = vpop.f32.mrf.mxu1 }
 0x513   :  { %v6728_v53 = vmul.f32 -1.442695, %v4362_v18  ;;  %8171 = vtanh.f32 %v4290_v15 }
 0x515   :  { %v8162_v14 = vpop.eup %8161  ;;  %8173 = vpow2.f32 %v6728_v53  ;;  %v4701_v53 = vld [vmem:[#allocation2 + $0x190] sm:$0xff] }
 0x516   :  { %v8164_v25 = vpop.eup %8163  ;;  %v4047_v21 = vmul.f32 %v8162_v14, %v8160_v41 }
 0x517   :  { %v4046_v56 = vmul.f32 %v8164_v25, %v9312_v13 }
 0x519   :  { %v8166_v58 = vpop.eup %8165  ;;  %v9408_v61 = vadd.f32 %v4047_v21, %v4046_v56 }
 0x51a   :  { %v8168_v27 = vpop.eup %8167  ;;  %v4140_v62 = vadd.f32 1.0, %v8166_v58 }
 0x51b   :  { %8175 = vtanh.f32 %v9408_v61  ;;  %v4217_v63 = vadd.f32 1.0, %v8168_v27 }
 0x51c   :  { %8177 = vrcp.f32 %v4140_v62 }
 0x51d   :  { %8179 = vrcp.f32 %v4217_v63 }
 0x51e   :  { %v8170_v2 = vpop.eup %8169 }
 0x520   :  { %v8172_v42 = vpop.eup %8171 }
 0x522   :  { %v8174_v52 = vpop.eup %8173 }
 0x523   :  { %v4366_v55 = vadd.f32 1.0, %v8174_v52 }
 0x525   :  { %8181 = vrcp.f32 %v4366_v55 }
 0x528   :  { %v8176_v4 = vpop.eup %8175 }
 0x529   :  { %v8178_v5 = vpop.eup %8177  ;;  %v4050_v6 = vmul.f32 %v8176_v4, %v8170_v2 }
 0x52a   :  { %v8180_v13 = vpop.eup %8179  ;;  %v4370_v54 = vmul.f32 %v8178_v5, %v8172_v42 }
 0x52b   :  { %v4369_v26 = vmul.f32 %v8180_v13, %v9320_v51  ;;  %7741 = vmatmul.mubr.msk.f32.vlgmr.msra.gmra.mxu0 %vm198_vm2, %v4050_v6  ;;  %7752 = vmatmul.mubr.msk.f32.vlgmr.msra.gmra.mxu1 %vm198_vm2, %v4050_v6 }
 0x52c   :  { %7755 = vmatpush3.msra.mxu0 %v9062_v19  ;;  %7766 = vmatpush3.msra.mxu1 %v9065_v20 }
 0x52d   :  { %v9416_v57 = vadd.f32 %v4370_v54, %v4369_v26  ;;  %7756 = vmatprep.subr.mxu0 %v8414_v16  ;;  %7767 = vmatprep.subr.mxu1 %v8414_v16 }
 0x52e   :  { %7757 = vmatpush3.msra.mxu0 %v9072_v7  ;;  %7768 = vmatpush3.msra.mxu1 %v9075_v22  ;;  %v4375_v22 = vld [vmem:[#allocation2 + $0x28] sm:$0xff] }
 0x52f   :  { %8183 = vtanh.f32 %v9416_v57  ;;  %7758 = vmatprep.subr.mxu0 %v8414_v16  ;;  %7769 = vmatprep.subr.mxu1 %v8414_v16 }
 0x530   :  { %7759 = vmatpush3.msra.mxu0 %v9081_v29  ;;  %7770 = vmatpush3.msra.mxu1 %v9084_v23  ;;  %v4377_v23 = vld [vmem:[#allocation2 + $0x68] sm:$0xff] }
 0x531   :  { %7760 = vmatprep.subr.mxu0 %v8414_v16  ;;  %7771 = vmatprep.subr.mxu1 %v8414_v16 }
 0x532   :  { %7761 = vmatpush3.msra.mxu0 %v9089_v30  ;;  %7762 = vmatprep.mubr.msk.f32.mxu0 %vm8415_vm3, %v8414_v16  ;;  %v8182_v19 = vpop.eup %8181 }
 0x533   :  { %7772 = vmatpush3.msra.mxu1 %v9094_v24  ;;  %7773 = vmatprep.mubr.msk.f32.mxu1 %vm8415_vm3, %v8414_v16 }
 0x534   :  { %7763 = vmatmul.mubr.msk.f32.vlgmr.msra.gmra.mxu0 %vm198_vm2, %v4050_v6  ;;  %7774 = vmatmul.mubr.msk.f32.vlgmr.msra.gmra.mxu1 %vm198_vm2, %v4050_v6 }
 0x535   :  { %7776 = vmatprep.subr.mxu0 %v8414_v16  ;;  %7787 = vmatprep.subr.mxu1 %v8414_v16 }
 0x536   :  { %7777 = vmatpush3.msra.mxu0 %v9103_v31  ;;  %7788 = vmatpush3.msra.mxu1 %v9106_v32 }
 0x537   :  { %7778 = vmatprep.subr.mxu0 %v8414_v16  ;;  %7789 = vmatprep.subr.mxu1 %v8414_v16 }
 0x538   :  { %7779 = vmatpush3.msra.mxu0 %v9111_v33  ;;  %7790 = vmatpush3.msra.mxu1 %v9114_v34 }
 0x539   :  { %7780 = vmatprep.subr.mxu0 %v8414_v16  ;;  %7791 = vmatprep.subr.mxu1 %v8414_v16 }
 0x53a   :  { %7781 = vmatpush3.msra.mxu0 %v9119_v35  ;;  %7792 = vmatpush3.msra.mxu1 %v9122_v36 }
 0x53b   :  { %7782 = vmatprep.subr.mxu0 %v8414_v16  ;;  %7793 = vmatprep.subr.mxu1 %v8414_v16 }
 0x53c   :  { %v8184_v20 = vpop.eup %8183  ;;  %7783 = vmatpush3.msra.mxu0 %v9127_v39  ;;  %7784 = vmatprep.mubr.msk.f32.mxu0 %vm8415_vm3, %v8414_v16  ;;  %v4381_v39 = vld [vmem:[#allocation2 + $0xe8] sm:$0xff] }
 0x53d   :  { %7794 = vmatpush3.msra.mxu1 %v9132_v40  ;;  %7795 = vmatprep.mubr.msk.f32.mxu1 %vm8415_vm3, %v8414_v16  ;;  %v4373_v7 = vmul.f32 %v8184_v20, %v8182_v19 }
 0x53e   :  { %7798 = vmatprep.subr.mxu0 %v8414_v16  ;;  %7809 = vmatprep.subr.mxu1 %v8414_v16 }
 0x53f   :  { %7785 = vmatmul.mubr.msk.f32.vlgmr.msra.gmra.mxu0 %vm198_vm2, %v4373_v7  ;;  %7796 = vmatmul.mubr.msk.f32.vlgmr.msra.gmra.mxu1 %vm198_vm2, %v4373_v7 }
 0x540   :  { %7799 = vmatpush3.msra.mxu0 %v9141_v43  ;;  %7810 = vmatpush3.msra.mxu1 %v9144_v44 }
 0x541   :  { %7800 = vmatprep.subr.mxu0 %v8414_v16  ;;  %7811 = vmatprep.subr.mxu1 %v8414_v16 }
 0x542   :  { %7801 = vmatpush3.msra.mxu0 %v9149_v45  ;;  %7812 = vmatpush3.msra.mxu1 %v9152_v46 }
 0x543   :  { %7802 = vmatprep.subr.mxu0 %v8414_v16  ;;  %7813 = vmatprep.subr.mxu1 %v8414_v16 }
 0x544   :  { %7803 = vmatpush3.msra.mxu0 %v9157_v47  ;;  %7814 = vmatpush3.msra.mxu1 %v9160_v48  ;;  %v4379_v47 = vld [vmem:[#allocation2 + $0xa8] sm:$0xff] }
 0x545   :  { %7804 = vmatprep.subr.mxu0 %v8414_v16  ;;  %7815 = vmatprep.subr.mxu1 %v8414_v16 }
 0x546   :  { %7805 = vmatpush3.msra.mxu0 %v9165_v49  ;;  %7806 = vmatprep.mubr.msk.f32.mxu0 %vm8415_vm3, %v8414_v16 }
 0x547   :  { %7816 = vmatpush3.msra.mxu1 %v9170_v50  ;;  %7817 = vmatprep.mubr.msk.f32.mxu1 %vm8415_vm3, %v8414_v16 }
 0x548   :  { %7807 = vmatmul.mubr.msk.f32.vlgmr.msra.gmra.mxu0 %vm198_vm2, %v4373_v7  ;;  %7818 = vmatmul.mubr.msk.f32.vlgmr.msra.gmra.mxu1 %vm198_vm2, %v4373_v7 }
 0x549   :  { %7820 = vmatprep.subr.mxu0 %v8414_v16  ;;  %7831 = vmatprep.subr.mxu1 %v8414_v16 }
 0x54a   :  { %7821 = vmatpush3.msra.mxu0 %v9179_v8  ;;  %7832 = vmatpush3.msra.mxu1 %v9182_v9 }
 0x54b   :  { %7822 = vmatprep.subr.mxu0 %v8414_v16  ;;  %7833 = vmatprep.subr.mxu1 %v8414_v16 }
 0x54c   :  { %7823 = vmatpush3.msra.mxu0 %v9187_v59  ;;  %7834 = vmatpush3.msra.mxu1 %v9190_v60  ;;  %v4695_v59 = vld [vmem:[#allocation2 + $0x110] sm:$0xff] }
 0x54d   :  { %7824 = vmatprep.subr.mxu0 %v8414_v16  ;;  %7835 = vmatprep.subr.mxu1 %v8414_v16 }
 0x54e   :  { %7825 = vmatpush3.msra.mxu0 %v9195_v10  ;;  %7836 = vmatpush3.msra.mxu1 %v9198_v11  ;;  %v4698_v10 = vld [vmem:[#allocation2 + $0x150] sm:$0xff] }
 0x54f   :  { %7826 = vmatprep.subr.mxu0 %v8414_v16  ;;  %7837 = vmatprep.subr.mxu1 %v8414_v16 }
 0x550   :  { %7827 = vmatpush3.msra.mxu0 %v9203_v12  ;;  %7838 = vmatpush3.msra.mxu1 %v9206_v0 }
 0x551   :  { %7828 = vmatprep.mubr.msk.f32.mxu0 %vm8415_vm3, %v8414_v16  ;;  %7839 = vmatprep.mubr.msk.f32.mxu1 %vm8415_vm3, %v8414_v16 }
 0x552   :  { %7842 = vmatprep.subr.mxu0 %v8414_v16  ;;  %7853 = vmatprep.subr.mxu1 %v8414_v16 }
 0x5eb   :  { %v4451_v29 = vpop.f32.mrf.mxu0  ;;  %v4528_v30 = vpop.f32.mrf.mxu1 }
 0x5ec   :  { %v4455_v24 = vadd.f32 %v4451_v29, %v4375_v22  ;;  %v4532_v31 = vadd.f32 %v4528_v30, %v4377_v23  ;;  %v9510_v23 = vld [vmem:[#allocation3 + $0x58] sm:$0xff] }
 0x5ed   :  { %v7742_v32 = vpop.f32.mrf.mxu0  ;;  %v7753_v33 = vpop.f32.mrf.mxu1  ;;  %v9513_v30 = vld [vmem:[#allocation3 + $0x78] sm:$0xff] }
 0x5ee   :  { %v6730_v34 = vmul.f32 -1.442695, %v4455_v24  ;;  %v6732_v35 = vmul.f32 -1.442695, %v4532_v31  ;;  %v9523_v31 = vld [vmem:[#allocation3 + $0x70] sm:$0xff]  ;;  %v9529_v32 = vld [vmem:[#allocation3 + $0x48] sm:$0xff] }
 0x5ef   :  { %v9532_v33 = vld [vmem:[#allocation3 + $0x68] sm:$0xff] }
 0x5f0   :  { %8185 = vpow2.f32 %v6730_v34  ;;  %v9537_v34 = vld [vmem:[#allocation3 + $0x40] sm:$0xff] }
 0x5f1   :  { %8187 = vpow2.f32 %v6732_v35  ;;  %v9542_v35 = vld [vmem:[#allocation3 + $0x60] sm:$0xff] }
 0x5f4   :  { %v4605_v36 = vpop.f32.mrf.mxu0  ;;  %v4677_v40 = vpop.f32.mrf.mxu1 }
 0x5f5   :  { %v4681_v43 = vadd.f32 %v4677_v40, %v4381_v39  ;;  %v4609_v48 = vadd.f32 %v4605_v36, %v4379_v47  ;;  %v9551_v36 = vld [vmem:[#allocation3 + $0x98] sm:$0xff]  ;;  %v9559_v40 = vld [vmem:[#allocation3 + $0x90] sm:$0xff] }
 0x5f6   :  { %v7764_v44 = vpop.f32.mrf.mxu0  ;;  %v7775_v45 = vpop.f32.mrf.mxu1  ;;  %v9554_v39 = vld [vmem:[#allocation3 + $0xb8] sm:$0xff] }
 0x5f7   :  { %v6735_v46 = vmul.f32 -1.442695, %v4681_v43  ;;  %v9562_v43 = vld [vmem:[#allocation3 + $0xb0] sm:$0xff]  ;;  %v9567_v44 = vld [vmem:[#allocation3 + $0x88] sm:$0xff] }
 0x5f8   :  { %v9570_v45 = vld [vmem:[#allocation3 + $0xa8] sm:$0xff] }
 0x5f9   :  { %8189 = vpow2.f32 %v6735_v46 }
 0x5fa   :  { %8191 = vtanh.f32 %v4609_v48  ;;  %v9575_v48 = vld [vmem:[#allocation3 + $0x80] sm:$0xff] }
 0x5fd   :  { %v8186_v49 = vpop.eup %8185 }
 0x5fe   :  { %v8188_v50 = vpop.eup %8187  ;;  %v4459_v8 = vadd.f32 1.0, %v8186_v49  ;;  %v9580_v49 = vld [vmem:[#allocation3 + $0xa0] sm:$0xff] }
 0x5ff   :  { %v4536_v9 = vadd.f32 1.0, %v8188_v50  ;;  %v4774_v60 = vpop.f32.mrf.mxu0  ;;  %v4851_v11 = vpop.f32.mrf.mxu1 }
 0x600   :  { %8193 = vrcp.f32 %v4459_v8  ;;  %v4778_v12 = vadd.f32 %v4774_v60, %v4695_v59  ;;  %v4855_v0 = vadd.f32 %v4851_v11, %v4698_v10  ;;  %v9589_v8 = vld [vmem:[#allocation3 + $0xd8] sm:$0xff]  ;;  %v9597_v59 = vld [vmem:[#allocation3 + $0xd0] sm:$0xff]  ;;  %v9605_v10 = vld [vmem:[#allocation3 + $0xc8] sm:$0xff] }
 0x601   :  { %8195 = vrcp.f32 %v4536_v9  ;;  %v7786_v51 = vpop.f32.mrf.mxu0  ;;  %v7797_v28 = vpop.f32.mrf.mxu1  ;;  %v9592_v9 = vld [vmem:[#allocation3 + $0xf8] sm:$0xff]  ;;  %v9600_v60 = vld [vmem:[#allocation3 + $0xf0] sm:$0xff]  ;;  %v9608_v11 = vld [vmem:[#allocation3 + $0xe8] sm:$0xff] }
 0x602   :  { %v6737_v17 = vmul.f32 -1.442695, %v4778_v12  ;;  %v6739_v18 = vmul.f32 -1.442695, %v4855_v0  ;;  %v9613_v12 = vld [vmem:[#allocation3 + $0xc0] sm:$0xff]  ;;  %v8337_v51 = vld [vmem:[#allocation3 + $0x18] sm:$0xff] }
 0x603   :  { %v9618_v0 = vld [vmem:[#allocation3 + $0xe0] sm:$0xff]  ;;  %v8338_v28 = vld [vmem:[#allocation3 + $0x38] sm:$0xff] }
 0x604   :  { %8197 = vpow2.f32 %v6737_v17  ;;  %v8339_v17 = vld [vmem:[#allocation3 + $0x10] sm:$0xff] }
 0x605   :  { %8199 = vpow2.f32 %v6739_v18  ;;  %v8340_v18 = vld [vmem:[#allocation3 + $0x30] sm:$0xff] }
 0x606   :  { %v8190_v41 = vpop.eup %8189 }
 0x607   :  { %v8192_v25 = vpop.eup %8191  ;;  %v4685_v21 = vadd.f32 1.0, %v8190_v41  ;;  %v8343_v41 = vld [vmem:[#allocation3] sm:$0xff] }
 0x608   :  { %v4928_v37 = vpop.f32.mrf.mxu0  ;;  %v5000_v38 = vpop.f32.mrf.mxu1 }
 0x609   :  { %v5004_v3 = vadd.f32 %v5000_v38, %v4704_v1  ;;  %v4932_v58 = vadd.f32 %v4928_v37, %v4701_v53  ;;  %8201 = vrcp.f32 %v4685_v21  ;;  %v8341_v37 = vld [vmem:[#allocation3 + $0x8] sm:$0xff]  ;;  %v8344_v1 = vld [vmem:[#allocation3 + $0x20] sm:$0xff] }
 0x60a   :  { %v7808_v14 = vpop.f32.mrf.mxu0  ;;  %v7819_v15 = vpop.f32.mrf.mxu1  ;;  %v8342_v38 = vld [vmem:[#allocation3 + $0x28] sm:$0xff] }
 0x60b   :  { %v6742_v63 = vmul.f32 -1.442695, %v5004_v3  ;;  %8203 = vtanh.f32 %v4932_v58  ;;  %v5017_v3 = vld [vmem:[#allocation2 + $0x30] sm:$0xff] }
 0x60c   :  { %v5019_v15 = vld [vmem:[#allocation2 + $0x70] sm:$0xff] }
 0x60d   :  { %v8194_v56 = vpop.eup %8193  ;;  %8205 = vpow2.f32 %v6742_v63 }
 0x60e   :  { %v8196_v27 = vpop.eup %8195  ;;  %v4689_v62 = vmul.f32 %v8194_v56, %v8192_v25 }
 0x60f   :  { %v4688_v2 = vmul.f32 %v8196_v27, %v9408_v61 }
 0x611   :  { %v8198_v42 = vpop.eup %8197  ;;  %v9504_v52 = vadd.f32 %v4689_v62, %v4688_v2  ;;  %v5023_v2 = vld [vmem:[#allocation2 + $0xf0] sm:$0xff] }
 0x612   :  { %v8200_v4 = vpop.eup %8199  ;;  %v4782_v5 = vadd.f32 1.0, %v8198_v42 }
 0x613   :  { %8207 = vtanh.f32 %v9504_v52  ;;  %v4859_v6 = vadd.f32 1.0, %v8200_v4 }
 0x614   :  { %8209 = vrcp.f32 %v4782_v5 }
 0x615   :  { %8211 = vrcp.f32 %v4859_v6 }
 0x616   :  { %v8202_v13 = vpop.eup %8201 }
 0x618   :  { %v8204_v54 = vpop.eup %8203 }
 0x61a   :  { %v8206_v55 = vpop.eup %8205 }
 0x61b   :  { %v5008_v22 = vadd.f32 1.0, %v8206_v55 }
 0x61d   :  { %8213 = vrcp.f32 %v5008_v22 }
 0x620   :  { %v8208_v26 = vpop.eup %8207 }
 0x621   :  { %v8210_v19 = vpop.eup %8209  ;;  %v4692_v20 = vmul.f32 %v8208_v26, %v8202_v13 }
 0x622   :  { %v8212_v61 = vpop.eup %8211  ;;  %v5012_v7 = vmul.f32 %v8210_v19, %v8204_v54  ;;  %v5021_v54 = vld [vmem:[#allocation2 + $0xb0] sm:$0xff] }
 0x623   :  { %v5011_v29 = vmul.f32 %v8212_v61, %v9416_v57  ;;  %7829 = vmatmul.mubr.msk.f32.vlgmr.msra.gmra.mxu0 %vm198_vm2, %v4692_v20  ;;  %7840 = vmatmul.mubr.msk.f32.vlgmr.msra.gmra.mxu1 %vm198_vm2, %v4692_v20  ;;  %v9520_v57 = vld [vmem:[#allocation3 + $0x50] sm:$0xff] }
 0x624   :  { %7843 = vmatpush3.msra.mxu0 %v9510_v23  ;;  %7854 = vmatpush3.msra.mxu1 %v9513_v30 }
 0x625   :  { %v9516_v24 = vadd.f32 %v5012_v7, %v5011_v29  ;;  %7844 = vmatprep.subr.mxu0 %v8414_v16  ;;  %7855 = vmatprep.subr.mxu1 %v8414_v16  ;;  %v5337_v7 = vld [vmem:[#allocation2 + $0x108] sm:$0xff] }
 0x626   :  { %7845 = vmatpush3.msra.mxu0 %v9520_v57  ;;  %7856 = vmatpush3.msra.mxu1 %v9523_v31  ;;  %v5340_v29 = vld [vmem:[#allocation2 + $0x148] sm:$0xff] }
 0x627   :  { %8215 = vtanh.f32 %v9516_v24  ;;  %7846 = vmatprep.subr.mxu0 %v8414_v16  ;;  %7857 = vmatprep.subr.mxu1 %v8414_v16 }
 0x628   :  { %7847 = vmatpush3.msra.mxu0 %v9529_v32  ;;  %7858 = vmatpush3.msra.mxu1 %v9532_v33 }
 0x629   :  { %7848 = vmatprep.subr.mxu0 %v8414_v16  ;;  %7859 = vmatprep.subr.mxu1 %v8414_v16 }
 0x62a   :  { %7849 = vmatpush3.msra.mxu0 %v9537_v34  ;;  %7850 = vmatprep.mubr.msk.f32.mxu0 %vm8415_vm3, %v8414_v16  ;;  %v8214_v46 = vpop.eup %8213 }
 0x62b   :  { %7860 = vmatpush3.msra.mxu1 %v9542_v35  ;;  %7861 = vmatprep.mubr.msk.f32.mxu1 %vm8415_vm3, %v8414_v16 }
 0x62c   :  { %7851 = vmatmul.mubr.msk.f32.vlgmr.msra.gmra.mxu0 %vm198_vm2, %v4692_v20  ;;  %7862 = vmatmul.mubr.msk.f32.vlgmr.msra.gmra.mxu1 %vm198_vm2, %v4692_v20 }
 0x62d   :  { %7864 = vmatprep.subr.mxu0 %v8414_v16  ;;  %7875 = vmatprep.subr.mxu1 %v8414_v16 }
 0x62e   :  { %7865 = vmatpush3.msra.mxu0 %v9551_v36  ;;  %7876 = vmatpush3.msra.mxu1 %v9554_v39 }
 0x62f   :  { %7866 = vmatprep.subr.mxu0 %v8414_v16  ;;  %7877 = vmatprep.subr.mxu1 %v8414_v16 }
 0x630   :  { %7867 = vmatpush3.msra.mxu0 %v9559_v40  ;;  %7878 = vmatpush3.msra.mxu1 %v9562_v43 }
 0x631   :  { %7868 = vmatprep.subr.mxu0 %v8414_v16  ;;  %7879 = vmatprep.subr.mxu1 %v8414_v16 }
 0x632   :  { %7869 = vmatpush3.msra.mxu0 %v9567_v44  ;;  %7880 = vmatpush3.msra.mxu1 %v9570_v45 }
 0x633   :  { %7870 = vmatprep.subr.mxu0 %v8414_v16  ;;  %7881 = vmatprep.subr.mxu1 %v8414_v16 }
 0x634   :  { %v8216_v47 = vpop.eup %8215  ;;  %7871 = vmatpush3.msra.mxu0 %v9575_v48  ;;  %7872 = vmatprep.mubr.msk.f32.mxu0 %vm8415_vm3, %v8414_v16 }
 0x635   :  { %7882 = vmatpush3.msra.mxu1 %v9580_v49  ;;  %7883 = vmatprep.mubr.msk.f32.mxu1 %vm8415_vm3, %v8414_v16  ;;  %v5015_v50 = vmul.f32 %v8216_v47, %v8214_v46 }
 0x636   :  { %7886 = vmatprep.subr.mxu0 %v8414_v16  ;;  %7897 = vmatprep.subr.mxu1 %v8414_v16 }
 0x637   :  { %7873 = vmatmul.mubr.msk.f32.vlgmr.msra.gmra.mxu0 %vm198_vm2, %v5015_v50  ;;  %7884 = vmatmul.mubr.msk.f32.vlgmr.msra.gmra.mxu1 %vm198_vm2, %v5015_v50 }
 0x638   :  { %7887 = vmatpush3.msra.mxu0 %v9589_v8  ;;  %7898 = vmatpush3.msra.mxu1 %v9592_v9 }
 0x639   :  { %7888 = vmatprep.subr.mxu0 %v8414_v16  ;;  %7899 = vmatprep.subr.mxu1 %v8414_v16 }
 0x63a   :  { %7889 = vmatpush3.msra.mxu0 %v9597_v59  ;;  %7900 = vmatpush3.msra.mxu1 %v9600_v60 }
 0x63b   :  { %7890 = vmatprep.subr.mxu0 %v8414_v16  ;;  %7901 = vmatprep.subr.mxu1 %v8414_v16 }
 0x63c   :  { %7891 = vmatpush3.msra.mxu0 %v9605_v10  ;;  %7902 = vmatpush3.msra.mxu1 %v9608_v11 }
 0x63d   :  { %7892 = vmatprep.subr.mxu0 %v8414_v16  ;;  %7903 = vmatprep.subr.mxu1 %v8414_v16 }
 0x63e   :  { %7893 = vmatpush3.msra.mxu0 %v9613_v12  ;;  %7894 = vmatprep.mubr.msk.f32.mxu0 %vm8415_vm3, %v8414_v16 }
 0x63f   :  { %7904 = vmatpush3.msra.mxu1 %v9618_v0  ;;  %7905 = vmatprep.mubr.msk.f32.mxu1 %vm8415_vm3, %v8414_v16 }
 0x640   :  { %7895 = vmatmul.mubr.msk.f32.vlgmr.msra.gmra.mxu0 %vm198_vm2, %v5015_v50  ;;  %7906 = vmatmul.mubr.msk.f32.vlgmr.msra.gmra.mxu1 %vm198_vm2, %v5015_v50 }
 0x641   :  { %7908 = vmatprep.subr.mxu0 %v8414_v16  ;;  %7919 = vmatprep.subr.mxu1 %v8414_v16 }
 0x642   :  { %7909 = vmatpush3.msra.mxu0 %v8337_v51  ;;  %7920 = vmatpush3.msra.mxu1 %v8338_v28 }
 0x643   :  { %7910 = vmatprep.subr.mxu0 %v8414_v16  ;;  %7921 = vmatprep.subr.mxu1 %v8414_v16 }
 0x644   :  { %7911 = vmatpush3.msra.mxu0 %v8339_v17  ;;  %7922 = vmatpush3.msra.mxu1 %v8340_v18 }
 0x645   :  { %7912 = vmatprep.subr.mxu0 %v8414_v16  ;;  %7923 = vmatprep.subr.mxu1 %v8414_v16 }
 0x646   :  { %7913 = vmatpush3.msra.mxu0 %v8341_v37  ;;  %7924 = vmatpush3.msra.mxu1 %v8342_v38 }
 0x647   :  { %7914 = vmatprep.subr.mxu0 %v8414_v16  ;;  %7925 = vmatprep.subr.mxu1 %v8414_v16 }
 0x648   :  { %7915 = vmatpush3.msra.mxu0 %v8343_v41  ;;  %7926 = vmatpush3.msra.mxu1 %v8344_v1  ;;  %v5346_v1 = vld [vmem:[#allocation2 + $0x1c8] sm:$0xff] }
 0x649   :  { %7916 = vmatprep.mubr.msk.f32.mxu0 %vm8415_vm3, %v8414_v16  ;;  %7927 = vmatprep.mubr.msk.f32.mxu1 %vm8415_vm3, %v8414_v16 }
 0x64a   :  { %7930 = vmatprep.subr.mxu0 %v8414_v16  ;;  %7941 = vmatprep.subr.mxu1 %v8414_v16 }
 0x6e3   :  { %v5093_v14 = vpop.f32.mrf.mxu0  ;;  %v5170_v25 = vpop.f32.mrf.mxu1 }
 0x6e4   :  { %v5097_v21 = vadd.f32 %v5093_v14, %v5017_v3  ;;  %v5174_v53 = vadd.f32 %v5170_v25, %v5019_v15 }
 0x6e5   :  { %v7830_v56 = vpop.f32.mrf.mxu0  ;;  %v7841_v58 = vpop.f32.mrf.mxu1 }
 0x6e6   :  { %v6744_v27 = vmul.f32 -1.442695, %v5097_v21  ;;  %v6746_v62 = vmul.f32 -1.442695, %v5174_v53  ;;  %v5343_v53 = vld [vmem:[#allocation2 + $0x188] sm:$0xff] }
 0x6e8   :  { %8217 = vpow2.f32 %v6744_v27 }
 0x6e9   :  { %8219 = vpow2.f32 %v6746_v62 }
 0x6ec   :  { %v5247_v63 = vpop.f32.mrf.mxu0  ;;  %v5319_v42 = vpop.f32.mrf.mxu1 }
 0x6ed   :  { %v5323_v4 = vadd.f32 %v5319_v42, %v5023_v2  ;;  %v5251_v55 = vadd.f32 %v5247_v63, %v5021_v54 }
 0x6ee   :  { %v7852_v5 = vpop.f32.mrf.mxu0  ;;  %v7863_v6 = vpop.f32.mrf.mxu1 }
 0x6ef   :  { %v6749_v13 = vmul.f32 -1.442695, %v5323_v4 }
 0x6f1   :  { %8221 = vpow2.f32 %v6749_v13 }
 0x6f2   :  { %8223 = vtanh.f32 %v5251_v55 }
 0x6f5   :  { %v8218_v26 = vpop.eup %8217 }
 0x6f6   :  { %v8220_v19 = vpop.eup %8219  ;;  %v5101_v20 = vadd.f32 1.0, %v8218_v26 }
 0x6f7   :  { %v5178_v61 = vadd.f32 1.0, %v8220_v19  ;;  %v5416_v22 = vpop.f32.mrf.mxu0  ;;  %v5493_v46 = vpop.f32.mrf.mxu1 }
 0x6f8   :  { %8225 = vrcp.f32 %v5101_v20  ;;  %v5420_v47 = vadd.f32 %v5416_v22, %v5337_v7  ;;  %v5497_v50 = vadd.f32 %v5493_v46, %v5340_v29 }
 0x6f9   :  { %8227 = vrcp.f32 %v5178_v61  ;;  %v7874_v51 = vpop.f32.mrf.mxu0  ;;  %v7885_v28 = vpop.f32.mrf.mxu1 }
 0x6fa   :  { %v6751_v17 = vmul.f32 -1.442695, %v5420_v47  ;;  %v6753_v18 = vmul.f32 -1.442695, %v5497_v50  ;;  %v5663_v51 = vld [vmem:[#allocation2 + $0xb8] sm:$0xff] }
 0x6fc   :  { %8229 = vpow2.f32 %v6751_v17 }
 0x6fd   :  { %8231 = vpow2.f32 %v6753_v18 }
 0x6fe   :  { %v8222_v41 = vpop.eup %8221 }
 0x6ff   :  { %v8224_v25 = vpop.eup %8223  ;;  %v5327_v21 = vadd.f32 1.0, %v8222_v41  ;;  %v5979_v41 = vld [vmem:[#allocation2 + $0x100] sm:$0xff] }
 0x700   :  { %v5570_v37 = vpop.f32.mrf.mxu0  ;;  %v5642_v38 = vpop.f32.mrf.mxu1 }
 0x701   :  { %v5646_v3 = vadd.f32 %v5642_v38, %v5346_v1  ;;  %v5574_v58 = vadd.f32 %v5570_v37, %v5343_v53  ;;  %8233 = vrcp.f32 %v5327_v21 }
 0x702   :  { %v7896_v14 = vpop.f32.mrf.mxu0  ;;  %v7907_v15 = vpop.f32.mrf.mxu1 }
 0x703   :  { %v6756_v63 = vmul.f32 -1.442695, %v5646_v3  ;;  %8235 = vtanh.f32 %v5574_v58  ;;  %v5982_v3 = vld [vmem:[#allocation2 + $0x140] sm:$0xff] }
 0x705   :  { %v8226_v56 = vpop.eup %8225  ;;  %8237 = vpow2.f32 %v6756_v63 }
 0x706   :  { %v8228_v27 = vpop.eup %8227  ;;  %v5331_v62 = vmul.f32 %v8226_v56, %v8224_v25 }
 0x707   :  { %v5330_v2 = vmul.f32 %v8228_v27, %v9504_v52 }
 0x709   :  { %v8230_v42 = vpop.eup %8229  ;;  %v9640_v4 = vadd.f32 %v5331_v62, %v5330_v2  ;;  %v5988_v2 = vld [vmem:[#allocation2 + $0x1c0] sm:$0xff] }
 0x70a   :  { %v8232_v5 = vpop.eup %8231  ;;  %v5424_v6 = vadd.f32 1.0, %v8230_v42 }
 0x70b   :  { %8239 = vtanh.f32 %v9640_v4  ;;  %v5501_v13 = vadd.f32 1.0, %v8232_v5 }
 0x70c   :  { %8241 = vrcp.f32 %v5424_v6 }
 0x70d   :  { %8243 = vrcp.f32 %v5501_v13 }
 0x70e   :  { %v8234_v54 = vpop.eup %8233 }
 0x710   :  { %v8236_v55 = vpop.eup %8235 }
 0x712   :  { %v8238_v26 = vpop.eup %8237 }
 0x713   :  { %v5650_v22 = vadd.f32 1.0, %v8238_v26 }
 0x715   :  { %8245 = vrcp.f32 %v5650_v22 }
 0x718   :  { %v8240_v19 = vpop.eup %8239 }
 0x719   :  { %v8242_v20 = vpop.eup %8241  ;;  %v5334_v61 = vmul.f32 %v8240_v19, %v8234_v54 }
 0x71a   :  { %v8244_v52 = vpop.eup %8243  ;;  %v5654_v7 = vmul.f32 %v8242_v20, %v8236_v55  ;;  %v5985_v55 = vld [vmem:[#allocation2 + $0x180] sm:$0xff] }
 0x71b   :  { %v5653_v29 = vmul.f32 %v8244_v52, %v9516_v24  ;;  %7917 = vmatmul.mubr.msk.f32.vlgmr.msra.gmra.mxu0 %vm198_vm2, %v5334_v61  ;;  %7928 = vmatmul.mubr.msk.f32.vlgmr.msra.gmra.mxu1 %vm198_vm2, %v5334_v61 }
 0x71c   :  { %7931 = vmatpush3.msra.mxu0 %v9510_v23  ;;  %7942 = vmatpush3.msra.mxu1 %v9513_v30 }
 0x71d   :  { %v9648_v46 = vadd.f32 %v5654_v7, %v5653_v29  ;;  %7932 = vmatprep.subr.mxu0 %v8414_v16  ;;  %7943 = vmatprep.subr.mxu1 %v8414_v16 }
 0x71e   :  { %7933 = vmatpush3.msra.mxu0 %v9520_v57  ;;  %7944 = vmatpush3.msra.mxu1 %v9523_v31  ;;  %v6309_v57 = vld [vmem:[%s9782_s6 + $0x18] sm:$0xff]  ;;  %v6308_v31 = vld [vmem:[%s9782_s6 + $0x10] sm:$0xff] }
 0x71f   :  { %8247 = vtanh.f32 %v9648_v46  ;;  %7934 = vmatprep.subr.mxu0 %v8414_v16  ;;  %7945 = vmatprep.subr.mxu1 %v8414_v16 }
 0x720   :  { %7935 = vmatpush3.msra.mxu0 %v9529_v32  ;;  %7946 = vmatpush3.msra.mxu1 %v9532_v33  ;;  %v6307_v32 = vld [vmem:[%s9782_s6 + $0x8] sm:$0xff]  ;;  %v6306_v33 = vld [vmem:[%s9782_s6] sm:$0xff] }
 0x721   :  { %7936 = vmatprep.subr.mxu0 %v8414_v16  ;;  %7947 = vmatprep.subr.mxu1 %v8414_v16 }
 0x722   :  { %7937 = vmatpush3.msra.mxu0 %v9537_v34  ;;  %7938 = vmatprep.mubr.msk.f32.mxu0 %vm8415_vm3, %v8414_v16  ;;  %v8246_v23 = vpop.eup %8245  ;;  %v6774_v34 = vld [vmem:[%s9782_s6 + $0x38] sm:$0xff] }
 0x723   :  { %7948 = vmatpush3.msra.mxu1 %v9542_v35  ;;  %7949 = vmatprep.mubr.msk.f32.mxu1 %vm8415_vm3, %v8414_v16  ;;  %v6773_v35 = vld [vmem:[%s9782_s6 + $0x30] sm:$0xff] }
 0x724   :  { %7939 = vmatmul.mubr.msk.f32.vlgmr.msra.gmra.mxu0 %vm198_vm2, %v5334_v61  ;;  %7950 = vmatmul.mubr.msk.f32.vlgmr.msra.gmra.mxu1 %vm198_vm2, %v5334_v61 }
 0x725   :  { %7952 = vmatprep.subr.mxu0 %v8414_v16  ;;  %7963 = vmatprep.subr.mxu1 %v8414_v16 }
 0x726   :  { %7953 = vmatpush3.msra.mxu0 %v9551_v36  ;;  %7964 = vmatpush3.msra.mxu1 %v9554_v39  ;;  %v6772_v36 = vld [vmem:[%s9782_s6 + $0x28] sm:$0xff]  ;;  %v6771_v39 = vld [vmem:[%s9782_s6 + $0x20] sm:$0xff]  ;;  %s8416_s6 = smov [#allocation6]  }
 0x727   :  { %7954 = vmatprep.subr.mxu0 %v8414_v16  ;;  %7965 = vmatprep.subr.mxu1 %v8414_v16  ;;  %s6477_s26 = sshll.u32 %s8416_s6, 4  ;;  %s6478_s26 = int_to_ptr.vmem [resolvable:$true] %s6477_s26 }
 0x728   :  { %7955 = vmatpush3.msra.mxu0 %v9559_v40  ;;  %7966 = vmatpush3.msra.mxu1 %v9562_v43  ;;  %v5659_v40 = vld [vmem:[#allocation2 + $0x38] sm:$0xff]  ;;  %s8365_s28 = scalar_lea.vmem %s6478_s26, 256  ;;  %p8370_p6 = scmp.lt.s32.totalorder %s6478_s26, %s6478_s26 }
 0x729   :  { %7956 = vmatprep.subr.mxu0 %v8414_v16  ;;  %7967 = vmatprep.subr.mxu1 %v8414_v16  ;;  %p8366_p5 = scmp.ne.s32.totalorder %s6478_s26, %s8365_s28  ;;  %p8371_p7 = scmp.lt.s32.totalorder %s8365_s28, %s8365_s28 }
 0x72a   :  { %7957 = vmatpush3.msra.mxu0 %v9567_v44  ;;  %7968 = vmatpush3.msra.mxu1 %v9570_v45  ;;  %v5661_v44 = vld [vmem:[#allocation2 + $0x78] sm:$0xff] }
 0x72b   :  { %7958 = vmatprep.subr.mxu0 %v8414_v16  ;;  %7969 = vmatprep.subr.mxu1 %v8414_v16  ;;  %p8372_p8 = por %p8371_p7, %p8370_p6 }
 0x72c   :  { %v8248_v30 = vpop.eup %8247  ;;  %7959 = vmatpush3.msra.mxu0 %v9575_v48  ;;  %7960 = vmatprep.mubr.msk.f32.mxu0 %vm8415_vm3, %v8414_v16 }
 0x72d   :  { %7970 = vmatpush3.msra.mxu1 %v9580_v49  ;;  %7971 = vmatprep.mubr.msk.f32.mxu1 %vm8415_vm3, %v8414_v16  ;;  %v5657_v24 = vmul.f32 %v8248_v30, %v8246_v23  ;;  %p8373_p9 = pnand %p8372_p8, %p8366_p5 }
 0x72e   :  { %7974 = vmatprep.subr.mxu0 %v8414_v16  ;;  %7985 = vmatprep.subr.mxu1 %v8414_v16 }
 0x72f   :  { %7961 = vmatmul.mubr.msk.f32.vlgmr.msra.gmra.mxu0 %vm198_vm2, %v5657_v24  ;;  %7972 = vmatmul.mubr.msk.f32.vlgmr.msra.gmra.mxu1 %vm198_vm2, %v5657_v24 }
 0x730   :  { %7975 = vmatpush3.msra.mxu0 %v9589_v8  ;;  %7986 = vmatpush3.msra.mxu1 %v9592_v9 }
 0x731   :  { %7976 = vmatprep.subr.mxu0 %v8414_v16  ;;  %7987 = vmatprep.subr.mxu1 %v8414_v16 }
 0x732   :  { %7977 = vmatpush3.msra.mxu0 %v9597_v59  ;;  %7988 = vmatpush3.msra.mxu1 %v9600_v60 }
 0x733   :  { %7978 = vmatprep.subr.mxu0 %v8414_v16  ;;  %7989 = vmatprep.subr.mxu1 %v8414_v16 }
 0x734   :  { %7979 = vmatpush3.msra.mxu0 %v9605_v10  ;;  %7990 = vmatpush3.msra.mxu1 %v9608_v11  ;;  %v5665_v11 = vld [vmem:[#allocation2 + $0xf8] sm:$0xff] }
 0x735   :  { %7980 = vmatprep.subr.mxu0 %v8414_v16  ;;  %7991 = vmatprep.subr.mxu1 %v8414_v16 }
 0x736   :  { %7981 = vmatpush3.msra.mxu0 %v9613_v12  ;;  %7982 = vmatprep.mubr.msk.f32.mxu0 %vm8415_vm3, %v8414_v16 }
 0x737   :  { %7992 = vmatpush3.msra.mxu1 %v9618_v0  ;;  %7993 = vmatprep.mubr.msk.f32.mxu1 %vm8415_vm3, %v8414_v16 }
 0x738   :  { %7983 = vmatmul.mubr.msk.f32.vlgmr.msra.gmra.mxu0 %vm198_vm2, %v5657_v24  ;;  %7994 = vmatmul.mubr.msk.f32.vlgmr.msra.gmra.mxu1 %vm198_vm2, %v5657_v24 }
 0x739   :  { %8007 = vmatprep.subr.mxu1 %v8414_v16  ;;  %8015 = vmatprep.mubr.msk.f32.mxu1 %vm8415_vm3, %v8414_v16 }
 0x73a   :  { %7996 = vmatprep.subr.mxu0 %v8414_v16  ;;  %8004 = vmatprep.mubr.msk.f32.mxu0 %vm8415_vm3, %v8414_v16 }
 0x73b   :  { %8008 = vmatpush3.msra.mxu1 %v6309_v57  ;;  %7997 = vmatpush3.msra.mxu0 %v6774_v34 }
 0x73c   :  { %8009 = vmatprep.subr.mxu1 %v8414_v16  ;;  %7998 = vmatprep.subr.mxu0 %v8414_v16 }
 0x73d   :  { %8010 = vmatpush3.msra.mxu1 %v6308_v31  ;;  %7999 = vmatpush3.msra.mxu0 %v6773_v35 }
 0x73e   :  { %8011 = vmatprep.subr.mxu1 %v8414_v16  ;;  %8000 = vmatprep.subr.mxu0 %v8414_v16 }
 0x73f   :  { %8012 = vmatpush3.msra.mxu1 %v6307_v32  ;;  %8001 = vmatpush3.msra.mxu0 %v6772_v36 }
 0x740   :  { %8013 = vmatprep.subr.mxu1 %v8414_v16  ;;  %8002 = vmatprep.subr.mxu0 %v8414_v16 }
 0x741   :  { %8014 = vmatpush3.msra.mxu1 %v6306_v33  ;;  %8003 = vmatpush3.msra.mxu0 %v6771_v39 }
 0x7db   :  { %v5735_v43 = vpop.f32.mrf.mxu0  ;;  %v5812_v45 = vpop.f32.mrf.mxu1 }
 0x7dc   :  { %v5739_v48 = vadd.f32 %v5735_v43, %v5659_v40  ;;  %v5816_v49 = vadd.f32 %v5812_v45, %v5661_v44 }
 0x7dd   :  { %v7918_v8 = vpop.f32.mrf.mxu0  ;;  %v7929_v9 = vpop.f32.mrf.mxu1 }
 0x7de   :  { %v6758_v59 = vmul.f32 -1.442695, %v5739_v48  ;;  %v6760_v60 = vmul.f32 -1.442695, %v5816_v49 }
 0x7e0   :  { %8249 = vpow2.f32 %v6758_v59 }
 0x7e1   :  { %8251 = vpow2.f32 %v6760_v60 }
 0x7e4   :  { %v5889_v10 = vpop.f32.mrf.mxu0  ;;  %v5961_v12 = vpop.f32.mrf.mxu1 }
 0x7e5   :  { %v5965_v0 = vadd.f32 %v5961_v12, %v5665_v11  ;;  %v5893_v28 = vadd.f32 %v5889_v10, %v5663_v51 }
 0x7e6   :  { %v7940_v47 = vpop.f32.mrf.mxu0  ;;  %v7951_v50 = vpop.f32.mrf.mxu1 }
 0x7e7   :  { %v6763_v16 = vmul.f32 -1.442695, %v5965_v0 }
 0x7e9   :  { %8253 = vpow2.f32 %v6763_v16 }
 0x7ea   :  { %8255 = vtanh.f32 %v5893_v28 }
 0x7ed   :  { %v8250_v17 = vpop.eup %8249 }
 0x7ee   :  { %v8252_v18 = vpop.eup %8251  ;;  %v5743_v37 = vadd.f32 1.0, %v8250_v17 }
 0x7ef   :  { %v5820_v38 = vadd.f32 1.0, %v8252_v18  ;;  %v6058_v1 = vpop.f32.mrf.mxu0  ;;  %v6135_v14 = vpop.f32.mrf.mxu1 }
 0x7f0   :  { %8257 = vrcp.f32 %v5743_v37  ;;  %v6062_v15 = vadd.f32 %v6058_v1, %v5979_v41  ;;  %v6139_v25 = vadd.f32 %v6135_v14, %v5982_v3 }
 0x7f1   :  { %8259 = vrcp.f32 %v5820_v38  ;;  %v7962_v21 = vpop.f32.mrf.mxu0  ;;  %v7973_v53 = vpop.f32.mrf.mxu1 }
 0x7f2   :  { %v6765_v56 = vmul.f32 -1.442695, %v6062_v15  ;;  %v6767_v58 = vmul.f32 -1.442695, %v6139_v25 }
 0x7f4   :  { %8261 = vpow2.f32 %v6765_v56 }
 0x7f5   :  { %8263 = vpow2.f32 %v6767_v58 }
 0x7f6   :  { %v8254_v63 = vpop.eup %8253 }
 0x7f7   :  { %v8256_v13 = vpop.eup %8255  ;;  %v5969_v54 = vadd.f32 1.0, %v8254_v63 }
 0x7f8   :  { %v6212_v27 = vpop.f32.mrf.mxu0  ;;  %v6284_v62 = vpop.f32.mrf.mxu1 }
 0x7f9   :  { %v6288_v42 = vadd.f32 %v6284_v62, %v5988_v2  ;;  %v6216_v19 = vadd.f32 %v6212_v27, %v5985_v55  ;;  %8265 = vrcp.f32 %v5969_v54 }
 0x7fa   :  { %v7984_v5 = vpop.f32.mrf.mxu0  ;;  %v7995_v6 = vpop.f32.mrf.mxu1 }
 0x7fb   :  { %v6770_v52 = vmul.f32 -1.442695, %v6288_v42  ;;  %8267 = vtanh.f32 %v6216_v19 }
 0x7fd   :  { %v8258_v26 = vpop.eup %8257  ;;  %8269 = vpow2.f32 %v6770_v52 }
 0x7fe   :  { %v8260_v20 = vpop.eup %8259  ;;  %v5973_v61 = vmul.f32 %v8258_v26, %v8256_v13 }
 0x7ff   :  { %v5972_v7 = vmul.f32 %v8260_v20, %v9640_v4 }
 0x801   :  { %v8262_v22 = vpop.eup %8261  ;;  %v5974_v29 = vadd.f32 %v5973_v61, %v5972_v7 }
 0x802   :  { %v8264_v23 = vpop.eup %8263  ;;  %v6066_v30 = vadd.f32 1.0, %v8262_v22 }
 0x803   :  { %8271 = vtanh.f32 %v5974_v29  ;;  %6303 = vst.msk [vmem:[#allocation7] sm:$0xff] %vm198_vm2, %v5974_v29  ;;  %v6143_v24 = vadd.f32 1.0, %v8264_v23 }
 0x804   :  { %8273 = vrcp.f32 %v6066_v30 }
 0x805   :  { %8275 = vrcp.f32 %v6143_v24 }
 0x806   :  { %v8266_v57 = vpop.eup %8265 }
 0x808   :  { %v8268_v31 = vpop.eup %8267 }
 0x80a   :  { %v8270_v32 = vpop.eup %8269 }
 0x80b   :  { %v6292_v39 = vadd.f32 1.0, %v8270_v32 }
 0x80d   :  { %8277 = vrcp.f32 %v6292_v39 }
 0x810   :  { %v8272_v33 = vpop.eup %8271 }
 0x811   :  { %v8274_v34 = vpop.eup %8273  ;;  %v5976_v35 = vmul.f32 %v8272_v33, %v8266_v57 }
 0x812   :  { %v8276_v4 = vpop.eup %8275  ;;  %v6296_v36 = vmul.f32 %v8274_v34, %v8268_v31 }
 0x813   :  { %v6295_v40 = vmul.f32 %v8276_v4, %v9648_v46  ;;  %8016 = vmatmul.mubr.msk.f32.vlgmr.msra.gmra.mxu1 %vm198_vm2, %v5976_v35  ;;  %6300 = vst.msk [vmem:[#allocation6] sm:$0xff] %vm198_vm2, %v5976_v35 }
 0x815   :  { %v6297_v43 = vadd.f32 %v6296_v36, %v6295_v40 }
 0x817   :  { %8279 = vtanh.f32 %v6297_v43  ;;  %6305 = vst.msk [vmem:[#allocation7 + $0x8] sm:$0xff] %vm198_vm2, %v6297_v43 }
 0x81a   :  { %v8278_v44 = vpop.eup %8277 }
 0x824   :  { %v8280_v45 = vpop.eup %8279 }
 0x825   :  { %v6299_v48 = vmul.f32 %v8280_v45, %v8278_v44 }
 0x827   :  { %8005 = vmatmul.mubr.msk.f32.vlgmr.msra.gmra.mxu0 %vm198_vm2, %v6299_v48  ;;  %6302 = vst.msk [vmem:[#allocation6 + $0x8] sm:$0xff] %vm198_vm2, %v6299_v48 }
 0x828   :  { %8376 = shalt.err (!%p8373_p9)
}
 0x829   :  { %6483 = dma.vmem_to_hbm [thread:$0]  %s6478_s26, 256, %s9785_s9, [#allocation5], %s8412_s16, %s8412_s16, %s8413_s17  }
 0x82a   :  { %s8385_s30 = scalar_lea.vmem %s6490_s0, 256  ;;  %p8390_p11 = scmp.lt.s32.totalorder %s6490_s0, %s6490_s0 }
 0x82b   :  { %p8386_p10 = scmp.ne.s32.totalorder %s6490_s0, %s8385_s30  ;;  %p8391_p12 = scmp.lt.s32.totalorder %s8385_s30, %s8385_s30 }
 0x82d   :  { %p8392_p13 = por %p8391_p12, %p8390_p11 }
 0x82f   :  { %p8393_p0 = pnand %p8392_p13, %p8386_p10 }
 0x831   :  { %8396 = shalt.err (!%p8393_p0)
}
 0x832   :  { %6495 = dma.vmem_to_hbm [thread:$0]  %s6490_s0, 256, %s9786_s10, [#allocation8], %s8412_s16, %s8412_s16, %s8413_s17  }
 0x833   :  { %v6777_v9 = vld [vmem:[%s9783_s7] ss:$0 sm:$0xff] }
 0x8d3   :  { %v6457_v46 = vpop.f32.mrf.mxu1 }
 0x8d5   :  { %v8017_v49 = vpop.f32.mrf.mxu1 }
 0x8e7   :  { %v6384_v8 = vpop.f32.mrf.mxu0 }
 0x8e8   :  { %v6458_v59 = vadd.f32 %v6457_v46, %v6384_v8 }
 0x8e9   :  { %v8006_v60 = vpop.f32.mrf.mxu0 }
 0x8ea   :  { %v6468_v10 = vadd.f32 %v6777_v9, %v6458_v59 }
 0x8ec   :  { %6469 = vst.msk [vmem:[%s9784_s8] sm:$0xff] %vm64_vm1, %v6468_v10 }
 0x8ed   :  { %8407 = dma.done.wait [#allocation5], 256  }
 0x8ee   :  { %8408 = vsyncadd [#allocation5], 4294967040 }
 0x8ef   :  { %8409 = dma.done.wait [#allocation8], 256  }
 0x8f0   :  { %8410 = vsyncadd [#allocation8], 4294967040 }
 0x8f1   :  { %6504 = vsyncpa [#allocation4], 1 }
 0x8f2   :  { %6505 = vsyncpa [#allocation5], 1 }
 0x8f3   :  { %6506 = vsyncpa [#allocation8], 1 }

</bundles_post_ra>
